<compile_context>
chip_gen: v5e
topology: v5e:2x2
jax: 0.10.0
libtpu: 0.0.40
codegen_flags: <defaults>
</compile_context>

<pallas_src>
import jax
import jax.numpy as jnp
from jax import lax
from jax.experimental import pallas as pl
from jax.experimental.pallas import tpu as pltpu

_GRID = 14                    # hard-coded 14x14 patch grid in the module
_NTOK = 1 + _GRID * _GRID     # 197 tokens (CLS + patches)
_OFF = 16                     # zero rows in front of the token axis (>= 15)
_PAD_ROWS = 232               # _OFF + 197 + 15, rounded up to a multiple of 8


def _quick_gelu(v):
    # QuickGELU: x * sigmoid(1.702 * x)
    return v * (1.0 / (1.0 + jnp.exp(-1.702 * v)))


def _conv_tap_masks():
    """(9, 197, 1) f32 validity mask per conv tap.

    Row 0 (CLS): only the center tap (di=dj=1) contributes (3x3 conv, pad=1,
    1x1 image).  Rows 1..196 (patch p = i*14+j): tap (di,dj) is valid iff the
    shifted spatial position stays inside the 14x14 grid (kills column wrap
    and out-of-range rows).
    """
    masks = []
    for di in range(3):
        for dj in range(3):
            m = [1.0 if (di == 1 and dj == 1) else 0.0]
            for p in range(_GRID * _GRID):
                i, j = p // _GRID, p % _GRID
                ok = (0 <= i + di - 1 < _GRID) and (0 <= j + dj - 1 < _GRID)
                m.append(1.0 if ok else 0.0)
            masks.append(m)
    return jnp.asarray(masks, jnp.float32)[:, :, None]


# ---------------- fused kernel ----------------

def _adapter_kernel(x_ref, mod_ref, wd_ref, bd_ref, wc_ref, bc_ref,
                    wu_ref, bu_ref, mask_ref, scale_ref, o_ref, pad_ref):
    n_tok = x_ref.shape[1]
    h_dim = wd_ref.shape[1]

    # ---- down projection + QuickGELU (all 197 tokens at once) ----
    h = jnp.dot(x_ref[0], wd_ref[...], preferred_element_type=jnp.float32)
    h = _quick_gelu(h + bd_ref[...])                         # (197, H)

    # ---- 3x3 Conv2d (CLS + 14x14 patches) as 9 masked shifted matmuls ----
    # scratch layout along tokens: [zeros | h (197 rows at _OFF) | zeros]
    pad_ref[...] = jnp.zeros_like(pad_ref)                   # borders must be 0 every step
    pad_ref[_OFF:_OFF + n_tok, :] = h
    acc = jnp.zeros((n_tok, h_dim), jnp.float32)
    for t in range(9):
        di, dj = t // 3, t % 3
        shift = (di - 1) * _GRID + (dj - 1)
        win = pad_ref[_OFF + shift:_OFF + shift + n_tok, :] * mask_ref[t]
        acc = acc + jnp.dot(win, wc_ref[t], preferred_element_type=jnp.float32)
    z = _quick_gelu(acc + bc_ref[...])                       # (197, H)
    # TODO(synk): nn.Dropout(0.1) is the identity in eval/inference mode; the
    # training-mode random mask is not implemented here.

    # ---- up projection + Scaler + parallel merge: module(x) + layer(x) ----
    up = jnp.dot(z, wu_ref[...], preferred_element_type=jnp.float32)
    up = (up + bu_ref[...]) * scale_ref[0]
    o_ref[0] = mod_ref[0] + up                               # single full-tile store


# ---------------- wrapper ----------------

def conv2d_adapter_forward(x, params, module_fn):
    """Conv2dAdapter.forward(module, input) with mode='parallel'."""
    B, N, D = x.shape
    assert N == _NTOK, "Conv2dAdapter hard-codes a 14x14 patch grid (+1 CLS token)"
    wd_t, bd = params["down_w"], params["down_b"]   # (H, D), (H,)   torch layouts
    wc_t, bc = params["conv_w"], params["conv_b"]   # (H, H, 3, 3), (H,)
    wu_t, bu = params["up_w"], params["up_b"]       # (D, H), (D,)
    scale = params["scale"]                         # (1,)
    H = wd_t.shape[0]

    # kernel-friendly parameter layouts (tiny host-side glue)
    wd = wd_t.T                                                  # (D, H)
    wu = wu_t.T                                                  # (H, D)
    wc = jnp.transpose(wc_t, (2, 3, 1, 0)).reshape(9, H, H)      # wc[di*3+dj] = W[:, :, di, dj].T
    masks = _conv_tap_masks()                                    # (9, 197, 1)

    # TODO(synk): `module` is an arbitrary wrapped nn.Module; treated as a
    # user-supplied JAX callable evaluated outside the kernel.
    mod_out = module_fn(x)

    return pl.pallas_call(
        _adapter_kernel,
        out_shape=jax.ShapeDtypeStruct((B, N, D), jnp.float32),
        grid=(B,),
        in_specs=[
            pl.BlockSpec((1, N, D), lambda b: (b, 0, 0)),        # x
            pl.BlockSpec((1, N, D), lambda b: (b, 0, 0)),        # module(x)
            pl.BlockSpec((D, H), lambda b: (0, 0)),              # down weight (D, H)
            pl.BlockSpec((1, H), lambda b: (0, 0)),              # down bias
            pl.BlockSpec((9, H, H), lambda b: (0, 0, 0)),        # conv taps (H_in, H_out)
            pl.BlockSpec((1, H), lambda b: (0, 0)),              # conv bias
            pl.BlockSpec((H, D), lambda b: (0, 0)),              # up weight (H, D)
            pl.BlockSpec((1, D), lambda b: (0, 0)),              # up bias
            pl.BlockSpec((9, N, 1), lambda b: (0, 0, 0)),        # per-tap validity masks
            pl.BlockSpec(memory_space=pltpu.MemorySpace.SMEM),   # Scaler scale
        ],
        out_specs=pl.BlockSpec((1, N, D), lambda b: (b, 0, 0)),
        scratch_shapes=[pltpu.VMEM((_PAD_ROWS, H), jnp.float32)],
        compiler_params=pltpu.CompilerParams(dimension_semantics=("parallel",)),
    )(x, mod_out, wd, bd.reshape(1, H), wc, bc.reshape(1, H),
      wu, bu.reshape(1, D), masks, scale)


# ---------------- pure-JAX reference (mirrors the PyTorch code path) ----------------

def conv2d_adapter_reference(x, params, module_fn):
    B, N, D = x.shape
    H = params["down_w"].shape[0]
    qgelu = lambda v: v * jax.nn.sigmoid(1.702 * v)

    h = x @ params["down_w"].T + params["down_b"]
    h = qgelu(h)

    patch = h[:, 1:].reshape(B, 14, 14, H).transpose(0, 3, 1, 2)        # NCHW
    patch = lax.conv_general_dilated(
        patch, params["conv_w"], window_strides=(1, 1), padding=((1, 1), (1, 1)),
        dimension_numbers=("NCHW", "OIHW", "NCHW"))
    patch = patch + params["conv_b"].reshape(1, H, 1, 1)
    patch = patch.transpose(0, 2, 3, 1).reshape(B, 14 * 14, H)

    cls = h[:, :1].reshape(B, 1, 1, H).transpose(0, 3, 1, 2)            # (B, H, 1, 1)
    cls = lax.conv_general_dilated(
        cls, params["conv_w"], window_strides=(1, 1), padding=((1, 1), (1, 1)),
        dimension_numbers=("NCHW", "OIHW", "NCHW"))
    cls = cls + params["conv_b"].reshape(1, H, 1, 1)
    cls = cls.transpose(0, 2, 3, 1).reshape(B, 1, H)

    z = jnp.concatenate([cls, patch], axis=1)
    z = qgelu(z)                                     # dropout: eval -> identity
    up = z @ params["up_w"].T + params["up_b"]
    up = up * params["scale"][0]
    return module_fn(x) + up


if __name__ == "__main__":
    key = jax.random.PRNGKey(0)
    ks = jax.random.split(key, 8)

    # Shapes consistent with the module: N = 1 + 14*14 = 197 is forced by the
    # hard-coded 14x14 patch reshape; embed_dim=32, down_sample(int)=hidden=8.
    B, N, D, H = 2, 197, 32, 8

    x = jax.random.normal(ks[0], (B, N, D), jnp.float32)

    # Deterministic parameters.  The module's default init makes the adapter
    # path trivially zero (zero up-proj, identity conv), so small fixed random
    # values are used to exercise the kernel non-trivially.
    params = {
        "down_w": 0.05 * jax.random.normal(ks[1], (H, D), jnp.float32),
        "down_b": 0.05 * jax.random.normal(ks[2], (H,), jnp.float32),
        "conv_w": 0.20 * jax.random.normal(ks[3], (H, H, 3, 3), jnp.float32),
        "conv_b": 0.05 * jax.random.normal(ks[4], (H,), jnp.float32),
        "up_w":   0.05 * jax.random.normal(ks[5], (D, H), jnp.float32),
        "up_b":   0.05 * jax.random.normal(ks[6], (D,), jnp.float32),
        # TODO(synk): Scaler's definition is not in the snippet; assumed scalar
        # multiply with learnable scale initialized to 1.0 (scale=None case).
        "scale": jnp.ones((1,), jnp.float32),
    }

    module_fn = lambda t: t   # wrapped module treated as a user-supplied JAX callable

    out = conv2d_adapter_forward(x, params, module_fn)
    out = jax.block_until_ready(out)

    ref = conv2d_adapter_reference(x, params, module_fn)
    assert out.shape == (B, N, D)
    err = float(jnp.max(jnp.abs(out - ref)))
    assert jnp.allclose(out, ref, atol=5e-3, rtol=5e-3), err
    print("KERNEL_OK")
</pallas_src>

<mosaic_0001>
module attributes {stable_mosaic.version = 11 : i64} {
  func.func @_adapter_kernel(%arg0: i32, %arg1: memref<1x197x32xf32, #tpu.memory_space<vmem>>, %arg2: memref<1x197x32xf32, #tpu.memory_space<vmem>>, %arg3: memref<32x8xf32, #tpu.memory_space<vmem>>, %arg4: memref<1x8xf32, #tpu.memory_space<vmem>>, %arg5: memref<9x8x8xf32, #tpu.memory_space<vmem>>, %arg6: memref<1x8xf32, #tpu.memory_space<vmem>>, %arg7: memref<8x32xf32, #tpu.memory_space<vmem>>, %arg8: memref<1x32xf32, #tpu.memory_space<vmem>>, %arg9: memref<9x197x1xf32, #tpu.memory_space<vmem>>, %arg10: memref<1xf32, #tpu.memory_space<smem>>, %arg11: memref<1x197x32xf32, #tpu.memory_space<vmem>>, %arg12: memref<232x8xf32, #tpu.memory_space<vmem>>) attributes {dimension_semantics = [#tpu.dimension_semantics<parallel>], iteration_bounds = array<i64: 2>, scalar_prefetch = 0 : i64, scratch_operands = 1 : i64, tpu.core_type = #tpu.core_type<tc>, window_params = [{transform_indices = @transform_0, window_bounds = array<i64: 1, 197, 32>}, {transform_indices = @transform_1, window_bounds = array<i64: 1, 197, 32>}, {pipeline_mode = #tpu.pipeline_mode<synchronous>, transform_indices = @transform_2, window_bounds = array<i64: 32, 8>}, {pipeline_mode = #tpu.pipeline_mode<synchronous>, transform_indices = @transform_3, window_bounds = array<i64: 1, 8>}, {pipeline_mode = #tpu.pipeline_mode<synchronous>, transform_indices = @transform_4, window_bounds = array<i64: 9, 8, 8>}, {pipeline_mode = #tpu.pipeline_mode<synchronous>, transform_indices = @transform_5, window_bounds = array<i64: 1, 8>}, {pipeline_mode = #tpu.pipeline_mode<synchronous>, transform_indices = @transform_6, window_bounds = array<i64: 8, 32>}, {pipeline_mode = #tpu.pipeline_mode<synchronous>, transform_indices = @transform_7, window_bounds = array<i64: 1, 32>}, {pipeline_mode = #tpu.pipeline_mode<synchronous>, transform_indices = @transform_8, window_bounds = array<i64: 9, 197, 1>}, {transform_indices = @transform_9, window_bounds = array<i64: 1>}, {transform_indices = @transform_10, window_bounds = array<i64: 1, 197, 32>}]} {
    %c0 = arith.constant 0 : index
    %c0_0 = arith.constant 0 : index
    %c0_1 = arith.constant 0 : index
    %0 = vector.load %arg1[%c0, %c0_0, %c0_1] : memref<1x197x32xf32, #tpu.memory_space<vmem>>, vector<1x197x32xf32>
    %1 = vector.shape_cast %0 : vector<1x197x32xf32> to vector<197x32xf32>
    %c0_2 = arith.constant 0 : index
    %c0_3 = arith.constant 0 : index
    %2 = vector.load %arg3[%c0_2, %c0_3] : memref<32x8xf32, #tpu.memory_space<vmem>>, vector<32x8xf32>
    %cst = arith.constant dense<0.000000e+00> : vector<197x8xf32>
    %3 = tpu.matmul %1, %2, %cst {dimension_numbers = #tpu.dot_dimension_numbers<[1], [0], [0], [1], [0, 0, 1, 1], [], []>} : vector<197x32xf32>, vector<32x8xf32>, vector<197x8xf32> -> vector<197x8xf32>
    %c0_4 = arith.constant 0 : index
    %c0_5 = arith.constant 0 : index
    %4 = vector.load %arg4[%c0_4, %c0_5] : memref<1x8xf32, #tpu.memory_space<vmem>>, vector<1x8xf32>
    %5 = vector.broadcast %4 : vector<1x8xf32> to vector<197x8xf32>
    %6 = arith.addf %3, %5 : vector<197x8xf32>
    %cst_6 = arith.constant -1.702000e+00 : f32
    %7 = vector.broadcast %cst_6 : f32 to vector<197x8xf32>
    %8 = arith.mulf %7, %6 : vector<197x8xf32>
    %9 = math.exp %8 : vector<197x8xf32>
    %cst_7 = arith.constant 1.000000e+00 : f32
    %10 = vector.broadcast %cst_7 : f32 to vector<197x8xf32>
    %11 = arith.addf %10, %9 : vector<197x8xf32>
    %cst_8 = arith.constant 1.000000e+00 : f32
    %12 = vector.broadcast %cst_8 : f32 to vector<197x8xf32>
    %13 = arith.divf %12, %11 : vector<197x8xf32>
    %14 = arith.mulf %6, %13 : vector<197x8xf32>
    %cst_9 = arith.constant 0.000000e+00 : f32
    %15 = vector.broadcast %cst_9 : f32 to vector<232x8xf32>
    %c0_10 = arith.constant 0 : index
    %c0_11 = arith.constant 0 : index
    %16 = vector.load %arg12[%c0_10, %c0_11] : memref<232x8xf32, #tpu.memory_space<vmem>>, vector<232x8xf32>
    tpu.vector_store %arg12[%c0_10, %c0_11], %15 {strides = array<i32>} : memref<232x8xf32, #tpu.memory_space<vmem>>, vector<232x8xf32>,
    %c16 = arith.constant 16 : index
    %c0_12 = arith.constant 0 : index
    %17 = vector.load %arg12[%c16, %c0_12] : memref<232x8xf32, #tpu.memory_space<vmem>>, vector<197x8xf32>
    tpu.vector_store %arg12[%c16, %c0_12], %14 {strides = array<i32>} : memref<232x8xf32, #tpu.memory_space<vmem>>, vector<197x8xf32>,
    %cst_13 = arith.constant 0.000000e+00 : f32
    %18 = vector.broadcast %cst_13 : f32 to vector<197x8xf32>
    %c1 = arith.constant 1 : index
    %c0_14 = arith.constant 0 : index
    %19 = vector.load %arg12[%c1, %c0_14] : memref<232x8xf32, #tpu.memory_space<vmem>>, vector<197x8xf32>
    %c0_15 = arith.constant 0 : index
    %c0_16 = arith.constant 0 : index
    %c0_17 = arith.constant 0 : index
    %20 = vector.load %arg9[%c0_15, %c0_16, %c0_17] : memref<9x197x1xf32, #tpu.memory_space<vmem>>, vector<1x197x1xf32>
    %21 = vector.shape_cast %20 : vector<1x197x1xf32> to vector<197x1xf32>
    %22 = vector.broadcast %21 : vector<197x1xf32> to vector<197x8xf32>
    %23 = arith.mulf %19, %22 : vector<197x8xf32>
    %c0_18 = arith.constant 0 : index
    %c0_19 = arith.constant 0 : index
    %c0_20 = arith.constant 0 : index
    %24 = vector.load %arg5[%c0_18, %c0_19, %c0_20] : memref<9x8x8xf32, #tpu.memory_space<vmem>>, vector<1x8x8xf32>
    %25 = vector.shape_cast %24 : vector<1x8x8xf32> to vector<8x8xf32>
    %cst_21 = arith.constant dense<0.000000e+00> : vector<197x8xf32>
    %26 = tpu.matmul %23, %25, %cst_21 {dimension_numbers = #tpu.dot_dimension_numbers<[1], [0], [0], [1], [0, 0, 1, 1], [], []>} : vector<197x8xf32>, vector<8x8xf32>, vector<197x8xf32> -> vector<197x8xf32>
    %27 = arith.addf %18, %26 : vector<197x8xf32>
    %c2 = arith.constant 2 : index
    %c0_22 = arith.constant 0 : index
    %28 = vector.load %arg12[%c2, %c0_22] : memref<232x8xf32, #tpu.memory_space<vmem>>, vector<197x8xf32>
    %c1_23 = arith.constant 1 : index
    %c0_24 = arith.constant 0 : index
    %c0_25 = arith.constant 0 : index
    %29 = vector.load %arg9[%c1_23, %c0_24, %c0_25] : memref<9x197x1xf32, #tpu.memory_space<vmem>>, vector<1x197x1xf32>
    %30 = vector.shape_cast %29 : vector<1x197x1xf32> to vector<197x1xf32>
    %31 = vector.broadcast %30 : vector<197x1xf32> to vector<197x8xf32>
    %32 = arith.mulf %28, %31 : vector<197x8xf32>
    %c1_26 = arith.constant 1 : index
    %c0_27 = arith.constant 0 : index
    %c0_28 = arith.constant 0 : index
    %33 = vector.load %arg5[%c1_26, %c0_27, %c0_28] : memref<9x8x8xf32, #tpu.memory_space<vmem>>, vector<1x8x8xf32>
    %34 = vector.shape_cast %33 : vector<1x8x8xf32> to vector<8x8xf32>
    %cst_29 = arith.constant dense<0.000000e+00> : vector<197x8xf32>
    %35 = tpu.matmul %32, %34, %cst_29 {dimension_numbers = #tpu.dot_dimension_numbers<[1], [0], [0], [1], [0, 0, 1, 1], [], []>} : vector<197x8xf32>, vector<8x8xf32>, vector<197x8xf32> -> vector<197x8xf32>
    %36 = arith.addf %27, %35 : vector<197x8xf32>
    %c3 = arith.constant 3 : index
    %c0_30 = arith.constant 0 : index
    %37 = vector.load %arg12[%c3, %c0_30] : memref<232x8xf32, #tpu.memory_space<vmem>>, vector<197x8xf32>
    %c2_31 = arith.constant 2 : index
    %c0_32 = arith.constant 0 : index
    %c0_33 = arith.constant 0 : index
    %38 = vector.load %arg9[%c2_31, %c0_32, %c0_33] : memref<9x197x1xf32, #tpu.memory_space<vmem>>, vector<1x197x1xf32>
    %39 = vector.shape_cast %38 : vector<1x197x1xf32> to vector<197x1xf32>
    %40 = vector.broadcast %39 : vector<197x1xf32> to vector<197x8xf32>
    %41 = arith.mulf %37, %40 : vector<197x8xf32>
    %c2_34 = arith.constant 2 : index
    %c0_35 = arith.constant 0 : index
    %c0_36 = arith.constant 0 : index
    %42 = vector.load %arg5[%c2_34, %c0_35, %c0_36] : memref<9x8x8xf32, #tpu.memory_space<vmem>>, vector<1x8x8xf32>
    %43 = vector.shape_cast %42 : vector<1x8x8xf32> to vector<8x8xf32>
    %cst_37 = arith.constant dense<0.000000e+00> : vector<197x8xf32>
    %44 = tpu.matmul %41, %43, %cst_37 {dimension_numbers = #tpu.dot_dimension_numbers<[1], [0], [0], [1], [0, 0, 1, 1], [], []>} : vector<197x8xf32>, vector<8x8xf32>, vector<197x8xf32> -> vector<197x8xf32>
    %45 = arith.addf %36, %44 : vector<197x8xf32>
    %c15 = arith.constant 15 : index
    %c0_38 = arith.constant 0 : index
    %46 = vector.load %arg12[%c15, %c0_38] : memref<232x8xf32, #tpu.memory_space<vmem>>, vector<197x8xf32>
    %c3_39 = arith.constant 3 : index
    %c0_40 = arith.constant 0 : index
    %c0_41 = arith.constant 0 : index
    %47 = vector.load %arg9[%c3_39, %c0_40, %c0_41] : memref<9x197x1xf32, #tpu.memory_space<vmem>>, vector<1x197x1xf32>
    %48 = vector.shape_cast %47 : vector<1x197x1xf32> to vector<197x1xf32>
    %49 = vector.broadcast %48 : vector<197x1xf32> to vector<197x8xf32>
    %50 = arith.mulf %46, %49 : vector<197x8xf32>
    %c3_42 = arith.constant 3 : index
    %c0_43 = arith.constant 0 : index
    %c0_44 = arith.constant 0 : index
    %51 = vector.load %arg5[%c3_42, %c0_43, %c0_44] : memref<9x8x8xf32, #tpu.memory_space<vmem>>, vector<1x8x8xf32>
    %52 = vector.shape_cast %51 : vector<1x8x8xf32> to vector<8x8xf32>
    %cst_45 = arith.constant dense<0.000000e+00> : vector<197x8xf32>
    %53 = tpu.matmul %50, %52, %cst_45 {dimension_numbers = #tpu.dot_dimension_numbers<[1], [0], [0], [1], [0, 0, 1, 1], [], []>} : vector<197x8xf32>, vector<8x8xf32>, vector<197x8xf32> -> vector<197x8xf32>
    %54 = arith.addf %45, %53 : vector<197x8xf32>
    %c16_46 = arith.constant 16 : index
    %c0_47 = arith.constant 0 : index
    %55 = vector.load %arg12[%c16_46, %c0_47] : memref<232x8xf32, #tpu.memory_space<vmem>>, vector<197x8xf32>
    %c4 = arith.constant 4 : index
    %c0_48 = arith.constant 0 : index
    %c0_49 = arith.constant 0 : index
    %56 = vector.load %arg9[%c4, %c0_48, %c0_49] : memref<9x197x1xf32, #tpu.memory_space<vmem>>, vector<1x197x1xf32>
    %57 = vector.shape_cast %56 : vector<1x197x1xf32> to vector<197x1xf32>
    %58 = vector.broadcast %57 : vector<197x1xf32> to vector<197x8xf32>
    %59 = arith.mulf %55, %58 : vector<197x8xf32>
    %c4_50 = arith.constant 4 : index
    %c0_51 = arith.constant 0 : index
    %c0_52 = arith.constant 0 : index
    %60 = vector.load %arg5[%c4_50, %c0_51, %c0_52] : memref<9x8x8xf32, #tpu.memory_space<vmem>>, vector<1x8x8xf32>
    %61 = vector.shape_cast %60 : vector<1x8x8xf32> to vector<8x8xf32>
    %cst_53 = arith.constant dense<0.000000e+00> : vector<197x8xf32>
    %62 = tpu.matmul %59, %61, %cst_53 {dimension_numbers = #tpu.dot_dimension_numbers<[1], [0], [0], [1], [0, 0, 1, 1], [], []>} : vector<197x8xf32>, vector<8x8xf32>, vector<197x8xf32> -> vector<197x8xf32>
    %63 = arith.addf %54, %62 : vector<197x8xf32>
    %c17 = arith.constant 17 : index
    %c0_54 = arith.constant 0 : index
    %64 = vector.load %arg12[%c17, %c0_54] : memref<232x8xf32, #tpu.memory_space<vmem>>, vector<197x8xf32>
    %c5 = arith.constant 5 : index
    %c0_55 = arith.constant 0 : index
    %c0_56 = arith.constant 0 : index
    %65 = vector.load %arg9[%c5, %c0_55, %c0_56] : memref<9x197x1xf32, #tpu.memory_space<vmem>>, vector<1x197x1xf32>
    %66 = vector.shape_cast %65 : vector<1x197x1xf32> to vector<197x1xf32>
    %67 = vector.broadcast %66 : vector<197x1xf32> to vector<197x8xf32>
    %68 = arith.mulf %64, %67 : vector<197x8xf32>
    %c5_57 = arith.constant 5 : index
    %c0_58 = arith.constant 0 : index
    %c0_59 = arith.constant 0 : index
    %69 = vector.load %arg5[%c5_57, %c0_58, %c0_59] : memref<9x8x8xf32, #tpu.memory_space<vmem>>, vector<1x8x8xf32>
    %70 = vector.shape_cast %69 : vector<1x8x8xf32> to vector<8x8xf32>
    %cst_60 = arith.constant dense<0.000000e+00> : vector<197x8xf32>
    %71 = tpu.matmul %68, %70, %cst_60 {dimension_numbers = #tpu.dot_dimension_numbers<[1], [0], [0], [1], [0, 0, 1, 1], [], []>} : vector<197x8xf32>, vector<8x8xf32>, vector<197x8xf32> -> vector<197x8xf32>
    %72 = arith.addf %63, %71 : vector<197x8xf32>
    %c29 = arith.constant 29 : index
    %c0_61 = arith.constant 0 : index
    %73 = vector.load %arg12[%c29, %c0_61] : memref<232x8xf32, #tpu.memory_space<vmem>>, vector<197x8xf32>
    %c6 = arith.constant 6 : index
    %c0_62 = arith.constant 0 : index
    %c0_63 = arith.constant 0 : index
    %74 = vector.load %arg9[%c6, %c0_62, %c0_63] : memref<9x197x1xf32, #tpu.memory_space<vmem>>, vector<1x197x1xf32>
    %75 = vector.shape_cast %74 : vector<1x197x1xf32> to vector<197x1xf32>
    %76 = vector.broadcast %75 : vector<197x1xf32> to vector<197x8xf32>
    %77 = arith.mulf %73, %76 : vector<197x8xf32>
    %c6_64 = arith.constant 6 : index
    %c0_65 = arith.constant 0 : index
    %c0_66 = arith.constant 0 : index
    %78 = vector.load %arg5[%c6_64, %c0_65, %c0_66] : memref<9x8x8xf32, #tpu.memory_space<vmem>>, vector<1x8x8xf32>
    %79 = vector.shape_cast %78 : vector<1x8x8xf32> to vector<8x8xf32>
    %cst_67 = arith.constant dense<0.000000e+00> : vector<197x8xf32>
    %80 = tpu.matmul %77, %79, %cst_67 {dimension_numbers = #tpu.dot_dimension_numbers<[1], [0], [0], [1], [0, 0, 1, 1], [], []>} : vector<197x8xf32>, vector<8x8xf32>, vector<197x8xf32> -> vector<197x8xf32>
    %81 = arith.addf %72, %80 : vector<197x8xf32>
    %c30 = arith.constant 30 : index
    %c0_68 = arith.constant 0 : index
    %82 = vector.load %arg12[%c30, %c0_68] : memref<232x8xf32, #tpu.memory_space<vmem>>, vector<197x8xf32>
    %c7 = arith.constant 7 : index
    %c0_69 = arith.constant 0 : index
    %c0_70 = arith.constant 0 : index
    %83 = vector.load %arg9[%c7, %c0_69, %c0_70] : memref<9x197x1xf32, #tpu.memory_space<vmem>>, vector<1x197x1xf32>
    %84 = vector.shape_cast %83 : vector<1x197x1xf32> to vector<197x1xf32>
    %85 = vector.broadcast %84 : vector<197x1xf32> to vector<197x8xf32>
    %86 = arith.mulf %82, %85 : vector<197x8xf32>
    %c7_71 = arith.constant 7 : index
    %c0_72 = arith.constant 0 : index
    %c0_73 = arith.constant 0 : index
    %87 = vector.load %arg5[%c7_71, %c0_72, %c0_73] : memref<9x8x8xf32, #tpu.memory_space<vmem>>, vector<1x8x8xf32>
    %88 = vector.shape_cast %87 : vector<1x8x8xf32> to vector<8x8xf32>
    %cst_74 = arith.constant dense<0.000000e+00> : vector<197x8xf32>
    %89 = tpu.matmul %86, %88, %cst_74 {dimension_numbers = #tpu.dot_dimension_numbers<[1], [0], [0], [1], [0, 0, 1, 1], [], []>} : vector<197x8xf32>, vector<8x8xf32>, vector<197x8xf32> -> vector<197x8xf32>
    %90 = arith.addf %81, %89 : vector<197x8xf32>
    %c31 = arith.constant 31 : index
    %c0_75 = arith.constant 0 : index
    %91 = vector.load %arg12[%c31, %c0_75] : memref<232x8xf32, #tpu.memory_space<vmem>>, vector<197x8xf32>
    %c8 = arith.constant 8 : index
    %c0_76 = arith.constant 0 : index
    %c0_77 = arith.constant 0 : index
    %92 = vector.load %arg9[%c8, %c0_76, %c0_77] : memref<9x197x1xf32, #tpu.memory_space<vmem>>, vector<1x197x1xf32>
    %93 = vector.shape_cast %92 : vector<1x197x1xf32> to vector<197x1xf32>
    %94 = vector.broadcast %93 : vector<197x1xf32> to vector<197x8xf32>
    %95 = arith.mulf %91, %94 : vector<197x8xf32>
    %c8_78 = arith.constant 8 : index
    %c0_79 = arith.constant 0 : index
    %c0_80 = arith.constant 0 : index
    %96 = vector.load %arg5[%c8_78, %c0_79, %c0_80] : memref<9x8x8xf32, #tpu.memory_space<vmem>>, vector<1x8x8xf32>
    %97 = vector.shape_cast %96 : vector<1x8x8xf32> to vector<8x8xf32>
    %cst_81 = arith.constant dense<0.000000e+00> : vector<197x8xf32>
    %98 = tpu.matmul %95, %97, %cst_81 {dimension_numbers = #tpu.dot_dimension_numbers<[1], [0], [0], [1], [0, 0, 1, 1], [], []>} : vector<197x8xf32>, vector<8x8xf32>, vector<197x8xf32> -> vector<197x8xf32>
    %99 = arith.addf %90, %98 : vector<197x8xf32>
    %c0_82 = arith.constant 0 : index
    %c0_83 = arith.constant 0 : index
    %100 = vector.load %arg6[%c0_82, %c0_83] : memref<1x8xf32, #tpu.memory_space<vmem>>, vector<1x8xf32>
    %101 = vector.broadcast %100 : vector<1x8xf32> to vector<197x8xf32>
    %102 = arith.addf %99, %101 : vector<197x8xf32>
    %cst_84 = arith.constant -1.702000e+00 : f32
    %103 = vector.broadcast %cst_84 : f32 to vector<197x8xf32>
    %104 = arith.mulf %103, %102 : vector<197x8xf32>
    %105 = math.exp %104 : vector<197x8xf32>
    %cst_85 = arith.constant 1.000000e+00 : f32
    %106 = vector.broadcast %cst_85 : f32 to vector<197x8xf32>
    %107 = arith.addf %106, %105 : vector<197x8xf32>
    %cst_86 = arith.constant 1.000000e+00 : f32
    %108 = vector.broadcast %cst_86 : f32 to vector<197x8xf32>
    %109 = arith.divf %108, %107 : vector<197x8xf32>
    %110 = arith.mulf %102, %109 : vector<197x8xf32>
    %c0_87 = arith.constant 0 : index
    %c0_88 = arith.constant 0 : index
    %111 = vector.load %arg7[%c0_87, %c0_88] : memref<8x32xf32, #tpu.memory_space<vmem>>, vector<8x32xf32>
    %cst_89 = arith.constant dense<0.000000e+00> : vector<197x32xf32>
    %112 = tpu.matmul %110, %111, %cst_89 {dimension_numbers = #tpu.dot_dimension_numbers<[1], [0], [0], [1], [0, 0, 1, 1], [], []>} : vector<197x8xf32>, vector<8x32xf32>, vector<197x32xf32> -> vector<197x32xf32>
    %c0_90 = arith.constant 0 : index
    %c0_91 = arith.constant 0 : index
    %113 = vector.load %arg8[%c0_90, %c0_91] : memref<1x32xf32, #tpu.memory_space<vmem>>, vector<1x32xf32>
    %114 = vector.broadcast %113 : vector<1x32xf32> to vector<197x32xf32>
    %115 = arith.addf %112, %114 : vector<197x32xf32>
    %c0_92 = arith.constant 0 : index
    %116 = memref.load %arg10[%c0_92] : memref<1xf32, #tpu.memory_space<smem>>
    %117 = vector.broadcast %116 : f32 to vector<197x32xf32>
    %118 = arith.mulf %115, %117 : vector<197x32xf32>
    %c0_93 = arith.constant 0 : index
    %c0_94 = arith.constant 0 : index
    %c0_95 = arith.constant 0 : index
    %119 = vector.load %arg2[%c0_93, %c0_94, %c0_95] : memref<1x197x32xf32, #tpu.memory_space<vmem>>, vector<1x197x32xf32>
    %120 = vector.shape_cast %119 : vector<1x197x32xf32> to vector<197x32xf32>
    %121 = arith.addf %120, %118 : vector<197x32xf32>
    %c0_96 = arith.constant 0 : index
    %c0_97 = arith.constant 0 : index
    %c0_98 = arith.constant 0 : index
    %122 = vector.load %arg11[%c0_96, %c0_97, %c0_98] : memref<1x197x32xf32, #tpu.memory_space<vmem>>, vector<1x197x32xf32>
    %123 = vector.shape_cast %122 : vector<1x197x32xf32> to vector<197x32xf32>
    %124 = vector.shape_cast %121 : vector<197x32xf32> to vector<1x197x32xf32>
    tpu.vector_store %arg11[%c0_96, %c0_97, %c0_98], %124 {strides = array<i32>} : memref<1x197x32xf32, #tpu.memory_space<vmem>>, vector<1x197x32xf32>,
    return
  }
  func.func @transform_0(%arg0: i32) -> (i32, i32, i32) {
    %c0_i32 = arith.constant 0 : i32
    %c0_i32_0 = arith.constant 0 : i32
    %c0_i32_1 = arith.constant 0 : i32
    return %arg0, %c0_i32, %c0_i32_0 : i32, i32, i32
  }
  func.func @transform_1(%arg0: i32) -> (i32, i32, i32) {
    %c0_i32 = arith.constant 0 : i32
    %c0_i32_0 = arith.constant 0 : i32
    %c0_i32_1 = arith.constant 0 : i32
    return %arg0, %c0_i32, %c0_i32_0 : i32, i32, i32
  }
  func.func @transform_2(%arg0: i32) -> (i32, i32) {
    %c0_i32 = arith.constant 0 : i32
    %c0_i32_0 = arith.constant 0 : i32
    %c0_i32_1 = arith.constant 0 : i32
    return %c0_i32, %c0_i32_0 : i32, i32
  }
  func.func @transform_3(%arg0: i32) -> (i32, i32) {
    %c0_i32 = arith.constant 0 : i32
    %c0_i32_0 = arith.constant 0 : i32
    %c0_i32_1 = arith.constant 0 : i32
    return %c0_i32, %c0_i32_0 : i32, i32
  }
  func.func @transform_4(%arg0: i32) -> (i32, i32, i32) {
    %c0_i32 = arith.constant 0 : i32
    %c0_i32_0 = arith.constant 0 : i32
    %c0_i32_1 = arith.constant 0 : i32
    %c0_i32_2 = arith.constant 0 : i32
    return %c0_i32, %c0_i32_0, %c0_i32_1 : i32, i32, i32
  }
  func.func @transform_5(%arg0: i32) -> (i32, i32) {
    %c0_i32 = arith.constant 0 : i32
    %c0_i32_0 = arith.constant 0 : i32
    %c0_i32_1 = arith.constant 0 : i32
    return %c0_i32, %c0_i32_0 : i32, i32
  }
  func.func @transform_6(%arg0: i32) -> (i32, i32) {
    %c0_i32 = arith.constant 0 : i32
    %c0_i32_0 = arith.constant 0 : i32
    %c0_i32_1 = arith.constant 0 : i32
    return %c0_i32, %c0_i32_0 : i32, i32
  }
  func.func @transform_7(%arg0: i32) -> (i32, i32) {
    %c0_i32 = arith.constant 0 : i32
    %c0_i32_0 = arith.constant 0 : i32
    %c0_i32_1 = arith.constant 0 : i32
    return %c0_i32, %c0_i32_0 : i32, i32
  }
  func.func @transform_8(%arg0: i32) -> (i32, i32, i32) {
    %c0_i32 = arith.constant 0 : i32
    %c0_i32_0 = arith.constant 0 : i32
    %c0_i32_1 = arith.constant 0 : i32
    %c0_i32_2 = arith.constant 0 : i32
    return %c0_i32, %c0_i32_0, %c0_i32_1 : i32, i32, i32
  }
  func.func @transform_9(%arg0: i32) -> i32 {
    %c0_i32 = arith.constant 0 : i32
    %c0_i32_0 = arith.constant 0 : i32
    return %c0_i32 : i32
  }
  func.func @transform_10(%arg0: i32) -> (i32, i32, i32) {
    %c0_i32 = arith.constant 0 : i32
    %c0_i32_0 = arith.constant 0 : i32
    %c0_i32_1 = arith.constant 0 : i32
    return %arg0, %c0_i32, %c0_i32_0 : i32, i32, i32
  }
}

</mosaic_0001>

<bundles_post_ra>
// kernel: tpu_custom_call.1
= control target key start
LH: loop header
LB: loop body
LE: loop exit
PB: predicated region body
PF: predicated region fallthrough
CT: control target
= control target key end

     0   :  { %s6296_s15 = smov 0   ;;  %s9362_s0 = inlined_call_operand.vmem [shape: f32[2,197,32], index: 0, kind: input, shape index: {}]   ;;  %s9363_s1 = inlined_call_operand.vmem [shape: f32[2,197,32], index: 1, kind: input, shape index: {}]   ;;  %s9364_s2 = inlined_call_operand.vmem [shape: f32[32,8], index: 2, kind: input, shape index: {}]   ;;  %s9365_s3 = inlined_call_operand.vmem [shape: f32[1,8], index: 3, kind: input, shape index: {}]   ;;  %s9366_s4 = inlined_call_operand.vmem [shape: f32[9,8,8], index: 4, kind: input, shape index: {}]   ;;  %s9367_s5 = inlined_call_operand.vmem [shape: f32[1,8], index: 5, kind: input, shape index: {}]   ;;  %s9368_s6 = inlined_call_operand.vmem [shape: f32[8,32], index: 6, kind: input, shape index: {}]   ;;  %s9369_s7 = inlined_call_operand.vmem [shape: f32[1,32], index: 7, kind: input, shape index: {}]   ;;  %s9370_s8 = inlined_call_operand.vmem [shape: f32[9,197,1], index: 8, kind: input, shape index: {}]   ;;  %s9371_s9 = inlined_call_operand.<no memory space> [shape: f32[1], index: 9, kind: input, shape index: {}]   ;;  %s9372_s10 = inlined_call_operand.vmem [shape: f32[2,197,32], index: 10, kind: output, shape index: {}]  }
   0x1   :  { %15 = sst [smem:[#allocation3]] %s9371_s9 }
   0x2 LB: > { %s5512_s16 = sadd.s32 4294967295, %s6234_s15   ;;  %p5516_p0 = scmp.ge.s32.totalorder %s6234_s15, 1  ;;  %s6234_s15 = sphi %s6296_s15, %s21_s15  }
   0x3   : > { %p323_p1 = scmp.lt.s32.totalorder %s6234_s15, 3 }
   0x5   : > { %p324_p2 = pnand %p5516_p0, %p323_p1 }
   0x7   : > { %327 = sbr.rel (%p324_p2) target bundleno = 1100 (0x44c), region = 60 }
   0xc   : > { %v409_v0 = vld [vmem:[%s9364_s2 + $0x18] sm:$0xff]  ;;  %v1167_v1 = vld [vmem:[%s9370_s8 + $0x20] sm:$0xff]  ;;  %v1165_v2 = vld [vmem:[%s9370_s8 + $0x10] sm:$0xff]  ;;  %p366_p3 = scmp.lt.s32.totalorder %s5512_s16, 1  ;;  %v6236_v3 = vmov 0   ;;  %vm414_vm0 = vcmask 261120  }
   0xd   : > { %6021 = vset.pattern.permute.xlu2 %v6236_v3  ;;  %6020 = vset.pattern.permute.xlu1 %v6236_v3  ;;  %v1163_v4 = vld [vmem:[%s9370_s8] sm:$0xff]  ;;  %v408_v5 = vld [vmem:[%s9364_s2 + $0x10] sm:$0xff]  ;;  %v407_v6 = vld [vmem:[%s9364_s2 + $0x8] sm:$0xff]  ;;  %vm1082_vm1 = vcmask 64512   ;;  %v6237_v49 = vmov 0.0   ;;  %s9122_s19 = sld [smem:[#allocation3]] }
   0xe   : > { %6019 = vset.pattern.permute.xlu0 %v6236_v3  ;;  %502 = vmatpush.msra.mxu0 %v409_v0  ;;  %s9558_s16 = smov (!%p366_p3, %s5512_s16), 1  ;;  %v406_v7 = vld [vmem:[%s9364_s2] sm:$0xff]  ;;  %v1168_v9 = vld [vmem:[%s9370_s8 + $0x28] sm:$0xff]  ;;  %v1166_v10 = vld [vmem:[%s9370_s8 + $0x18] sm:$0xff]  ;;  %1083 = vst.msk [vmem:[#allocation2] sm:$0xff] %vm1082_vm1, %v6237_v49 }
   0xf   : > { %1210 = vperm.xlu2 %6021, %v1167_v1   ;;  %1200 = vperm.xlu1 %6020, %v1165_v2   ;;  %s6322_s28 = smul.u32 200, %s9558_s16  ;;  %v1164_v11 = vld [vmem:[%s9370_s8 + $0x8] sm:$0xff]  ;;  %v1171_v13 = vld [vmem:[%s9370_s8 + $0x40] sm:$0xff]  ;;  %v1170_v14 = vld [vmem:[%s9370_s8 + $0x38] sm:$0xff]  ;;  %1084 = vst.msk [vmem:[#allocation2 + $0x8] sm:$0xff] %vm1082_vm1, %v6237_v49 }
  0x10   : > { %1190 = vperm.xlu0 %6019, %v1163_v4   ;;  %503 = vmatpush.msra.mxu0 %v408_v5  ;;  %v1169_v15 = vld [vmem:[%s9370_s8 + $0x30] sm:$0xff]  ;;  %v1174_v17 = vld [vmem:[%s9370_s8 + $0x58] sm:$0xff]  ;;  %v1172_v19 = vld [vmem:[%s9370_s8 + $0x48] sm:$0xff]  ;;  %1085 = vst.msk [vmem:[#allocation2 + $0x10] sm:$0xff] %vm1082_vm1, %v6237_v49 }
  0x11   : > { %s6331_s13 = scalar_lea.vmem %s9362_s0, %s6322_s28  ;;  %v1173_v18 = vld [vmem:[%s9370_s8 + $0x50] sm:$0xff]  ;;  %v1176_v22 = vld [vmem:[%s9370_s8 + $0x68] sm:$0xff]  ;;  %v1175_v23 = vld [vmem:[%s9370_s8 + $0x60] sm:$0xff]  ;;  %1086 = vst.msk [vmem:[#allocation2 + $0x18] sm:$0xff] %vm1082_vm1, %v6237_v49  ;;  %s9172_s26 = scalar_lea.vmem %s9372_s10, %s6322_s28 }
  0x12   : > { %504 = vmatpush.msra.mxu0 %v407_v6  ;;  %v381_v8 = vld [vmem:[%s6331_s13] sm:$0xff]  ;;  %v382_v12 = vld [vmem:[%s6331_s13 + $0x8] sm:$0xff]  ;;  %v383_v16 = vld [vmem:[%s6331_s13 + $0x10] sm:$0xff]  ;;  %1087 = vst.msk [vmem:[#allocation2 + $0x20] sm:$0xff] %vm1082_vm1, %v6237_v49 }
  0x13   : > { %v384_v20 = vld [vmem:[%s6331_s13 + $0x18] sm:$0xff]  ;;  %v1177_v21 = vld [vmem:[%s9370_s8 + $0x70] sm:$0xff]  ;;  %v385_v24 = vld [vmem:[%s6331_s13 + $0x20] sm:$0xff]  ;;  %1088 = vst.msk [vmem:[#allocation2 + $0x28] sm:$0xff] %vm1082_vm1, %v6237_v49 }
  0x14   : > { %505 = vmatpush.msra.mxu0 %v406_v7  ;;  %v1180_v25 = vld [vmem:[%s9370_s8 + $0x88] sm:$0xff]  ;;  %v1179_v26 = vld [vmem:[%s9370_s8 + $0x80] sm:$0xff]  ;;  %v1178_v27 = vld [vmem:[%s9370_s8 + $0x78] sm:$0xff]  ;;  %1089 = vst.msk [vmem:[#allocation2 + $0x30] sm:$0xff] %vm1082_vm1, %v6237_v49 }
  0x15   : > { %5520 = vmatmul.msk.f32.vlgmr.msra.gmra.mxu0 %vm414_vm0, %v381_v8  ;;  %v386_v28 = vld [vmem:[%s6331_s13 + $0x28] sm:$0xff]  ;;  %v1183_v29 = vld [vmem:[%s9370_s8 + $0xa0] sm:$0xff]  ;;  %v1182_v30 = vld [vmem:[%s9370_s8 + $0x98] sm:$0xff]  ;;  %1090 = vst.msk [vmem:[#allocation2 + $0x38] sm:$0xff] %vm1082_vm1, %v6237_v49 }
  0x16   : > { %v1181_v31 = vld [vmem:[%s9370_s8 + $0x90] sm:$0xff]  ;;  %v1186_v33 = vld [vmem:[%s9370_s8 + $0xb8] sm:$0xff]  ;;  %v1184_v35 = vld [vmem:[%s9370_s8 + $0xa8] sm:$0xff]  ;;  %1091 = vst.msk [vmem:[#allocation2 + $0x40] sm:$0xff] %vm1082_vm1, %v6237_v49 }
  0x17   : > { %1215 = vperm.xlu2 %6021, %v1168_v9   ;;  %1205 = vperm.xlu1 %6020, %v1166_v10   ;;  %v387_v32 = vld [vmem:[%s6331_s13 + $0x30] sm:$0xff]  ;;  %v388_v36 = vld [vmem:[%s6331_s13 + $0x38] sm:$0xff]  ;;  %v5545_v38 = vld [vmem:[%s9370_s8 + $0xc8] sm:$0xff]  ;;  %1092 = vst.msk [vmem:[#allocation2 + $0x48] sm:$0xff] %vm1082_vm1, %v6237_v49 }
  0x18   : > { %1195 = vperm.xlu0 %6019, %v1164_v11   ;;  %v1185_v34 = vld [vmem:[%s9370_s8 + $0xb0] sm:$0xff]  ;;  %v1187_v39 = vld [vmem:[%s9370_s8 + $0xc0] sm:$0x1f]  ;;  %v5549_v41 = vld [vmem:[%s9370_s8 + $0xe8] sm:$0xff]  ;;  %1093 = vst.msk [vmem:[#allocation2 + $0x50] sm:$0xff] %vm1082_vm1, %v6237_v49 }
  0x19   : > { %v5546_v37 = vld [vmem:[%s9370_s8 + $0xd0] sm:$0xff]  ;;  %v389_v40 = vld [vmem:[%s6331_s13 + $0x40] sm:$0xff]  ;;  %v5547_v43 = vld [vmem:[%s9370_s8 + $0xd8] sm:$0xff]  ;;  %1094 = vst.msk [vmem:[#allocation2 + $0x58] sm:$0xff] %vm1082_vm1, %v6237_v49 }
  0x1a   : > { %v5548_v42 = vld [vmem:[%s9370_s8 + $0xe0] sm:$0xff]  ;;  %v390_v44 = vld [vmem:[%s6331_s13 + $0x48] sm:$0xff]  ;;  %v5551_v46 = vld [vmem:[%s9370_s8 + $0xf8] sm:$0xff]  ;;  %1095 = vst.msk [vmem:[#allocation2 + $0x60] sm:$0xff] %vm1082_vm1, %v6237_v49 }
  0x1b   : > { %v5552_v45 = vld [vmem:[%s9370_s8 + $0x100] sm:$0xff]  ;;  %v5550_v47 = vld [vmem:[%s9370_s8 + $0xf0] sm:$0xff]  ;;  %v5555_v50 = vld [vmem:[%s9370_s8 + $0x118] sm:$0xff]  ;;  %1096 = vst.msk [vmem:[#allocation2 + $0x68] sm:$0xff] %vm1082_vm1, %v6237_v49 }
  0x1c   : > { %v391_v48 = vld [vmem:[%s6331_s13 + $0x50] sm:$0xff]  ;;  %v5553_v52 = vld [vmem:[%s9370_s8 + $0x108] sm:$0xff]  ;;  %v392_v54 = vld [vmem:[%s6331_s13 + $0x58] sm:$0xff]  ;;  %1097 = vst.msk [vmem:[#allocation2 + $0x70] sm:$0xff] %vm1082_vm1, %v6237_v49 }
  0x1d   : > { %5521 = vmatmul.msk.f32.gmra.mxu0 %vm414_vm0, %v382_v12  ;;  %v5554_v51 = vld [vmem:[%s9370_s8 + $0x110] sm:$0xff]  ;;  %v5557_v56 = vld [vmem:[%s9370_s8 + $0x128] sm:$0xff]  ;;  %v5556_v57 = vld [vmem:[%s9370_s8 + $0x120] sm:$0xff]  ;;  %1098 = vst.msk [vmem:[#allocation2 + $0x78] sm:$0xff] %vm1082_vm1, %v6237_v49 }
  0x1e   : > { %v5558_v55 = vld [vmem:[%s9370_s8 + $0x130] sm:$0xff]  ;;  %v393_v59 = vld [vmem:[%s6331_s13 + $0x60] sm:$0xff]  ;;  %1099 = vst.msk [vmem:[#allocation2 + $0x80] sm:$0xff] %vm1082_vm1, %v6237_v49  ;;  %v5561_v60 = vld [vmem:[%s9370_s8 + $0x148] sm:$0xff] }
  0x1f   : > { %1230 = vperm.xlu2 %6021, %v1171_v13   ;;  %1225 = vperm.xlu1 %6020, %v1170_v14   ;;  %v5560_v61 = vld [vmem:[%s9370_s8 + $0x140] sm:$0xff]  ;;  %1100 = vst.msk [vmem:[#allocation2 + $0x88] sm:$0xff] %vm1082_vm1, %v6237_v49  ;;  %v5559_v62 = vld [vmem:[%s9370_s8 + $0x138] sm:$0xff]  ;;  %v394_v0 = vld [vmem:[%s6331_s13 + $0x68] sm:$0xff] }
  0x20   : > { %1220 = vperm.xlu0 %6019, %v1169_v15   ;;  %1101 = vst.msk [vmem:[#allocation2 + $0x90] sm:$0xff] %vm1082_vm1, %v6237_v49  ;;  %v5564_v1 = vld [vmem:[%s9370_s8 + $0x160] sm:$0xff]  ;;  %v5563_v2 = vld [vmem:[%s9370_s8 + $0x158] sm:$0xff]  ;;  %v5562_v3 = vld [vmem:[%s9370_s8 + $0x150] sm:$0xff] }
  0x21   : > { %1102 = vst.msk [vmem:[#allocation2 + $0x98] sm:$0xff] %vm1082_vm1, %v6237_v49  ;;  %v395_v7 = vld [vmem:[%s6331_s13 + $0x70] sm:$0xff]  ;;  %v5567_v8 = vld [vmem:[%s9370_s8 + $0x178] sm:$0xff]  ;;  %v5565_v10 = vld [vmem:[%s9370_s8 + $0x168] sm:$0xff] }
  0x22   : > { %1103 = vst.msk [vmem:[#allocation2 + $0xa0] sm:$0xff] %vm1082_vm1, %v6237_v49  ;;  %v5566_v9 = vld [vmem:[%s9370_s8 + $0x170] sm:$0xff]  ;;  %v396_v14 = vld [vmem:[%s6331_s13 + $0x78] sm:$0xff] }
  0x23   : > { %1104 = vst.msk [vmem:[#allocation2 + $0xa8] sm:$0xff] %vm1082_vm1, %v6237_v49  ;;  %v5621_v15 = vld [vmem:[%s9370_s8 + $0x190] sm:$0xff] }
  0x24   : > { %1105 = vst.msk [vmem:[#allocation2 + $0xb0] sm:$0xff] %vm1082_vm1, %v6237_v49 }
  0x25   : > { %5522 = vmatmul.msk.f32.gmra.mxu0 %vm414_vm0, %v383_v16  ;;  %1106 = vst.msk [vmem:[#allocation2 + $0xb8] sm:$0xff] %vm1082_vm1, %v6237_v49  ;;  %v5569_v16 = vld [vmem:[%s9370_s8 + $0x188] sm:$0x1f] }
  0x26   : > { %1107 = vst.msk [vmem:[#allocation2 + $0xc0] sm:$0xff] %vm1082_vm1, %v6237_v49 }
  0x27   : > { %1245 = vperm.xlu2 %6021, %v1174_v17   ;;  %1240 = vperm.xlu1 %6020, %v1173_v18   ;;  %1108 = vst.msk [vmem:[#allocation2 + $0xc8] sm:$0xff] %vm1082_vm1, %v6237_v49  ;;  %v5568_v17 = vld [vmem:[%s9370_s8 + $0x180] sm:$0xff] }
  0x28   : > { %1235 = vperm.xlu0 %6019, %v1172_v19   ;;  %1109 = vst.msk [vmem:[#allocation2 + $0xd0] sm:$0xff] %vm1082_vm1, %v6237_v49  ;;  %v6559_v18 = vld [vmem:[%s9365_s3] ss:$0 sm:$0xff] }
  0x29   : > { %1110 = vst.msk [vmem:[#allocation2 + $0xd8] sm:$0xff] %vm1082_vm1, %v6237_v49 }
  0x2a   : > { %1111 = vst.msk [vmem:[#allocation2 + $0xe0] sm:$0xff] %vm1082_vm1, %v6237_v49  ;;  %v5630_v49 = vld [vmem:[%s9370_s8 + $0x1d8] sm:$0xff] }
  0x2d   : > { %5523 = vmatmul.msk.f32.gmra.mxu0 %vm414_vm0, %v384_v20 }
  0x2f   : > { %1260 = vperm.xlu2 %6021, %v1177_v21   ;;  %1255 = vperm.xlu1 %6020, %v1176_v22  }
  0x30   : > { %1250 = vperm.xlu0 %6019, %v1175_v23   ;;  %v397_v23 = vld [vmem:[%s6331_s13 + $0x80] sm:$0xff] }
  0x35   : > { %5524 = vmatmul.msk.f32.gmra.mxu0 %vm414_vm0, %v385_v24 }
  0x37   : > { %1275 = vperm.xlu2 %6021, %v1180_v25   ;;  %1270 = vperm.xlu1 %6020, %v1179_v26   ;;  %v5624_v25 = vld [vmem:[%s9370_s8 + $0x1a8] sm:$0xff]  ;;  %v5623_v26 = vld [vmem:[%s9370_s8 + $0x1a0] sm:$0xff] }
  0x38   : > { %1265 = vperm.xlu0 %6019, %v1178_v27  }
  0x3d   : > { %5525 = vmatmul.msk.f32.gmra.mxu0 %vm414_vm0, %v386_v28  ;;  %v5622_v28 = vld [vmem:[%s9370_s8 + $0x198] sm:$0xff] }
  0x3f   : > { %1290 = vperm.xlu2 %6021, %v1183_v29   ;;  %1285 = vperm.xlu1 %6020, %v1182_v30  }
  0x40   : > { %1280 = vperm.xlu0 %6019, %v1181_v31  }
  0x45   : > { %5526 = vmatmul.msk.f32.gmra.mxu0 %vm414_vm0, %v387_v32 }
  0x47   : > { %1305 = vperm.xlu2 %6021, %v1186_v33   ;;  %1300 = vperm.xlu1 %6020, %v1185_v34   ;;  %v398_v34 = vld [vmem:[%s6331_s13 + $0x88] sm:$0xff] }
  0x48   : > { %1295 = vperm.xlu0 %6019, %v1184_v35  }
  0x4d   : > { %5527 = vmatmul.msk.f32.gmra.mxu0 %vm414_vm0, %v388_v36  ;;  %v5627_v36 = vld [vmem:[%s9370_s8 + $0x1c0] sm:$0xff] }
  0x4f   : > { %1397 = vperm.xlu2 %6021, %v5546_v37   ;;  %1392 = vperm.xlu1 %6020, %v5545_v38   ;;  %v5626_v37 = vld [vmem:[%s9370_s8 + $0x1b8] sm:$0xff] }
  0x50   : > { %1310 = vperm.xlu0 %6019, %v1187_v39   ;;  %v5625_v39 = vld [vmem:[%s9370_s8 + $0x1b0] sm:$0xff] }
  0x55   : > { %5528 = vmatmul.msk.f32.gmra.mxu0 %vm414_vm0, %v389_v40 }
  0x57   : > { %1412 = vperm.xlu2 %6021, %v5549_v41   ;;  %1407 = vperm.xlu1 %6020, %v5548_v42  }
  0x58   : > { %1402 = vperm.xlu0 %6019, %v5547_v43  }
  0x5d   : > { %5529 = vmatmul.msk.f32.gmra.mxu0 %vm414_vm0, %v390_v44 }
  0x5f   : > { %1427 = vperm.xlu2 %6021, %v5552_v45   ;;  %1422 = vperm.xlu1 %6020, %v5551_v46  }
  0x60   : > { %1417 = vperm.xlu0 %6019, %v5550_v47   ;;  %v399_v47 = vld [vmem:[%s6331_s13 + $0x90] sm:$0xff] }
  0x65   : > { %5530 = vmatmul.msk.f32.gmra.mxu0 %vm414_vm0, %v391_v48 }
  0x67   : > { %1442 = vperm.xlu2 %6021, %v5555_v50   ;;  %1437 = vperm.xlu1 %6020, %v5554_v51   ;;  %v5629_v50 = vld [vmem:[%s9370_s8 + $0x1d0] sm:$0xff] }
  0x68   : > { %1432 = vperm.xlu0 %6019, %v5553_v52   ;;  %v5628_v52 = vld [vmem:[%s9370_s8 + $0x1c8] sm:$0xff] }
  0x69   : > { %v6460_v53 = vpop.permute.xlu2 %1210 }
  0x6d   : > { %5531 = vmatmul.msk.f32.gmra.mxu0 %vm414_vm0, %v392_v54 }
  0x6f   : > { %1457 = vperm.xlu2 %6021, %v5558_v55   ;;  %1452 = vperm.xlu1 %6020, %v5557_v56  }
  0x70   : > { %1447 = vperm.xlu0 %6019, %v5556_v57  }
  0x71   : > { %v6481_v58 = vpop.permute.xlu2 %1215 }
  0x75   : > { %5532 = vmatmul.msk.f32.gmra.mxu0 %vm414_vm0, %v393_v59 }
  0x77   : > { %1472 = vperm.xlu2 %6021, %v5561_v60   ;;  %1467 = vperm.xlu1 %6020, %v5560_v61  }
  0x78   : > { %1462 = vperm.xlu0 %6019, %v5559_v62  }
  0x79   : > { %v6502_v63 = vpop.permute.xlu2 %1230 }
  0x7d   : > { %5533 = vmatmul.msk.f32.gmra.mxu0 %vm414_vm0, %v394_v0 }
  0x7f   : > { %1487 = vperm.xlu2 %6021, %v5564_v1   ;;  %1482 = vperm.xlu1 %6020, %v5563_v2   ;;  %v400_v2 = vld [vmem:[%s6331_s13 + $0x98] sm:$0xff] }
  0x80   : > { %1477 = vperm.xlu0 %6019, %v5562_v3  }
  0x81   : > { %v6522_v4 = vpop.permute.xlu2 %1245  ;;  %v6524_v5 = vpop.permute.xlu1 %1200 }
  0x82   : > { %v6526_v6 = vpop.permute.xlu0 %1190 }
  0x85   : > { %5534 = vmatmul.msk.f32.gmra.mxu0 %vm414_vm0, %v395_v7 }
  0x87   : > { %1502 = vperm.xlu2 %6021, %v5567_v8   ;;  %1497 = vperm.xlu1 %6020, %v5566_v9   ;;  %v5633_v9 = vld [vmem:[%s9370_s8 + $0x1f0] sm:$0xff] }
  0x88   : > { %1492 = vperm.xlu0 %6019, %v5565_v10   ;;  %v5632_v10 = vld [vmem:[%s9370_s8 + $0x1e8] sm:$0xff] }
  0x89   : > { %v6539_v11 = vpop.permute.xlu2 %1260  ;;  %v6541_v12 = vpop.permute.xlu1 %1205 }
  0x8a   : > { %v6543_v13 = vpop.permute.xlu0 %1195 }
  0x8d   : > { %5535 = vmatmul.msk.f32.gmra.mxu0 %vm414_vm0, %v396_v14 }
  0x8f   : > { %1929 = vperm.xlu2 %6021, %v5621_v15   ;;  %1512 = vperm.xlu1 %6020, %v5569_v16   ;;  %v5631_v16 = vld [vmem:[%s9370_s8 + $0x1e0] sm:$0xff] }
  0x90   : > { %1507 = vperm.xlu0 %6019, %v5568_v17  }
  0x91   : > { %v6561_v19 = vpop.permute.xlu2 %1275  ;;  %v6563_v20 = vpop.permute.xlu1 %1225 }
  0x92   : > { %v6565_v21 = vpop.permute.xlu0 %1220  ;;  %v507_v22 = vpop.f32.mrf.mxu0 }
  0x93   : > { %v6569_v24 = vadd.f32 %v6559_v18, %v507_v22 }
  0x95   : > { %v582_v27 = vmul.f32 -1.702, %v6569_v24  ;;  %5536 = vmatmul.msk.f32.gmra.mxu0 %vm414_vm0, %v397_v23 }
  0x97   : > { %v607_v29 = vmul.f32 1.442695, %v582_v27  ;;  %1944 = vperm.xlu2 %6021, %v5624_v25   ;;  %1939 = vperm.xlu1 %6020, %v5623_v26  }
  0x98   : > { %1934 = vperm.xlu0 %6019, %v5622_v28  }
  0x99   : > { %6025 = vpow2.f32 %v607_v29  ;;  %v6582_v30 = vpop.permute.xlu2 %1290  ;;  %v6584_v31 = vpop.permute.xlu1 %1240 }
  0x9a   : > { %v6586_v32 = vpop.permute.xlu0 %1235  ;;  %v510_v33 = vpop.f32.mrf.mxu0 }
  0x9b   : > { %v6590_v35 = vadd.f32 %v6559_v18, %v510_v33 }
  0x9d   : > { %v583_v38 = vmul.f32 -1.702, %v6590_v35  ;;  %5537 = vmatmul.msk.f32.gmra.mxu0 %vm414_vm0, %v398_v34 }
  0x9f   : > { %v6026_v40 = vpop.eup %6025  ;;  %v609_v41 = vmul.f32 1.442695, %v583_v38  ;;  %1959 = vperm.xlu2 %6021, %v5627_v36   ;;  %1954 = vperm.xlu1 %6020, %v5626_v37  }
  0xa0   : > { %v657_v42 = vadd.f32 1.0, %v6026_v40  ;;  %1949 = vperm.xlu0 %6019, %v5625_v39  }
  0xa1   : > { %6027 = vpow2.f32 %v609_v41  ;;  %v6603_v43 = vpop.permute.xlu2 %1305  ;;  %v6605_v44 = vpop.permute.xlu1 %1255 }
  0xa2   : > { %9373 = vst [vmem:[#allocation4_spill] sm:$0xff] %v6603_v43  ;;  %6029 = vrcp.f32 %v657_v42  ;;  %v6607_v45 = vpop.permute.xlu0 %1250  ;;  %v513_v46 = vpop.f32.mrf.mxu0  ;;  %vm687_vm2 = vweird.f32 %v657_v42  ;;  %v693_v62 = vand.u32 2147483648, %v657_v42  ;;  %v691_v7 = vand.u32 2147483647, %v657_v42 }
  0xa3   : > { %v6611_v48 = vadd.f32 %v6559_v18, %v513_v46 }
  0xa4   : > { %v694_v22 = vor.u32 1.1754944e-38, %v693_v62  ;;  %vm692_vm5 = vcmp.eq.f32.partialorder %v691_v7, 8.507059e+37 }
  0xa5   : > { %v584_v51 = vmul.f32 -1.702, %v6611_v48  ;;  %5538 = vmatmul.msk.f32.gmra.mxu0 %vm414_vm0, %v399_v47 }
  0xa7   : > { %v6028_v54 = vpop.eup %6027  ;;  %v611_v55 = vmul.f32 1.442695, %v584_v51  ;;  %1974 = vperm.xlu2 %6021, %v5630_v49   ;;  %1969 = vperm.xlu1 %6020, %v5629_v50   ;;  %v5636_v50 = vld [vmem:[%s9370_s8 + $0x208] sm:$0xff]  ;;  %v5635_v51 = vld [vmem:[%s9370_s8 + $0x200] sm:$0xff] }
  0xa8   : > { %v6030_v56 = vpop.eup %6029  ;;  %v658_v57 = vadd.f32 1.0, %v6028_v54  ;;  %1964 = vperm.xlu0 %6019, %v5628_v52  }
  0xa9   : > { %v683_v59 = vmul.f32 %v6030_v56, %v657_v42  ;;  %6031 = vpow2.f32 %v611_v55  ;;  %v6624_v60 = vpop.permute.xlu2 %1397  ;;  %v6626_v61 = vpop.permute.xlu1 %1270  ;;  %vm688_vm3 = vweird.f32 %v6030_v56  ;;  %v401_v42 = vld [vmem:[%s6331_s13 + $0xa0] sm:$0xff] }
  0xaa   : > { %6033 = vrcp.f32 %v658_v57  ;;  %v6628_v0 = vpop.permute.xlu0 %1265  ;;  %v516_v1 = vpop.f32.mrf.mxu0  ;;  %vm6646_vm4 = vmor %vm687_vm2, %vm688_vm3  ;;  %vm702_vm6 = vweird.f32 %v658_v57  ;;  %v706_v38 = vand.u32 2147483647, %v658_v57  ;;  %v708_v39 = vand.u32 2147483648, %v658_v57 }
  0xab   : > { %v684_v3 = vsub.f32 1.0, %v683_v59  ;;  %v6632_v8 = vadd.f32 %v6559_v18, %v516_v1 }
  0xac   : > { %vm707_vm9 = vcmp.eq.f32.partialorder %v706_v38, 8.507059e+37 }
  0xad   : > { %v685_v14 = vmul.f32 %v6030_v56, %v684_v3  ;;  %v585_v15 = vmul.f32 -1.702, %v6632_v8  ;;  %5539 = vmatmul.msk.f32.gmra.mxu0 %vm414_vm0, %v400_v2 }
  0xaf   : > { %v6032_v23 = vpop.eup %6031  ;;  %v686_v25 = vadd.f32 %v6030_v56, %v685_v14  ;;  %v613_v26 = vmul.f32 1.442695, %v585_v15  ;;  %1989 = vperm.xlu2 %6021, %v5633_v9   ;;  %1984 = vperm.xlu1 %6020, %v5632_v10  }
  0xb0   : > { %v6034_v27 = vpop.eup %6033  ;;  %v6650_v28 = vadd.f32 1.0, %v6032_v23  ;;  %1979 = vperm.xlu0 %6019, %v5631_v16   ;;  %v402_v23 = vld [vmem:[%s6331_s13 + $0xa8] sm:$0xff] }
  0xb1   : > { %v690_v29 = vsel %vm6646_vm4, %v6030_v56, %v686_v25  ;;  %v698_v33 = vmul.f32 %v6034_v27, %v658_v57  ;;  %6035 = vpow2.f32 %v613_v26  ;;  %v6654_v34 = vpop.permute.xlu2 %1412  ;;  %v6656_v36 = vpop.permute.xlu1 %1285  ;;  %vm703_vm7 = vweird.f32 %v6034_v27 }
  0xb2   : > { %v695_v37 = vsel %vm692_vm5, %v694_v22, %v690_v29  ;;  %6037 = vrcp.f32 %v6650_v28  ;;  %v6659_v40 = vpop.permute.xlu0 %1280  ;;  %v519_v41 = vpop.f32.mrf.mxu0  ;;  %vm6679_vm8 = vmor %vm702_vm6, %vm703_vm7  ;;  %v709_v56 = vor.u32 1.1754944e-38, %v708_v39  ;;  %vm717_vm10 = vweird.f32 %v6650_v28  ;;  %v5639_v29 = vld [vmem:[%s9370_s8 + $0x220] sm:$0xff]  ;;  %v5570_v39 = vld [vmem:[%s9366_s4 + $0x8] sm:$0xff] }
  0xb3   : > { %v1057_v46 = vmul.f32 %v695_v37, %v6569_v24  ;;  %v699_v47 = vsub.f32 1.0, %v698_v33  ;;  %v6664_v49 = vadd.f32 %v6559_v18, %v519_v41  ;;  %v5634_v24 = vld [vmem:[%s9370_s8 + $0x1f8] sm:$0xff]  ;;  %v721_v15 = vand.u32 2147483647, %v6650_v28  ;;  %1632 = vmatpush.msrb.mxu0 %v5570_v39  ;;  %6005 = vmatpush.msra.mxu1 %v5570_v39 }
  0xb4   : > { %v723_v16 = vand.u32 2147483648, %v6650_v28  ;;  %v5638_v33 = vld [vmem:[%s9370_s8 + $0x218] sm:$0xff] }
  0xb5   : > { %1112 = vst.msk [vmem:[#allocation2 + $0x10] sm:$0xff] %vm1082_vm1, %v1057_v46  ;;  %v700_v52 = vmul.f32 %v6034_v27, %v699_v47  ;;  %v586_v54 = vmul.f32 -1.702, %v6664_v49  ;;  %5540 = vmatmul.msk.f32.gmra.mxu0 %vm414_vm0, %v401_v42  ;;  %vm722_vm13 = vcmp.eq.f32.partialorder %v721_v15, 8.507059e+37 }
  0xb6   : > { %v724_v42 = vor.u32 1.1754944e-38, %v723_v16  ;;  %v5642_v16 = vld [vmem:[%s9370_s8 + $0x238] sm:$0xff] }
  0xb7   : > { %v6036_v59 = vpop.eup %6035  ;;  %v701_v62 = vadd.f32 %v6034_v27, %v700_v52  ;;  %v615_v1 = vmul.f32 1.442695, %v586_v54  ;;  %2004 = vperm.xlu2 %6021, %v5636_v50   ;;  %1999 = vperm.xlu1 %6020, %v5635_v51  }
  0xb8   : > { %v6038_v2 = vpop.eup %6037  ;;  %v6683_v3 = vadd.f32 1.0, %v6036_v59  ;;  %1994 = vperm.xlu0 %6019, %v5634_v24  }
  0xb9   : > { %v705_v7 = vsel %vm6679_vm8, %v6034_v27, %v701_v62  ;;  %v713_v57 = vmul.f32 %v6038_v2, %v6650_v28  ;;  %6039 = vpow2.f32 %v615_v1  ;;  %v6689_v9 = vpop.permute.xlu2 %1427  ;;  %v6691_v10 = vpop.permute.xlu1 %1300  ;;  %vm718_vm11 = vweird.f32 %v6038_v2 }
  0xba   : > { %9378 = vst [vmem:[#allocation5_spill] sm:$0xff] %v6691_v10  ;;  %v710_v14 = vsel %vm707_vm9, %v709_v56, %v705_v7  ;;  %6041 = vrcp.f32 %v6683_v3  ;;  %v6696_v17 = vpop.permute.xlu0 %1295  ;;  %v522_v22 = vpop.f32.mrf.mxu0  ;;  %vm6720_vm12 = vmor %vm717_vm10, %vm718_vm11  ;;  %vm732_vm14 = vweird.f32 %v6683_v3  ;;  %v738_v59 = vand.u32 2147483648, %v6683_v3  ;;  %v403_v7 = vld [vmem:[%s6331_s13 + $0xb0] sm:$0xff] }
  0xbb   : > { %v1058_v25 = vmul.f32 %v710_v14, %v6590_v35  ;;  %v714_v26 = vsub.f32 1.0, %v713_v57  ;;  %v6701_v27 = vadd.f32 %v6559_v18, %v522_v22  ;;  %v5637_v35 = vld [vmem:[%s9370_s8 + $0x210] sm:$0xff]  ;;  %v736_v14 = vand.u32 2147483647, %v6683_v3 }
  0xbc   : > { %v5641_v22 = vld [vmem:[%s9370_s8 + $0x230] sm:$0xff] }
  0xbd   : > { %1113 = vst.msk [vmem:[#allocation2 + $0x18] sm:$0xff] %vm1082_vm1, %v1058_v25  ;;  %v715_v37 = vmul.f32 %v6038_v2, %v714_v26  ;;  %v587_v38 = vmul.f32 -1.702, %v6701_v27  ;;  %5541 = vmatmul.msk.f32.gmra.mxu0 %vm414_vm0, %v402_v23  ;;  %v739_v26 = vor.u32 1.1754944e-38, %v738_v59  ;;  %vm737_vm3 = vcmp.eq.f32.partialorder %v736_v14, 8.507059e+37  ;;  %v5644_v14 = vld [vmem:[%s9370_s8 + $0x248] sm:$0xff] }
  0xbf   : > { %v6040_v46 = vpop.eup %6039  ;;  %v716_v47 = vadd.f32 %v6038_v2, %v715_v37  ;;  %v617_v50 = vmul.f32 1.442695, %v587_v38  ;;  %2019 = vperm.xlu2 %6021, %v5639_v29   ;;  %2014 = vperm.xlu1 %6020, %v5638_v33   ;;  %v1338_v38 = vld [vmem:[%s9366_s4] sm:$0xff] }
  0xc0   : > { %v6042_v51 = vpop.eup %6041  ;;  %v6724_v52 = vadd.f32 1.0, %v6040_v46  ;;  %2009 = vperm.xlu0 %6019, %v5637_v35   ;;  %6006 = vmatpush.msra.mxu2 %v1338_v38 }
  0xc1   : > { %v720_v28 = vsel %vm6720_vm12, %v6038_v2, %v716_v47  ;;  %v728_v54 = vmul.f32 %v6042_v51, %v6683_v3  ;;  %6043 = vpow2.f32 %v617_v50  ;;  %v6729_v24 = vpop.permute.xlu2 %1442  ;;  %v6731_v55 = vpop.permute.xlu1 %1392  ;;  %vm733_vm15 = vweird.f32 %v6042_v51  ;;  %1799 = vmatpush.msra.mxu0 %v1338_v38 }
  0xc2   : > { %v725_v56 = vsel %vm722_vm13, %v724_v42, %v720_v28  ;;  %6045 = vrcp.f32 %v6724_v52  ;;  %v6736_v62 = vpop.permute.xlu0 %1310  ;;  %v525_v1 = vpop.f32.mrf.mxu0  ;;  %vm6757_vm2 = vmor %vm732_vm14, %vm733_vm15  ;;  %vm747_vm4 = vweird.f32 %v6724_v52  ;;  %v751_v28 = vand.u32 2147483647, %v6724_v52 }
  0xc3   : > { %9381 = vst [vmem:[#allocation6_spill] sm:$0xff] %v6736_v62  ;;  %v1059_v2 = vmul.f32 %v725_v56, %v6611_v48  ;;  %v729_v57 = vsub.f32 1.0, %v728_v54  ;;  %v6742_v15 = vadd.f32 %v6559_v18, %v525_v1  ;;  %v5640_v48 = vld [vmem:[%s9370_s8 + $0x228] sm:$0xff]  ;;  %v753_v54 = vand.u32 2147483648, %v6724_v52  ;;  %v5683_v62 = vld [vmem:[%s9370_s8 + $0x2b0] sm:$0xff] }
  0xc4   : > { %vm752_vm7 = vcmp.eq.f32.partialorder %v751_v28, 8.507059e+37 }
  0xc5   : > { %1114 = vst.msk [vmem:[#allocation2 + $0x20] sm:$0xff] %vm1082_vm1, %v1059_v2  ;;  %v730_v23 = vmul.f32 %v6042_v51, %v729_v57  ;;  %5542 = vmatmul.msk.f32.gmra.mxu0 %vm414_vm0, %v403_v7  ;;  %v588_v29 = vmul.f32 -1.702, %v6742_v15  ;;  %v5645_v57 = vld [vmem:[%s9370_s8 + $0x250] sm:$0x1f] }
  0xc7   : > { %v6044_v33 = vpop.eup %6043  ;;  %v731_v37 = vadd.f32 %v6042_v51, %v730_v23  ;;  %2034 = vperm.xlu2 %6021, %v5642_v16   ;;  %2029 = vperm.xlu1 %6020, %v5641_v22   ;;  %v619_v3 = vmul.f32 1.442695, %v588_v29  ;;  %v754_v23 = vor.u32 1.1754944e-38, %v753_v54  ;;  %v5646_v22 = vld [vmem:[%s9366_s4 + $0x10] sm:$0xff] }
  0xc8   : > { %v6046_v35 = vpop.eup %6045  ;;  %v6765_v39 = vadd.f32 1.0, %v6044_v33  ;;  %2024 = vperm.xlu0 %6019, %v5640_v48   ;;  %6007 = vmatpush.msra.mxu3 %v5646_v22 }
  0xc9   : > { %v735_v41 = vsel %vm6757_vm2, %v6042_v51, %v731_v37  ;;  %v743_v42 = vmul.f32 %v6046_v35, %v6724_v52  ;;  %v6771_v46 = vpop.permute.xlu2 %1457  ;;  %v6773_v47 = vpop.permute.xlu1 %1407  ;;  %v404_v51 = vld [vmem:[%s6331_s13 + $0xb8] sm:$0xff]  ;;  %vm748_vm5 = vweird.f32 %v6046_v35 }
  0xca   : > { %v740_v50 = vsel %vm737_vm3, %v739_v26, %v735_v41  ;;  %6047 = vrcp.f32 %v6765_v39  ;;  %v6778_v56 = vpop.permute.xlu0 %1402  ;;  %v528_v59 = vpop.f32.mrf.mxu0  ;;  %vm6798_vm6 = vmor %vm747_vm4, %vm748_vm5  ;;  %vm762_vm8 = vweird.f32 %v6765_v39  ;;  %v766_v38 = vand.u32 2147483647, %v6765_v39 }
  0xcb   : > { %v1060_v1 = vmul.f32 %v740_v50, %v6632_v8  ;;  %v744_v7 = vsub.f32 1.0, %v743_v42  ;;  %6049 = vpow2.f32 %v619_v3  ;;  %v6783_v2 = vadd.f32 %v6559_v18, %v528_v59  ;;  %v5643_v8 = vld [vmem:[%s9370_s8 + $0x240] sm:$0xff] }
  0xcc   : > { %v768_v50 = vand.u32 2147483648, %v6765_v39  ;;  %vm767_vm11 = vcmp.eq.f32.partialorder %v766_v38, 8.507059e+37 }
  0xcd   : > { %1115 = vst.msk [vmem:[#allocation2 + $0x28] sm:$0xff] %vm1082_vm1, %v1060_v1  ;;  %v745_v16 = vmul.f32 %v6046_v35, %v744_v7  ;;  %5543 = vmatmul.msk.f32.gmra.mxu0 %vm414_vm0, %v404_v51  ;;  %v589_v48 = vmul.f32 -1.702, %v6783_v2 }
  0xcf   : > { %v746_v25 = vadd.f32 %v6046_v35, %v745_v16  ;;  %2049 = vperm.xlu2 %6021, %v5645_v57   ;;  %2044 = vperm.xlu1 %6020, %v5644_v14   ;;  %v621_v29 = vmul.f32 1.442695, %v589_v48  ;;  %v5674_v57 = vld [vmem:[%s9370_s8 + $0x268] sm:$0xff]  ;;  %v5673_v14 = vld [vmem:[%s9370_s8 + $0x260] sm:$0xff] }
  0xd0   : > { %v6048_v26 = vpop.eup %6047  ;;  %2039 = vperm.xlu0 %6019, %v5643_v8   ;;  %v5672_v8 = vld [vmem:[%s9370_s8 + $0x258] sm:$0xff] }
  0xd1   : > { %v6050_v33 = vpop.eup %6049  ;;  %v750_v37 = vsel %vm6798_vm6, %v6046_v35, %v746_v25  ;;  %v758_v52 = vmul.f32 %v6048_v26, %v6765_v39  ;;  %v6808_v3 = vpop.permute.xlu2 %1472  ;;  %6051 = vpow2.f32 %v621_v29  ;;  %v405_v35 = vld [vmem:[%s6331_s13 + $0xc0] sm:$0x1f]  ;;  %vm763_vm9 = vweird.f32 %v6048_v26  ;;  %s9153_s13 = scalar_lea.vmem %s9363_s1, %s6322_s28 }
  0xd2   : > { %v6810_v41 = vpop.permute.xlu1 %1422  ;;  %v755_v42 = vsel %vm752_vm7, %v754_v23, %v750_v37  ;;  %v6813_v28 = vadd.f32 1.0, %v6050_v33  ;;  %v6815_v54 = vpop.permute.xlu0 %1417  ;;  %vm6837_vm10 = vmor %vm762_vm8, %vm763_vm9  ;;  %v769_v23 = vor.u32 1.1754944e-38, %v768_v50  ;;  %v1339_v33 = vld [vmem:[#allocation2 + $0x2] sm:$0xff] }
  0xd3   : > { %v531_v59 = vpop.f32.mrf.mxu0  ;;  %v1061_v51 = vmul.f32 %v755_v42, %v6664_v49  ;;  %v759_v1 = vsub.f32 1.0, %v758_v52 }
  0xd4   : > { %v6820_v7 = vadd.f32 %v6559_v18, %v531_v59  ;;  %6053 = vrcp.f32 %v6813_v28  ;;  %vm777_vm12 = vweird.f32 %v6813_v28 }
  0xd5   : > { %1116 = vst.msk [vmem:[#allocation2 + $0x30] sm:$0xff] %vm1082_vm1, %v1061_v51  ;;  %v760_v16 = vmul.f32 %v6048_v26, %v759_v1  ;;  %5544 = vmatmul.msk.f32.gmra.mxu0 %vm414_vm0, %v405_v35  ;;  %v1515_v1 = vmul.f32 %v6731_v55, %v1339_v33  ;;  %v781_v55 = vand.u32 2147483647, %v6813_v28 }
  0xd6   : > { %v590_v49 = vmul.f32 -1.702, %v6820_v7 }
  0xd7   : > { %v761_v48 = vadd.f32 %v6048_v26, %v760_v16  ;;  %2334 = vperm.xlu2 %6021, %v5674_v57   ;;  %2329 = vperm.xlu1 %6020, %v5673_v14   ;;  %v6052_v29 = vpop.eup %6051  ;;  %v5677_v16 = vld [vmem:[%s9370_s8 + $0x280] sm:$0xff]  ;;  %vm782_vm15 = vcmp.eq.f32.partialorder %v781_v55, 8.507059e+37 }
  0xd8   : > { %v623_v25 = vmul.f32 1.442695, %v590_v49  ;;  %2324 = vperm.xlu0 %6019, %v5672_v8   ;;  %v6843_v52 = vadd.f32 1.0, %v6052_v29  ;;  %v5676_v49 = vld [vmem:[%s9370_s8 + $0x278] sm:$0xff]  ;;  %v5675_v8 = vld [vmem:[%s9370_s8 + $0x270] sm:$0xff] }
  0xd9   : > { %v765_v37 = vsel %vm6837_vm10, %v6048_v26, %v761_v48  ;;  %v6845_v39 = vpop.permute.xlu2 %1487  ;;  %v783_v26 = vand.u32 2147483648, %v6813_v28 }
  0xda   : > { %6055 = vpow2.f32 %v623_v25  ;;  %v6847_v42 = vpop.permute.xlu1 %1437  ;;  %v6054_v59 = vpop.eup %6053  ;;  %v770_v50 = vsel %vm767_vm11, %v769_v23, %v765_v37  ;;  %v1340_v25 = vld [vmem:[#allocation2 + $0xa] sm:$0xff]  ;;  %vm792_vm2 = vweird.f32 %v6843_v52  ;;  %v796_v55 = vand.u32 2147483647, %v6843_v52 }
  0xdb   : > { %v6849_v35 = vpop.permute.xlu0 %1432  ;;  %v534_v38 = vpop.f32.mrf.mxu0  ;;  %v1062_v51 = vmul.f32 %v770_v50, %v6701_v27  ;;  %v773_v57 = vmul.f32 %v6054_v59, %v6813_v28  ;;  %6057 = vrcp.f32 %v6843_v52  ;;  %vm778_vm13 = vweird.f32 %v6054_v59 }
  0xdc   : > { %v6857_v14 = vadd.f32 %v6559_v18, %v534_v38  ;;  %vm6876_vm14 = vmor %vm777_vm12, %vm778_vm13  ;;  %v784_v33 = vor.u32 1.1754944e-38, %v783_v26  ;;  %vm6920_vm5 = vcmp.eq.f32.partialorder %v796_v55, 8.507059e+37 }
  0xdd   : > { %1117 = vst.msk [vmem:[#allocation2 + $0x38] sm:$0xff] %vm1082_vm1, %v1062_v51  ;;  %v774_v27 = vsub.f32 1.0, %v773_v57  ;;  %5571 = vmatmul.msk.f32.vlgmr.msrb.gmra.mxu0 %vm1082_vm1, %v1515_v1 }
  0xde   : > { %v591_v23 = vmul.f32 -1.702, %v6857_v14  ;;  %2169 = vmatpush.msrb.mxu0 %v5646_v22  ;;  %v798_v22 = vand.u32 2147483648, %v6843_v52 }
  0xdf   : > { %v775_v29 = vmul.f32 %v6054_v59, %v774_v27  ;;  %2349 = vperm.xlu2 %6021, %v5677_v16   ;;  %2344 = vperm.xlu1 %6020, %v5676_v49   ;;  %v1516_v27 = vmul.f32 %v6624_v60, %v1340_v25  ;;  %v5680_v60 = vld [vmem:[%s9370_s8 + $0x298] sm:$0xff] }
  0xe0   : > { %v6056_v48 = vpop.eup %6055  ;;  %v625_v50 = vmul.f32 1.442695, %v591_v23  ;;  %2339 = vperm.xlu0 %6019, %v5675_v8  }
  0xe1   : > { %v6880_v37 = vadd.f32 1.0, %v6056_v48  ;;  %v6058_v38 = vpop.eup %6057  ;;  %v776_v51 = vadd.f32 %v6054_v59, %v775_v29  ;;  %v6882_v1 = vpop.permute.xlu2 %1502 }
  0xe2   : > { %v6884_v57 = vpop.permute.xlu1 %1452  ;;  %v788_v16 = vmul.f32 %v6058_v38, %v6843_v52  ;;  %vm793_vm3 = vweird.f32 %v6058_v38 }
  0xe3   : > { %6059 = vrcp.f32 %v6880_v37  ;;  %v6890_v26 = vpop.permute.xlu0 %1447  ;;  %v537_v49 = vpop.f32.mrf.mxu0  ;;  %v780_v8 = vsel %vm6876_vm14, %v6054_v59, %v776_v51  ;;  %v5679_v59 = vld [vmem:[%s9370_s8 + $0x290] sm:$0xff]  ;;  %vm6916_vm4 = vmor %vm792_vm2, %vm793_vm3  ;;  %vm807_vm6 = vweird.f32 %v6880_v37 }
  0xe4   : > { %6061 = vpow2.f32 %v625_v50  ;;  %v785_v23 = vsel %vm782_vm15, %v784_v33, %v780_v8  ;;  %v789_v48 = vsub.f32 1.0, %v788_v16  ;;  %v1345_v25 = vld [vmem:[#allocation2 + $0x32] sm:$0xff]  ;;  %v6900_v29 = vadd.f32 %v6559_v18, %v537_v49  ;;  %v5678_v33 = vld [vmem:[%s9370_s8 + $0x288] sm:$0xff] }
  0xe5   : > { %v1144_v28 = vld [vmem:[#allocation2 + $0x31] sm:$0xff]  ;;  %v1063_v51 = vmul.f32 %v785_v23, %v6742_v15  ;;  %v1521_v50 = vmul.f32 %v6810_v41, %v1345_v25  ;;  %5572 = vmatmul.msk.f32.gmra.mxu0 %vm1082_vm1, %v1516_v27  ;;  %v799_v15 = vor.u32 1.1754944e-38, %v798_v22  ;;  %v811_v22 = vand.u32 2147483647, %v6880_v37 }
  0xe6   : > { %v790_v16 = vmul.f32 %v6058_v38, %v789_v48  ;;  %v592_v8 = vmul.f32 -1.702, %v6900_v29  ;;  %v1319_v49 = vmul.f32 %v6565_v21, %v1144_v28  ;;  %v1341_v27 = vld [vmem:[#allocation2 + $0x12] sm:$0xff]  ;;  %v5681_v48 = vld [vmem:[%s9370_s8 + $0x2a0] sm:$0xff] }
  0xe7   : > { %1118 = vst.msk [vmem:[#allocation2 + $0x40] sm:$0xff] %vm1082_vm1, %v1063_v51  ;;  %2364 = vperm.xlu2 %6021, %v5680_v60   ;;  %2359 = vperm.xlu1 %6020, %v5679_v59   ;;  %v1517_v52 = vmul.f32 %v6778_v56, %v1341_v27  ;;  %v813_v51 = vand.u32 2147483648, %v6880_v37  ;;  %vm6966_vm9 = vcmp.eq.f32.partialorder %v811_v22, 8.507059e+37 }
  0xe8   : > { %v791_v23 = vadd.f32 %v6058_v38, %v790_v16  ;;  %v627_v25 = vmul.f32 1.442695, %v592_v8  ;;  %2354 = vperm.xlu0 %6019, %v5678_v33   ;;  %5577 = vmatmul.msk.f32.vlgmr.msra.gmra.mxu1 %vm1082_vm1, %v1521_v50 }
  0xe9   : > { %v6060_v41 = vpop.eup %6059  ;;  %5602 = vmatmul.msk.f32.vlgmr.msra.gmra.mxu2 %vm1082_vm1, %v1319_v49  ;;  %v6930_v60 = vpop.permute.xlu2 %1929 }
  0xea   : > { %v6062_v21 = vpop.eup %6061  ;;  %v803_v28 = vmul.f32 %v6060_v41, %v6880_v37  ;;  %v6932_v55 = vpop.permute.xlu1 %1467  ;;  %v795_v59 = vsel %vm6916_vm4, %v6058_v38, %v791_v23  ;;  %6063 = vpow2.f32 %v627_v25  ;;  %vm808_vm7 = vweird.f32 %v6060_v41  ;;  %v5682_v38 = vld [vmem:[%s9370_s8 + $0x2a8] sm:$0xff] }
  0xeb   : > { %v6937_v50 = vadd.f32 1.0, %v6062_v21  ;;  %v6939_v56 = vpop.permute.xlu0 %1462  ;;  %v540_v33 = vpop.f32.mrf.mxu0  ;;  %v800_v16 = vsel %vm6920_vm5, %v799_v15, %v795_v59  ;;  %vm6962_vm8 = vmor %vm807_vm6, %vm808_vm7  ;;  %v814_v25 = vor.u32 1.1754944e-38, %v813_v51 }
  0xec   : > { %v804_v8 = vsub.f32 1.0, %v803_v28  ;;  %v6944_v49 = vadd.f32 %v6559_v18, %v540_v33  ;;  %v1064_v27 = vmul.f32 %v800_v16, %v6783_v2 }
  0xed   : > { %6065 = vrcp.f32 %v6937_v50  ;;  %5573 = vmatmul.msk.f32.gmra.mxu0 %vm1082_vm1, %v1517_v52  ;;  %v828_v2 = vand.u32 2147483648, %v6937_v50  ;;  %vm822_vm10 = vweird.f32 %v6937_v50  ;;  %v826_v33 = vand.u32 2147483647, %v6937_v50 }
  0xee   : > { %v805_v23 = vmul.f32 %v6060_v41, %v804_v8  ;;  %v593_v15 = vmul.f32 -1.702, %v6944_v49  ;;  %1119 = vst.msk [vmem:[#allocation2 + $0x48] sm:$0xff] %vm1082_vm1, %v1064_v27  ;;  %v1346_v21 = vld [vmem:[#allocation2 + $0x3a] sm:$0xff] }
  0xef   : > { %v1145_v28 = vld [vmem:[#allocation2 + $0x39] sm:$0xff]  ;;  %2379 = vperm.xlu2 %6021, %v5683_v62   ;;  %2374 = vperm.xlu1 %6020, %v5682_v38   ;;  %v1522_v16 = vmul.f32 %v6689_v9, %v1346_v21  ;;  %vm7027_vm13 = vcmp.eq.f32.partialorder %v826_v33, 8.507059e+37 }
  0xf0   : > { %v806_v59 = vadd.f32 %v6060_v41, %v805_v23  ;;  %v629_v52 = vmul.f32 1.442695, %v593_v15  ;;  %v6064_v8 = vpop.eup %6063  ;;  %v1342_v27 = vld [vmem:[#allocation2 + $0x1a] sm:$0xff]  ;;  %2369 = vperm.xlu0 %6019, %v5681_v48   ;;  %v1320_v37 = vmul.f32 %v6563_v20, %v1145_v28 }
  0xf1   : > { %v6974_v43 = vadd.f32 1.0, %v6064_v8  ;;  %5578 = vmatmul.msk.f32.gmra.mxu1 %vm1082_vm1, %v1522_v16  ;;  %v6977_v22 = vpop.permute.xlu2 %1944  ;;  %v5685_v28 = vld [vmem:[%s9370_s8 + $0x2c0] sm:$0xff] }
  0xf2   : > { %v810_v51 = vsel %vm6962_vm8, %v6060_v41, %v806_v59  ;;  %6067 = vpow2.f32 %v629_v52  ;;  %v6979_v23 = vpop.permute.xlu1 %1482  ;;  %5603 = vmatmul.msk.f32.gmra.mxu2 %vm1082_vm1, %v1320_v37  ;;  %v1518_v41 = vmul.f32 %v6773_v47, %v1342_v27  ;;  %v5684_v47 = vld [vmem:[%s9370_s8 + $0x2b8] sm:$0xff]  ;;  %v1343_v16 = vld [vmem:[#allocation2 + $0x22] sm:$0xff] }
  0xf3   : > { %v6066_v62 = vpop.eup %6065  ;;  %v815_v9 = vsel %vm6966_vm9, %v814_v25, %v810_v51  ;;  %v6984_v38 = vpop.permute.xlu0 %1477  ;;  %6069 = vrcp.f32 %v6974_v43  ;;  %v5686_v25 = vld [vmem:[%s9370_s8 + $0x2c8] sm:$0xff]  ;;  %vm837_vm14 = vweird.f32 %v6974_v43 }
  0xf4   : > { %v543_v20 = vpop.f32.mrf.mxu0  ;;  %v1065_v15 = vmul.f32 %v815_v9, %v6820_v7  ;;  %v818_v48 = vmul.f32 %v6066_v62, %v6937_v50  ;;  %vm823_vm11 = vweird.f32 %v6066_v62  ;;  %v5748_v9 = vld [vmem:[%s9366_s4 + $0x20] sm:$0xff] }
  0xf5   : > { %v6992_v21 = vadd.f32 %v6559_v18, %v543_v20  ;;  %v1347_v7 = vld [vmem:[#allocation2 + $0x42] sm:$0xff]  ;;  %5574 = vmatmul.msk.f32.gmra.mxu0 %vm1082_vm1, %v1518_v41  ;;  %v5697_v41 = vld [vmem:[%s9366_s4 + $0x18] sm:$0xff]  ;;  %vm7018_vm12 = vmor %vm822_vm10, %vm823_vm11  ;;  %2959 = vmatpush.msrb.mxu2 %v5748_v9 }
  0xf6   : > { %1120 = vst.msk [vmem:[#allocation2 + $0x50] sm:$0xff] %vm1082_vm1, %v1065_v15  ;;  %v819_v59 = vsub.f32 1.0, %v818_v48  ;;  %v1146_v52 = vld [vmem:[#allocation2 + $0x41] sm:$0xff]  ;;  %v1523_v8 = vmul.f32 %v6849_v35, %v1347_v7  ;;  %v829_v15 = vor.u32 1.1754944e-38, %v828_v2  ;;  %2564 = vmatpush.msrb.mxu1 %v5697_v41 }
  0xf7   : > { %v594_v27 = vmul.f32 -1.702, %v6992_v21  ;;  %2394 = vperm.xlu2 %6021, %v5686_v25   ;;  %2389 = vperm.xlu1 %6020, %v5685_v28   ;;  %v1321_v20 = vmul.f32 %v6502_v63, %v1146_v52  ;;  %v1519_v63 = vmul.f32 %v6654_v34, %v1343_v16 }
  0xf8   : > { %v6068_v37 = vpop.eup %6067  ;;  %v820_v51 = vmul.f32 %v6066_v62, %v819_v59  ;;  %2384 = vperm.xlu0 %6019, %v5684_v47   ;;  %v841_v47 = vand.u32 2147483647, %v6974_v43  ;;  %v1344_v59 = vld [vmem:[#allocation2 + $0x2a] sm:$0xff] }
  0xf9   : > { %v7022_v48 = vadd.f32 1.0, %v6068_v37  ;;  %v631_v7 = vmul.f32 1.442695, %v594_v27  ;;  %v7024_v25 = vpop.eup %6069  ;;  %5579 = vmatmul.msk.f32.gmra.mxu1 %vm1082_vm1, %v1523_v8  ;;  %v1960_v50 = vpop.permute.xlu2 %1959  ;;  %v843_v8 = vand.u32 2147483648, %v6974_v43  ;;  %v1882_v27 = vld [vmem:[#allocation2 + $0x33] sm:$0xff]  ;;  %v5689_v37 = vld [vmem:[%s9370_s8 + $0x2e0] sm:$0xff] }
  0xfa   : > { %v821_v28 = vadd.f32 %v6066_v62, %v820_v51  ;;  %v7032_v52 = vpop.permute.xlu1 %1497  ;;  %v833_v2 = vmul.f32 %v7024_v25, %v6974_v43  ;;  %5604 = vmatmul.msk.f32.gmra.mxu2 %vm1082_vm1, %v1321_v20  ;;  %vm838_vm15 = vweird.f32 %v7024_v25  ;;  %v2058_v41 = vmul.f32 %v1960_v50, %v1882_v27 }
  0xfb   : > { %6071 = vrcp.f32 %v7022_v48  ;;  %v7040_v34 = vpop.permute.xlu0 %1492  ;;  %vm7072_vm2 = vmor %vm837_vm14, %vm838_vm15  ;;  %vm7077_vm3 = vcmp.eq.f32.partialorder %v841_v47, 8.507059e+37  ;;  %vm852_vm4 = vweird.f32 %v7022_v48 }
  0xfc   : > { %v546_v33 = vpop.f32.mrf.mxu0  ;;  %v825_v16 = vsel %vm7018_vm12, %v6066_v62, %v821_v28  ;;  %6073 = vpow2.f32 %v631_v7  ;;  %v834_v20 = vsub.f32 1.0, %v833_v2  ;;  %v5688_v62 = vld [vmem:[%s9370_s8 + $0x2d8] sm:$0xff]  ;;  %5653 = vmatmul.msk.f32.vlgmr.msra.gmra.mxu3 %vm1082_vm1, %v2058_v41  ;;  %v858_v41 = vand.u32 2147483648, %v7022_v48 }
  0xfd   : > { %v1348_v51 = vld [vmem:[#allocation2 + $0x4a] sm:$0xff]  ;;  %v830_v9 = vsel %vm7027_vm13, %v829_v15, %v825_v16  ;;  %v7052_v10 = vadd.f32 %v6559_v18, %v546_v33  ;;  %5575 = vmatmul.msk.f32.gmra.mxu0 %vm1082_vm1, %v1519_v63 }
  0xfe   : > { %v1147_v35 = vld [vmem:[#allocation2 + $0x49] sm:$0xff]  ;;  %v1524_v7 = vmul.f32 %v6847_v42, %v1348_v51  ;;  %v1066_v28 = vmul.f32 %v830_v9, %v6857_v14  ;;  %v835_v50 = vmul.f32 %v7024_v25, %v834_v20  ;;  %v844_v14 = vor.u32 1.1754944e-38, %v843_v8 }
  0xff   : > { %v5687_v15 = vld [vmem:[%s9370_s8 + $0x2d0] sm:$0xff]  ;;  %v595_v2 = vmul.f32 -1.702, %v7052_v10  ;;  %v1322_v33 = vmul.f32 %v6586_v32, %v1147_v35  ;;  %2409 = vperm.xlu2 %6021, %v5689_v37   ;;  %2404 = vperm.xlu1 %6020, %v5688_v62   ;;  %v1520_v9 = vmul.f32 %v6815_v54, %v1344_v59  ;;  %v856_v8 = vand.u32 2147483647, %v7022_v48  ;;  %v5692_v59 = vld [vmem:[%s9370_s8 + $0x2f8] sm:$0xff] }
 0x100   : > { %1121 = vst.msk [vmem:[#allocation2 + $0x58] sm:$0xff] %vm1082_vm1, %v1066_v28  ;;  %v836_v16 = vadd.f32 %v7024_v25, %v835_v50  ;;  %2399 = vperm.xlu0 %6019, %v5687_v15   ;;  %v5691_v50 = vld [vmem:[%s9370_s8 + $0x2f0] sm:$0xff]  ;;  %v859_v42 = vor.u32 1.1754944e-38, %v858_v41 }
 0x101   : > { %v6072_v63 = vpop.eup %6071  ;;  %v633_v32 = vmul.f32 1.442695, %v595_v2  ;;  %5580 = vmatmul.msk.f32.gmra.mxu1 %vm1082_vm1, %v1524_v7  ;;  %v7086_v37 = vpop.permute.xlu2 %1974  ;;  %vm7124_vm7 = vcmp.eq.f32.partialorder %v856_v8, 8.507059e+37 }
 0x102   : > { %v6074_v51 = vpop.eup %6073  ;;  %v848_v43 = vmul.f32 %v6072_v63, %v7022_v48  ;;  %v7088_v20 = vpop.permute.xlu1 %1512  ;;  %v840_v47 = vsel %vm7072_vm2, %v7024_v25, %v836_v16  ;;  %5605 = vmatmul.msk.f32.gmra.mxu2 %vm1082_vm1, %v1322_v33  ;;  %vm853_vm5 = vweird.f32 %v6072_v63 }
 0x103   : > { %v7094_v62 = vadd.f32 1.0, %v6074_v51  ;;  %6075 = vpow2.f32 %v633_v32  ;;  %v7097_v54 = vpop.permute.xlu0 %1507  ;;  %v845_v7 = vsel %vm7077_vm3, %v844_v14, %v840_v47  ;;  %vm7120_vm6 = vmor %vm852_vm4, %vm853_vm5  ;;  %v1138_v47 = vld [vmem:[#allocation2 + $0x1] sm:$0xff] }
 0x104   : > { %v549_v35 = vpop.f32.mrf.mxu0  ;;  %v849_v28 = vsub.f32 1.0, %v848_v43  ;;  %v1067_v25 = vmul.f32 %v845_v7, %v6900_v29 }
 0x105   : > { %v7102_v15 = vadd.f32 %v6559_v18, %v549_v35  ;;  %6077 = vrcp.f32 %v7094_v62  ;;  %5576 = vmatmul.msk.f32.gmra.mxu0 %vm1082_vm1, %v1520_v9  ;;  %v5690_v18 = vld [vmem:[%s9370_s8 + $0x2e8] sm:$0xff]  ;;  %vm867_vm8 = vweird.f32 %v7094_v62  ;;  %v871_v29 = vand.u32 2147483647, %v7094_v62 }
 0x106   : > { %v850_v2 = vmul.f32 %v6072_v63, %v849_v28  ;;  %1122 = vst.msk [vmem:[#allocation2 + $0x60] sm:$0xff] %vm1082_vm1, %v1067_v25 }
 0x107   : > { %v596_v33 = vmul.f32 -1.702, %v7102_v15  ;;  %v1349_v14 = vld [vmem:[#allocation2 + $0x52] sm:$0xff]  ;;  %2424 = vperm.xlu2 %6021, %v5692_v59   ;;  %2419 = vperm.xlu1 %6020, %v5691_v50   ;;  %vm7182_vm11 = vcmp.eq.f32.partialorder %v871_v29, 8.507059e+37 }
 0x108   : > { %v1148_v16 = vld [vmem:[#allocation2 + $0x51] sm:$0xff]  ;;  %v851_v27 = vadd.f32 %v6072_v63, %v850_v2  ;;  %v1525_v9 = vmul.f32 %v6729_v24, %v1349_v14  ;;  %2414 = vperm.xlu0 %6019, %v5690_v18   ;;  %v873_v2 = vand.u32 2147483648, %v7094_v62  ;;  %v5694_v18 = vld [vmem:[%s9370_s8 + $0x308] sm:$0xff] }
 0x109   : > { %v635_v51 = vmul.f32 1.442695, %v596_v33  ;;  %v6076_v43 = vpop.eup %6075  ;;  %v1323_v48 = vmul.f32 %v6584_v31, %v1148_v16  ;;  %v7135_v8 = vpop.permute.xlu2 %1989  ;;  %v5695_v33 = vld [vmem:[%s9370_s8 + $0x310] sm:$0xff] }
 0x10a   : > { %v855_v41 = vsel %vm7120_vm6, %v6072_v63, %v851_v27  ;;  %v7132_v35 = vadd.f32 1.0, %v6076_v43  ;;  %5581 = vmatmul.msk.f32.gmra.mxu1 %vm1082_vm1, %v1525_v9  ;;  %v7137_v7 = vpop.permute.xlu1 %1939  ;;  %v1313_v63 = vmul.f32 %v6526_v6, %v1138_v47  ;;  %v5693_v6 = vld [vmem:[%s9370_s8 + $0x300] sm:$0xff] }
 0x10b   : > { %6079 = vpow2.f32 %v635_v51  ;;  %v6078_v28 = vpop.eup %6077  ;;  %v860_v24 = vsel %vm7124_vm7, %v859_v42, %v855_v41  ;;  %5606 = vmatmul.msk.f32.gmra.mxu2 %vm1082_vm1, %v1323_v48  ;;  %v7142_v25 = vpop.permute.xlu0 %1934  ;;  %v7164_v42 = vld [vmem:[%s9365_s3] ss:$0 sm:$0xff]  ;;  %v1139_v48 = vld [vmem:[#allocation2 + $0x9] sm:$0xff] }
 0x10c   : > { %v552_v31 = vpop.f32.mrf.mxu0  ;;  %v1068_v59 = vmul.f32 %v860_v24, %v6944_v49  ;;  %v863_v50 = vmul.f32 %v6078_v28, %v7094_v62  ;;  %6081 = vrcp.f32 %v7132_v35  ;;  %vm868_vm9 = vweird.f32 %v6078_v28 }
 0x10d   : > { %v7167_v14 = vadd.f32 %v7164_v42, %v552_v31  ;;  %5596 = vmatmul.msk.f32.vlgmr.msra.gmra.mxu0 %vm1082_vm1, %v1313_v63  ;;  %v1350_v16 = vld [vmem:[#allocation2 + $0x5a] sm:$0xff]  ;;  %vm7176_vm10 = vmor %vm867_vm8, %vm868_vm9  ;;  %v874_v24 = vor.u32 1.1754944e-38, %v873_v2  ;;  %vm882_vm12 = vweird.f32 %v7132_v35  ;;  %v888_v29 = vand.u32 2147483648, %v7132_v35 }
 0x10e   : > { %1123 = vst.msk [vmem:[#allocation2 + $0x68] sm:$0xff] %vm1082_vm1, %v1068_v59  ;;  %v864_v49 = vsub.f32 1.0, %v863_v50  ;;  %v1149_v27 = vld [vmem:[#allocation2 + $0x59] sm:$0xff]  ;;  %v1526_v32 = vmul.f32 %v6890_v26, %v1350_v16  ;;  %v5724_v16 = vld [vmem:[%s9370_s8 + $0x328] sm:$0xff] }
 0x10f   : > { %v1324_v51 = vmul.f32 %v6522_v4, %v1149_v27  ;;  %v597_v47 = vmul.f32 -1.702, %v7167_v14  ;;  %2439 = vperm.xlu2 %6021, %v5695_v33   ;;  %2434 = vperm.xlu1 %6020, %v5694_v18  }
 0x110   : > { %v865_v43 = vmul.f32 %v6078_v28, %v864_v49  ;;  %2429 = vperm.xlu0 %6019, %v5693_v6   ;;  %v1314_v6 = vmul.f32 %v6543_v13, %v1139_v48  ;;  %v5723_v13 = vld [vmem:[%s9370_s8 + $0x320] sm:$0xff]  ;;  %v1140_v48 = vld [vmem:[#allocation2 + $0x11] sm:$0xff] }
 0x111   : > { %v6080_v9 = vpop.eup %6079  ;;  %v637_v59 = vmul.f32 1.442695, %v597_v47  ;;  %v7187_v50 = vpop.permute.xlu2 %2004  ;;  %v5696_v47 = vld [vmem:[%s9370_s8 + $0x318] sm:$0x1f] }
 0x112   : > { %v7180_v31 = vadd.f32 1.0, %v6080_v9  ;;  %v6082_v26 = vpop.eup %6081  ;;  %v866_v4 = vadd.f32 %v6078_v28, %v865_v43  ;;  %5582 = vmatmul.msk.f32.gmra.mxu1 %vm1082_vm1, %v1526_v32  ;;  %v7189_v62 = vpop.permute.xlu1 %1954 }
 0x113   : > { %v878_v33 = vmul.f32 %v6082_v26, %v7132_v35  ;;  %5607 = vmatmul.msk.f32.gmra.mxu2 %vm1082_vm1, %v1324_v51  ;;  %v7194_v2 = vpop.permute.xlu0 %1949  ;;  %vm883_vm13 = vweird.f32 %v6082_v26  ;;  %v886_v51 = vand.u32 2147483647, %v7132_v35 }
 0x114   : > { %6083 = vrcp.f32 %v7180_v31  ;;  %v555_v18 = vpop.f32.mrf.mxu0  ;;  %v870_v49 = vsel %vm7176_vm10, %v6078_v28, %v866_v4  ;;  %vm7223_vm14 = vmor %vm882_vm12, %vm883_vm13  ;;  %vm897_vm2 = vweird.f32 %v7180_v31 }
 0x115   : > { %6085 = vpow2.f32 %v637_v59  ;;  %v875_v27 = vsel %vm7182_vm11, %v874_v24, %v870_v49  ;;  %v879_v32 = vsub.f32 1.0, %v878_v33  ;;  %v1351_v28 = vld [vmem:[#allocation2 + $0x62] sm:$0xff]  ;;  %5597 = vmatmul.msk.f32.gmra.mxu0 %vm1082_vm1, %v1314_v6  ;;  %v7216_v24 = vadd.f32 %v7164_v42, %v555_v18  ;;  %v5730_v18 = vld [vmem:[%s9370_s8 + $0x358] sm:$0xff] }
 0x116   : > { %v1150_v9 = vld [vmem:[#allocation2 + $0x61] sm:$0xff]  ;;  %v1069_v43 = vmul.f32 %v875_v27, %v6992_v21  ;;  %v1527_v4 = vmul.f32 %v6884_v57, %v1351_v28  ;;  %v889_v59 = vor.u32 1.1754944e-38, %v888_v29  ;;  %vm7227_vm15 = vcmp.eq.f32.partialorder %v886_v51, 8.507059e+37 }
 0x117   : > { %v880_v41 = vmul.f32 %v6082_v26, %v879_v32  ;;  %v1325_v63 = vmul.f32 %v6607_v45, %v1150_v9  ;;  %2724 = vperm.xlu2 %6021, %v5724_v16   ;;  %2719 = vperm.xlu1 %6020, %v5723_v13   ;;  %v598_v57 = vmul.f32 -1.702, %v7216_v24  ;;  %v1315_v45 = vmul.f32 %v6524_v5, %v1140_v48  ;;  %v1883_v9 = vld [vmem:[#allocation2 + $0x3b] sm:$0xff] }
 0x118   : > { %1124 = vst.msk [vmem:[#allocation2 + $0x70] sm:$0xff] %vm1082_vm1, %v1069_v43  ;;  %2444 = vperm.xlu0 %6019, %v5696_v47   ;;  %v901_v29 = vand.u32 2147483647, %v7180_v31  ;;  %v903_v16 = vand.u32 2147483648, %v7180_v31 }
 0x119   : > { %v881_v6 = vadd.f32 %v6082_v26, %v880_v41  ;;  %v7238_v27 = vpop.permute.xlu2 %2019  ;;  %v639_v5 = vmul.f32 1.442695, %v598_v57 }
 0x11a   : > { %v6084_v33 = vpop.eup %6083  ;;  %5583 = vmatmul.msk.f32.gmra.mxu1 %vm1082_vm1, %v1527_v4  ;;  %v1970_v32 = vpop.permute.xlu1 %1969  ;;  %v904_v57 = vor.u32 1.1754944e-38, %v903_v16  ;;  %vm902_vm5 = vcmp.eq.f32.partialorder %v901_v29, 8.507059e+37 }
 0x11b   : > { %v6086_v49 = vpop.eup %6085  ;;  %v893_v35 = vmul.f32 %v6084_v33, %v7180_v31  ;;  %v885_v51 = vsel %vm7223_vm14, %v6082_v26, %v881_v6  ;;  %vm898_vm3 = vweird.f32 %v6084_v33  ;;  %5608 = vmatmul.msk.f32.gmra.mxu2 %vm1082_vm1, %v1325_v63  ;;  %v1965_v28 = vpop.permute.xlu0 %1964  ;;  %v5727_v26 = vld [vmem:[%s9370_s8 + $0x340] sm:$0xff]  ;;  %v5726_v63 = vld [vmem:[%s9370_s8 + $0x338] sm:$0xff] }
 0x11c   : > { %v7242_v13 = vadd.f32 1.0, %v6086_v49  ;;  %v558_v43 = vpop.f32.mrf.mxu0  ;;  %v890_v47 = vsel %vm7227_vm15, %v889_v59, %v885_v51  ;;  %v2059_v41 = vmul.f32 %v1965_v28, %v1883_v9  ;;  %vm7268_vm4 = vmor %vm897_vm2, %vm898_vm3  ;;  %v1141_v9 = vld [vmem:[#allocation2 + $0x19] sm:$0xff] }
 0x11d   : > { %v894_v48 = vsub.f32 1.0, %v893_v35  ;;  %v7248_v4 = vadd.f32 %v7164_v42, %v558_v43  ;;  %v1070_v21 = vmul.f32 %v890_v47, %v7052_v10  ;;  %5598 = vmatmul.msk.f32.gmra.mxu0 %vm1082_vm1, %v1315_v45  ;;  %v5725_v10 = vld [vmem:[%s9370_s8 + $0x330] sm:$0xff] }
 0x11e   : > { %6087 = vrcp.f32 %v7242_v13  ;;  %5654 = vmatmul.msk.f32.gmra.mxu3 %vm1082_vm1, %v2059_v41  ;;  %vm912_vm6 = vweird.f32 %v7242_v13 }
 0x11f   : > { %v895_v6 = vmul.f32 %v6084_v33, %v894_v48  ;;  %6089 = vpow2.f32 %v639_v5  ;;  %v599_v59 = vmul.f32 -1.702, %v7248_v4  ;;  %1125 = vst.msk [vmem:[#allocation2 + $0x78] sm:$0xff] %vm1082_vm1, %v1070_v21  ;;  %v1352_v49 = vld [vmem:[#allocation2 + $0x6a] sm:$0xff]  ;;  %2739 = vperm.xlu2 %6021, %v5727_v26   ;;  %2734 = vperm.xlu1 %6020, %v5726_v63   ;;  %v1316_v63 = vmul.f32 %v6541_v12, %v1141_v9 }
 0x120   : > { %v1151_v35 = vld [vmem:[#allocation2 + $0x69] sm:$0xff]  ;;  %v1528_v45 = vmul.f32 %v6771_v46, %v1352_v49  ;;  %2729 = vperm.xlu0 %6019, %v5725_v10  }
 0x121   : > { %v896_v51 = vadd.f32 %v6084_v33, %v895_v6  ;;  %v641_v5 = vmul.f32 1.442695, %v599_v59  ;;  %v1326_v28 = vmul.f32 %v6605_v44, %v1151_v35  ;;  %v7277_v16 = vpop.permute.xlu2 %2034  ;;  %v1884_v48 = vld [vmem:[#allocation2 + $0x43] sm:$0xff]  ;;  %v918_v6 = vand.u32 2147483648, %v7242_v13 }
 0x122   : > { %5584 = vmatmul.msk.f32.gmra.mxu1 %vm1082_vm1, %v1528_v45  ;;  %v7279_v43 = vpop.permute.xlu1 %1984  ;;  %v2060_v26 = vmul.f32 %v1970_v32, %v1884_v48  ;;  %v5728_v32 = vld [vmem:[%s9370_s8 + $0x348] sm:$0xff] }
 0x123   : > { %v900_v31 = vsel %vm7268_vm4, %v6084_v33, %v896_v51  ;;  %6091 = vpow2.f32 %v641_v5  ;;  %5609 = vmatmul.msk.f32.gmra.mxu2 %vm1082_vm1, %v1326_v28  ;;  %v7282_v46 = vpop.permute.xlu0 %1979 }
 0x124   : > { %v6088_v29 = vpop.eup %6087  ;;  %v905_v47 = vsel %vm902_vm5, %v904_v57, %v900_v31  ;;  %v561_v41 = vpop.f32.mrf.mxu0  ;;  %v916_v57 = vand.u32 2147483647, %v7242_v13 }
 0x125   : > { %v6090_v44 = vpop.eup %6089  ;;  %v1071_v21 = vmul.f32 %v905_v47, %v7102_v15  ;;  %v908_v33 = vmul.f32 %v6088_v29, %v7242_v13  ;;  %v7291_v10 = vadd.f32 %v7164_v42, %v561_v41  ;;  %v5729_v15 = vld [vmem:[%s9370_s8 + $0x350] sm:$0xff]  ;;  %vm913_vm7 = vweird.f32 %v6088_v29  ;;  %5599 = vmatmul.msk.f32.gmra.mxu0 %vm1082_vm1, %v1316_v63  ;;  %v1142_v41 = vld [vmem:[#allocation2 + $0x21] sm:$0xff] }
 0x126   : > { %v7288_v59 = vadd.f32 1.0, %v6090_v44  ;;  %5655 = vmatmul.msk.f32.gmra.mxu3 %vm1082_vm1, %v2060_v26  ;;  %v1353_v49 = vld [vmem:[#allocation2 + $0x72] sm:$0xff]  ;;  %vm7313_vm8 = vmor %vm912_vm6, %vm913_vm7  ;;  %v919_v47 = vor.u32 1.1754944e-38, %v918_v6  ;;  %vm7319_vm9 = vcmp.eq.f32.partialorder %v916_v57, 8.507059e+37 }
 0x127   : > { %1126 = vst.msk [vmem:[#allocation2 + $0x80] sm:$0xff] %vm1082_vm1, %v1071_v21  ;;  %v909_v12 = vsub.f32 1.0, %v908_v33  ;;  %v1152_v35 = vld [vmem:[#allocation2 + $0x71] sm:$0xff]  ;;  %v600_v45 = vmul.f32 -1.702, %v7291_v10  ;;  %2754 = vperm.xlu2 %6021, %v5730_v18   ;;  %2749 = vperm.xlu1 %6020, %v5729_v15   ;;  %v1529_v28 = vmul.f32 %v6939_v56, %v1353_v49  ;;  %v1317_v15 = vmul.f32 %v6460_v53, %v1142_v41 }
 0x128   : > { %6093 = vrcp.f32 %v7288_v59  ;;  %v1327_v9 = vmul.f32 %v6539_v11, %v1152_v35  ;;  %2744 = vperm.xlu0 %6019, %v5728_v32   ;;  %v1885_v13 = vld [vmem:[#allocation2 + $0x4b] sm:$0xff]  ;;  %v931_v49 = vand.u32 2147483647, %v7288_v59  ;;  %vm927_vm10 = vweird.f32 %v7288_v59 }
 0x129   : > { %v6092_v51 = vpop.eup %6091  ;;  %v910_v5 = vmul.f32 %v6088_v29, %v909_v12  ;;  %v643_v33 = vmul.f32 1.442695, %v600_v45  ;;  %v7324_v11 = vpop.permute.xlu2 %2049  ;;  %v2061_v6 = vmul.f32 %v7086_v37, %v1885_v13  ;;  %v5733_v32 = vld [vmem:[%s9370_s8 + $0x370] sm:$0xff]  ;;  %v5732_v37 = vld [vmem:[%s9370_s8 + $0x368] sm:$0xff]  ;;  %v933_v45 = vand.u32 2147483648, %v7288_v59 }
 0x12a   : > { %v7317_v48 = vadd.f32 1.0, %v6092_v51  ;;  %5585 = vmatmul.msk.f32.gmra.mxu1 %vm1082_vm1, %v1529_v28  ;;  %v7326_v56 = vpop.permute.xlu1 %1999  ;;  %v5731_v28 = vld [vmem:[%s9370_s8 + $0x360] sm:$0xff]  ;;  %vm7361_vm12 = vcmp.eq.f32.partialorder %v931_v49, 8.507059e+37 }
 0x12b   : > { %v911_v44 = vadd.f32 %v6088_v29, %v910_v5  ;;  %5610 = vmatmul.msk.f32.gmra.mxu2 %vm1082_vm1, %v1327_v9  ;;  %v7330_v26 = vpop.permute.xlu0 %1994  ;;  %v1143_v9 = vld [vmem:[#allocation2 + $0x29] sm:$0xff] }
 0x12c   : > { %6095 = vrcp.f32 %v7317_v48  ;;  %v564_v63 = vpop.f32.mrf.mxu0  ;;  %vm942_vm13 = vweird.f32 %v7317_v48  ;;  %v948_v49 = vand.u32 2147483648, %v7317_v48 }
 0x12d   : > { %v915_v18 = vsel %vm7313_vm8, %v6088_v29, %v911_v44  ;;  %6097 = vpow2.f32 %v643_v33  ;;  %v7343_v35 = vadd.f32 %v7164_v42, %v564_v63  ;;  %5600 = vmatmul.msk.f32.gmra.mxu0 %vm1082_vm1, %v1317_v15  ;;  %v1886_v44 = vld [vmem:[#allocation2 + $0x53] sm:$0xff] }
 0x12e   : > { %v6094_v12 = vpop.eup %6093  ;;  %v920_v57 = vsel %vm7319_vm9, %v919_v47, %v915_v18  ;;  %v1354_v29 = vld [vmem:[#allocation2 + $0x7a] sm:$0xff]  ;;  %5656 = vmatmul.msk.f32.gmra.mxu3 %vm1082_vm1, %v2061_v6  ;;  %v2062_v13 = vmul.f32 %v7282_v46, %v1886_v44  ;;  %v934_v18 = vor.u32 1.1754944e-38, %v933_v45  ;;  %v5736_v45 = vld [vmem:[%s9370_s8 + $0x388] sm:$0xff]  ;;  %v5737_v44 = vld [vmem:[%s9370_s8 + $0x390] sm:$0xff] }
 0x12f   : > { %v1153_v51 = vld [vmem:[#allocation2 + $0x79] sm:$0xff]  ;;  %v1072_v53 = vmul.f32 %v920_v57, %v7167_v14  ;;  %v923_v5 = vmul.f32 %v6094_v12, %v7288_v59  ;;  %v601_v31 = vmul.f32 -1.702, %v7343_v35  ;;  %v1530_v47 = vmul.f32 %v6932_v55, %v1354_v29  ;;  %2769 = vperm.xlu2 %6021, %v5733_v32   ;;  %2764 = vperm.xlu1 %6020, %v5732_v37  }
 0x130   : > { %v1328_v41 = vmul.f32 %v6628_v0, %v1153_v51  ;;  %vm928_vm11 = vweird.f32 %v6094_v12  ;;  %2759 = vperm.xlu0 %6019, %v5731_v28   ;;  %v1318_v0 = vmul.f32 %v6481_v58, %v1143_v9  ;;  %v946_v58 = vand.u32 2147483647, %v7317_v48  ;;  %v5735_v28 = vld [vmem:[%s9370_s8 + $0x380] sm:$0xff] }
 0x131   : > { %1127 = vst.msk [vmem:[#allocation2 + $0x88] sm:$0xff] %vm1082_vm1, %v1072_v53  ;;  %v924_v14 = vsub.f32 1.0, %v923_v5  ;;  %v645_v63 = vmul.f32 1.442695, %v601_v31  ;;  %v7370_v32 = vpop.permute.xlu2 %2334  ;;  %vm7377_vm14 = vmor %vm927_vm10, %vm928_vm11 }
 0x132   : > { %v6096_v21 = vpop.eup %6095  ;;  %5586 = vmatmul.msk.f32.gmra.mxu1 %vm1082_vm1, %v1530_v47  ;;  %v7372_v57 = vpop.permute.xlu1 %2014  ;;  %vm7415_vm3 = vcmp.eq.f32.partialorder %v946_v58, 8.507059e+37 }
 0x133   : > { %v6098_v55 = vpop.eup %6097  ;;  %v925_v6 = vmul.f32 %v6094_v12, %v924_v14  ;;  %v938_v15 = vmul.f32 %v6096_v21, %v7317_v48  ;;  %6099 = vpow2.f32 %v645_v63  ;;  %5611 = vmatmul.msk.f32.gmra.mxu2 %vm1082_vm1, %v1328_v41  ;;  %v7386_v29 = vpop.permute.xlu0 %2009  ;;  %vm943_vm15 = vweird.f32 %v6096_v21  ;;  %v5734_v41 = vld [vmem:[%s9370_s8 + $0x378] sm:$0xff] }
 0x134   : > { %v7383_v37 = vadd.f32 1.0, %v6098_v55  ;;  %v567_v51 = vpop.f32.mrf.mxu0  ;;  %vm7410_vm2 = vmor %vm942_vm13, %vm943_vm15 }
 0x135   : > { %v926_v53 = vadd.f32 %v6094_v12, %v925_v6  ;;  %v939_v5 = vsub.f32 1.0, %v938_v15  ;;  %v7389_v59 = vadd.f32 %v7164_v42, %v567_v51  ;;  %5601 = vmatmul.msk.f32.gmra.mxu0 %vm1082_vm1, %v1318_v0  ;;  %v1876_v6 = vld [vmem:[#allocation2 + $0x3] sm:$0xff] }
 0x136   : > { %6101 = vrcp.f32 %v7383_v37  ;;  %5657 = vmatmul.msk.f32.gmra.mxu3 %vm1082_vm1, %v2062_v13  ;;  %vm957_vm4 = vweird.f32 %v7383_v37 }
 0x137   : > { %v930_v9 = vsel %vm7377_vm14, %v6094_v12, %v926_v53  ;;  %v940_v31 = vmul.f32 %v6096_v21, %v939_v5  ;;  %v602_v47 = vmul.f32 -1.702, %v7389_v59  ;;  %v949_v12 = vor.u32 1.1754944e-38, %v948_v49  ;;  %2784 = vperm.xlu2 %6021, %v5736_v45   ;;  %2779 = vperm.xlu1 %6020, %v5735_v28   ;;  %v1887_v45 = vld [vmem:[#allocation2 + $0x5b] sm:$0xff] }
 0x138   : > { %v935_v14 = vsel %vm7361_vm12, %v934_v18, %v930_v9  ;;  %v1355_v63 = vld [vmem:[#allocation2 + $0x82] sm:$0xff]  ;;  %2774 = vperm.xlu0 %6019, %v5734_v41   ;;  %v2052_v5 = vmul.f32 %v6930_v60, %v1876_v6  ;;  %v2063_v9 = vmul.f32 %v7279_v43, %v1887_v45  ;;  %v963_v60 = vand.u32 2147483648, %v7383_v37  ;;  %v1877_v6 = vld [vmem:[#allocation2 + $0xb] sm:$0xff] }
 0x139   : > { %v1154_v55 = vld [vmem:[#allocation2 + $0x81] sm:$0xff]  ;;  %v1073_v13 = vmul.f32 %v935_v14, %v7216_v24  ;;  %v941_v0 = vadd.f32 %v6096_v21, %v940_v31  ;;  %v647_v46 = vmul.f32 1.442695, %v602_v47  ;;  %v6100_v33 = vpop.eup %6099  ;;  %v1531_v48 = vmul.f32 %v6808_v3, %v1355_v63  ;;  %v7426_v58 = vpop.permute.xlu2 %2349  ;;  %v5738_v14 = vld [vmem:[%s9370_s8 + $0x398] sm:$0xff] }
 0x13a   : > { %v1329_v18 = vmul.f32 %v6626_v61, %v1154_v55  ;;  %v7424_v24 = vadd.f32 1.0, %v6100_v33  ;;  %v7428_v51 = vpop.permute.xlu1 %2029  ;;  %v5739_v41 = vld [vmem:[%s9370_s8 + $0x3a0] sm:$0xff]  ;;  %v961_v43 = vand.u32 2147483647, %v7383_v37  ;;  %v964_v15 = vor.u32 1.1754944e-38, %v963_v60 }
 0x13b   : > { %1128 = vst.msk [vmem:[#allocation2 + $0x90] sm:$0xff] %vm1082_vm1, %v1073_v13  ;;  %v945_v49 = vsel %vm7410_vm2, %v6096_v21, %v941_v0  ;;  %6103 = vpow2.f32 %v647_v46  ;;  %5587 = vmatmul.msk.f32.gmra.mxu1 %vm1082_vm1, %v1531_v48  ;;  %v7435_v61 = vpop.permute.xlu0 %2024  ;;  %v1888_v55 = vld [vmem:[#allocation2 + $0x63] sm:$0xff]  ;;  %v2053_v0 = vmul.f32 %v7142_v25, %v1877_v6 }
 0x13c   : > { %v6102_v53 = vpop.eup %6101  ;;  %v950_v3 = vsel %vm7415_vm3, %v949_v12, %v945_v49  ;;  %5612 = vmatmul.msk.f32.gmra.mxu2 %vm1082_vm1, %v1329_v18  ;;  %v570_v21 = vpop.f32.mrf.mxu0  ;;  %6105 = vrcp.f32 %v7424_v24  ;;  %vm7467_vm7 = vcmp.eq.f32.partialorder %v961_v43, 8.507059e+37  ;;  %vm972_vm8 = vweird.f32 %v7424_v24  ;;  %v5740_v6 = vld [vmem:[%s9370_s8 + $0x3a8] sm:$0xff] }
 0x13d   : > { %v1074_v28 = vmul.f32 %v950_v3, %v7248_v4  ;;  %v953_v31 = vmul.f32 %v6102_v53, %v7383_v37  ;;  %v7443_v47 = vadd.f32 %v7164_v42, %v570_v21  ;;  %vm958_vm5 = vweird.f32 %v6102_v53  ;;  %5647 = vmatmul.msk.f32.vlgmr.msrb.gmra.mxu0 %vm1082_vm1, %v2052_v5 }
 0x13e   : > { %5658 = vmatmul.msk.f32.gmra.mxu3 %vm1082_vm1, %v2063_v9  ;;  %vm7461_vm6 = vmor %vm957_vm4, %vm958_vm5  ;;  %v2064_v9 = vmul.f32 %v7135_v8, %v1888_v55  ;;  %v5742_v8 = vld [vmem:[%s9370_s8 + $0x3b8] sm:$0xff] }
 0x13f   : > { %1129 = vst.msk [vmem:[#allocation2 + $0x98] sm:$0xff] %vm1082_vm1, %v1074_v28  ;;  %v954_v4 = vsub.f32 1.0, %v953_v31  ;;  %v603_v12 = vmul.f32 -1.702, %v7443_v47  ;;  %2799 = vperm.xlu2 %6021, %v5739_v41   ;;  %2794 = vperm.xlu1 %6020, %v5738_v14   ;;  %v978_v14 = vand.u32 2147483648, %v7424_v24 }
 0x140   : > { %2789 = vperm.xlu0 %6019, %v5737_v44   ;;  %v5741_v44 = vld [vmem:[%s9370_s8 + $0x3b0] sm:$0xff] }
 0x141   : > { %v6104_v63 = vpop.eup %6103  ;;  %v955_v13 = vmul.f32 %v6102_v53, %v954_v4  ;;  %v649_v33 = vmul.f32 1.442695, %v603_v12  ;;  %v7473_v21 = vpop.permute.xlu2 %2364 }
 0x142   : > { %v7465_v46 = vadd.f32 1.0, %v6104_v63  ;;  %v1356_v48 = vld [vmem:[#allocation2 + $0x8a] sm:$0xff]  ;;  %v6106_v49 = vpop.eup %6105  ;;  %v7475_v28 = vpop.permute.xlu1 %2044 }
 0x143   : > { %v1155_v18 = vld [vmem:[#allocation2 + $0x89] sm:$0xff]  ;;  %v956_v5 = vadd.f32 %v6102_v53, %v955_v13  ;;  %v1532_v45 = vmul.f32 %v6984_v38, %v1356_v48  ;;  %v968_v31 = vmul.f32 %v6106_v49, %v7424_v24  ;;  %v7481_v60 = vpop.permute.xlu0 %2039  ;;  %vm973_vm9 = vweird.f32 %v6106_v49 }
 0x144   : > { %v1330_v25 = vmul.f32 %v6561_v19, %v1155_v18  ;;  %6107 = vrcp.f32 %v7465_v46  ;;  %v573_v41 = vpop.f32.mrf.mxu0  ;;  %v976_v19 = vand.u32 2147483647, %v7424_v24  ;;  %vm7510_vm10 = vmor %vm972_vm8, %vm973_vm9  ;;  %v1878_v18 = vld [vmem:[#allocation2 + $0x13] sm:$0xff]  ;;  %vm987_vm12 = vweird.f32 %v7465_v46 }
 0x145   : > { %v960_v38 = vsel %vm7461_vm6, %v6102_v53, %v956_v5  ;;  %6109 = vpow2.f32 %v649_v33  ;;  %5588 = vmatmul.msk.f32.gmra.mxu1 %vm1082_vm1, %v1532_v45  ;;  %v969_v43 = vsub.f32 1.0, %v968_v31  ;;  %v7495_v53 = vadd.f32 %v7164_v42, %v573_v41  ;;  %5648 = vmatmul.msk.f32.gmra.mxu0 %vm1082_vm1, %v2053_v0  ;;  %v1889_v5 = vld [vmem:[#allocation2 + $0x6b] sm:$0xff] }
 0x146   : > { %5613 = vmatmul.msk.f32.gmra.mxu2 %vm1082_vm1, %v1330_v25  ;;  %v965_v4 = vsel %vm7467_vm7, %v964_v15, %v960_v38  ;;  %v1357_v12 = vld [vmem:[#allocation2 + $0x92] sm:$0xff]  ;;  %5659 = vmatmul.msk.f32.gmra.mxu3 %vm1082_vm1, %v2064_v9  ;;  %vm7516_vm11 = vcmp.eq.f32.partialorder %v976_v19, 8.507059e+37  ;;  %v2054_v9 = vmul.f32 %v7137_v7, %v1878_v18  ;;  %v2065_v31 = vmul.f32 %v7330_v26, %v1889_v5 }
 0x147   : > { %v1156_v63 = vld [vmem:[#allocation2 + $0x91] sm:$0xff]  ;;  %v1075_v55 = vmul.f32 %v965_v4, %v7291_v10  ;;  %v970_v13 = vmul.f32 %v6106_v49, %v969_v43  ;;  %v604_v37 = vmul.f32 -1.702, %v7495_v53  ;;  %v979_v10 = vor.u32 1.1754944e-38, %v978_v14  ;;  %2814 = vperm.xlu2 %6021, %v5742_v8   ;;  %2809 = vperm.xlu1 %6020, %v5741_v44  }
 0x148   : > { %v1533_v0 = vmul.f32 %v6979_v23, %v1357_v12  ;;  %v1331_v33 = vmul.f32 %v6659_v40, %v1156_v63  ;;  %2804 = vperm.xlu0 %6019, %v5740_v6   ;;  %v993_v19 = vand.u32 2147483648, %v7465_v46  ;;  %v991_v43 = vand.u32 2147483647, %v7465_v46  ;;  %v5745_v44 = vld [vmem:[%s9370_s8 + $0x3d0] sm:$0xff]  ;;  %v5744_v12 = vld [vmem:[%s9370_s8 + $0x3c8] sm:$0xff]  ;;  %v1891_v6 = vld [vmem:[#allocation2 + $0x7b] sm:$0xff] }
 0x149   : > { %1130 = vst.msk [vmem:[#allocation2 + $0xa0] sm:$0xff] %vm1082_vm1, %v1075_v55  ;;  %v971_v3 = vadd.f32 %v6106_v49, %v970_v13  ;;  %v651_v24 = vmul.f32 1.442695, %v604_v37  ;;  %v7524_v40 = vpop.permute.xlu2 %2379 }
 0x14a   : > { %v6108_v48 = vpop.eup %6107  ;;  %v7526_v23 = vpop.permute.xlu1 %2329  ;;  %v994_v13 = vor.u32 1.1754944e-38, %v993_v19  ;;  %vm7563_vm15 = vcmp.eq.f32.partialorder %v991_v43, 8.507059e+37  ;;  %v1890_v19 = vld [vmem:[#allocation2 + $0x73] sm:$0xff] }
 0x14b   : > { %v6110_v25 = vpop.eup %6109  ;;  %v983_v41 = vmul.f32 %v6108_v48, %v7465_v46  ;;  %v975_v38 = vsel %vm7510_vm10, %v6106_v49, %v971_v3  ;;  %6111 = vpow2.f32 %v651_v24  ;;  %v7533_v8 = vpop.permute.xlu0 %2324  ;;  %vm988_vm13 = vweird.f32 %v6108_v48  ;;  %v1879_v3 = vld [vmem:[#allocation2 + $0x1b] sm:$0xff] }
 0x14c   : > { %v7531_v14 = vadd.f32 1.0, %v6110_v25  ;;  %v576_v7 = vpop.f32.mrf.mxu0  ;;  %v980_v26 = vsel %vm7516_vm11, %v979_v10, %v975_v38  ;;  %vm7559_vm14 = vmor %vm987_vm12, %vm988_vm13  ;;  %v2055_v38 = vmul.f32 %v6977_v22, %v1879_v3  ;;  %v5746_v43 = vld [vmem:[%s9370_s8 + $0x3d8] sm:$0xff] }
 0x14d   : > { %v984_v4 = vsub.f32 1.0, %v983_v41  ;;  %5589 = vmatmul.msk.f32.gmra.mxu1 %vm1082_vm1, %v1533_v0  ;;  %v1076_v49 = vmul.f32 %v980_v26, %v7343_v35  ;;  %v7549_v55 = vadd.f32 %v7164_v42, %v576_v7  ;;  %5649 = vmatmul.msk.f32.gmra.mxu0 %vm1082_vm1, %v2054_v9  ;;  %v5743_v35 = vld [vmem:[%s9370_s8 + $0x3c0] sm:$0xff] }
 0x14e   : > { %5614 = vmatmul.msk.f32.gmra.mxu2 %vm1082_vm1, %v1331_v33  ;;  %6113 = vrcp.f32 %v7531_v14  ;;  %5660 = vmatmul.msk.f32.gmra.mxu3 %vm1082_vm1, %v2065_v31  ;;  %vm1002_vm2 = vweird.f32 %v7531_v14  ;;  %v1008_v22 = vand.u32 2147483648, %v7531_v14 }
 0x14f   : > { %v985_v63 = vmul.f32 %v6108_v48, %v984_v4  ;;  %1131 = vst.msk [vmem:[#allocation2 + $0xa8] sm:$0xff] %vm1082_vm1, %v1076_v49  ;;  %v605_v33 = vmul.f32 -1.702, %v7549_v55  ;;  %2829 = vperm.xlu2 %6021, %v5745_v44   ;;  %2824 = vperm.xlu1 %6020, %v5744_v12   ;;  %v1006_v44 = vand.u32 2147483647, %v7531_v14 }
 0x150   : > { %v1358_v37 = vld [vmem:[#allocation2 + $0x9a] sm:$0xff]  ;;  %2819 = vperm.xlu0 %6019, %v5743_v35   ;;  %v1009_v0 = vor.u32 1.1754944e-38, %v1008_v22 }
 0x151   : > { %v1157_v15 = vld [vmem:[#allocation2 + $0x99] sm:$0xff]  ;;  %v986_v10 = vadd.f32 %v6108_v48, %v985_v63  ;;  %v6112_v18 = vpop.eup %6111  ;;  %v1534_v46 = vmul.f32 %v6845_v39, %v1358_v37  ;;  %v653_v25 = vmul.f32 1.442695, %v605_v33  ;;  %v7574_v9 = vpop.permute.xlu2 %2394  ;;  %vm7616_vm5 = vcmp.eq.f32.partialorder %v1006_v44, 8.507059e+37 }
 0x152   : > { %v1332_v5 = vmul.f32 %v6656_v36, %v1157_v15  ;;  %v7572_v24 = vadd.f32 1.0, %v6112_v18  ;;  %v7576_v31 = vpop.permute.xlu1 %2344  ;;  %v2066_v36 = vmul.f32 %v7326_v56, %v1890_v19  ;;  %v5774_v56 = vld [vmem:[%s9370_s8 + $0x3e8] sm:$0xff]  ;;  %v5776_v22 = vld [vmem:[%s9370_s8 + $0x3f8] sm:$0xff] }
 0x153   : > { %v990_v45 = vsel %vm7559_vm14, %v6108_v48, %v986_v10  ;;  %v7581_v7 = vpop.permute.xlu0 %2339  ;;  %v1880_v18 = vld [vmem:[#allocation2 + $0x23] sm:$0xff] }
 0x154   : > { %v6114_v41 = vpop.eup %6113  ;;  %v995_v39 = vsel %vm7563_vm15, %v994_v13, %v990_v45  ;;  %6115 = vrcp.f32 %v7572_v24  ;;  %v579_v4 = vpop.f32.mrf.mxu0  ;;  %vm1017_vm6 = vweird.f32 %v7572_v24 }
 0x155   : > { %v1077_v48 = vmul.f32 %v995_v39, %v7389_v59  ;;  %v998_v26 = vmul.f32 %v6114_v41, %v7531_v14  ;;  %5590 = vmatmul.msk.f32.gmra.mxu1 %vm1082_vm1, %v1534_v46  ;;  %6117 = vpow2.f32 %v653_v25  ;;  %v5747_v59 = vld [vmem:[%s9370_s8 + $0x3e0] sm:$0x1f]  ;;  %vm1003_vm3 = vweird.f32 %v6114_v41  ;;  %5650 = vmatmul.msk.f32.gmra.mxu0 %vm1082_vm1, %v2055_v38 }
 0x156   : > { %5615 = vmatmul.msk.f32.gmra.mxu2 %vm1082_vm1, %v1332_v5  ;;  %v7603_v12 = vadd.f32 %v7164_v42, %v579_v4  ;;  %5661 = vmatmul.msk.f32.gmra.mxu3 %vm1082_vm1, %v2066_v36  ;;  %v1359_v63 = vld [vmem:[#allocation2 + $0xa2] sm:$0xff]  ;;  %vm7612_vm4 = vmor %vm1002_vm2, %vm1003_vm3  ;;  %v2067_v14 = vmul.f32 %v7187_v50, %v1891_v6  ;;  %v2056_v25 = vmul.f32 %v7194_v2, %v1880_v18  ;;  %v1023_v36 = vand.u32 2147483648, %v7572_v24 }
 0x157   : > { %1132 = vst.msk [vmem:[#allocation2 + $0xb0] sm:$0xff] %vm1082_vm1, %v1077_v48  ;;  %v999_v49 = vsub.f32 1.0, %v998_v26  ;;  %v1158_v35 = vld [vmem:[#allocation2 + $0xa1] sm:$0xff]  ;;  %3114 = vperm.xlu2 %6021, %v5774_v56   ;;  %2839 = vperm.xlu1 %6020, %v5747_v59   ;;  %v1535_v15 = vmul.f32 %v7040_v34, %v1359_v63 }
 0x158   : > { %v606_v37 = vmul.f32 -1.702, %v7603_v12  ;;  %v1333_v10 = vmul.f32 %v6582_v30, %v1158_v35  ;;  %2834 = vperm.xlu0 %6019, %v5746_v43   ;;  %v5777_v50 = vld [vmem:[%s9370_s8 + $0x400] sm:$0xff]  ;;  %v5775_v43 = vld [vmem:[%s9370_s8 + $0x3f0] sm:$0xff] }
 0x159   : > { %v1000_v13 = vmul.f32 %v6114_v41, %v999_v49  ;;  %v7620_v45 = vpop.permute.xlu2 %2409  ;;  %v1892_v6 = vld [vmem:[#allocation2 + $0x83] sm:$0xff] }
 0x15a   : > { %v6116_v33 = vpop.eup %6115  ;;  %v655_v3 = vmul.f32 1.442695, %v606_v37  ;;  %v7622_v34 = vpop.permute.xlu1 %2359 }
 0x15b   : > { %v1001_v46 = vadd.f32 %v6114_v41, %v1000_v13  ;;  %v6118_v30 = vpop.eup %6117  ;;  %v1013_v38 = vmul.f32 %v6116_v33, %v7572_v24  ;;  %v7628_v19 = vpop.permute.xlu0 %2354  ;;  %vm1018_vm7 = vweird.f32 %v6116_v33 }
 0x15c   : > { %v7633_v48 = vadd.f32 1.0, %v6118_v30  ;;  %6119 = vpow2.f32 %v655_v3  ;;  %vm7656_vm8 = vmor %vm1017_vm6, %vm1018_vm7 }
 0x15d   : > { %v1005_v39 = vsel %vm7612_vm4, %v6114_v41, %v1001_v46  ;;  %5591 = vmatmul.msk.f32.gmra.mxu1 %vm1082_vm1, %v1535_v15  ;;  %v1014_v26 = vsub.f32 1.0, %v1013_v38  ;;  %v1021_v41 = vand.u32 2147483647, %v7572_v24  ;;  %5651 = vmatmul.msk.f32.gmra.mxu0 %vm1082_vm1, %v2056_v25  ;;  %v1881_v24 = vld [vmem:[#allocation2 + $0x2b] sm:$0xff]  ;;  %v2068_v46 = vmul.f32 %v7386_v29, %v1892_v6 }
 0x15e   : > { %5616 = vmatmul.msk.f32.gmra.mxu2 %vm1082_vm1, %v1333_v10  ;;  %v1010_v2 = vsel %vm7616_vm5, %v1009_v0, %v1005_v39  ;;  %v1360_v4 = vld [vmem:[#allocation2 + $0xaa] sm:$0xff]  ;;  %6121 = vrcp.f32 %v7633_v48  ;;  %5662 = vmatmul.msk.f32.gmra.mxu3 %vm1082_vm1, %v2067_v14  ;;  %v1038_v29 = vand.u32 2147483648, %v7633_v48  ;;  %vm1032_vm10 = vweird.f32 %v7633_v48 }
 0x15f   : > { %v1159_v56 = vld [vmem:[#allocation2 + $0xa9] sm:$0xff]  ;;  %v1078_v59 = vmul.f32 %v1010_v2, %v7443_v47  ;;  %v1015_v49 = vmul.f32 %v6116_v33, %v1014_v26  ;;  %v1024_v47 = vor.u32 1.1754944e-38, %v1023_v36  ;;  %3129 = vperm.xlu2 %6021, %v5777_v50   ;;  %3124 = vperm.xlu1 %6020, %v5776_v22   ;;  %v1536_v63 = vmul.f32 %v7032_v52, %v1360_v4  ;;  %v5927_v4 = vld [vmem:[%s9370_s8 + $0x640] sm:$0xff] }
 0x160   : > { %v1334_v35 = vmul.f32 %v6696_v17, %v1159_v56  ;;  %vm1022_vm9 = vcmp.eq.f32.partialorder %v1021_v41, 8.507059e+37  ;;  %3119 = vperm.xlu0 %6019, %v5775_v43   ;;  %v2057_v17 = vmul.f32 %v7189_v62, %v1881_v24  ;;  %v5779_v62 = vld [vmem:[%s9370_s8 + $0x410] sm:$0xff]  ;;  %v1036_v38 = vand.u32 2147483647, %v7633_v48 }
 0x161   : > { %1133 = vst.msk [vmem:[#allocation2 + $0xb8] sm:$0xff] %vm1082_vm1, %v1078_v59  ;;  %v1016_v13 = vadd.f32 %v6116_v33, %v1015_v49  ;;  %v7662_v15 = vpop.permute.xlu2 %2424  ;;  %v1893_v2 = vld [vmem:[#allocation2 + $0x8b] sm:$0xff]  ;;  %v1039_v56 = vor.u32 1.1754944e-38, %v1038_v29  ;;  %vm1136_vm4 = vcmask 61440  }
 0x162   : > { %v6120_v37 = vpop.eup %6119  ;;  %v7664_v10 = vpop.permute.xlu1 %2374  ;;  %v9450_v41 = vld [vmem:[#allocation5_spill] sm:$0xff]  ;;  %vm1037_vm13 = vcmp.eq.f32.partialorder %v1036_v38, 8.507059e+37  ;;  %v9453_v29 = vld [vmem:[#allocation4_spill] sm:$0xff] }
 0x163   : > { %v1020_v42 = vsel %vm7656_vm8, %v6116_v33, %v1016_v13  ;;  %v7668_v0 = vadd.f32 1.0, %v6120_v37  ;;  %v7670_v18 = vpop.permute.xlu0 %2369  ;;  %v5780_v33 = vld [vmem:[%s9370_s8 + $0x418] sm:$0xff]  ;;  %v5783_v13 = vld [vmem:[%s9370_s8 + $0x430] sm:$0xff] }
 0x164   : > { %v6122_v52 = vpop.eup %6121  ;;  %v1025_v5 = vsel %vm1022_vm9, %v1024_v47, %v1020_v42  ;;  %v1894_v38 = vld [vmem:[#allocation2 + $0x93] sm:$0xff] }
 0x165   : > { %5592 = vmatmul.msk.f32.gmra.mxu1 %vm1082_vm1, %v1536_v63  ;;  %v1079_v3 = vmul.f32 %v1025_v5, %v7495_v53  ;;  %v1028_v30 = vmul.f32 %v6122_v52, %v7633_v48  ;;  %6123 = vrcp.f32 %v7668_v0  ;;  %v7686_v14 = vpop.f32.mrf.mxu1  ;;  %5652 = vmatmul.msk.f32.gmra.mxu0 %vm1082_vm1, %v2057_v17  ;;  %v5778_v53 = vld [vmem:[%s9370_s8 + $0x408] sm:$0xff]  ;;  %vm1033_vm11 = vweird.f32 %v6122_v52 }
 0x166   : > { %5617 = vmatmul.msk.f32.gmra.mxu2 %vm1082_vm1, %v1334_v35  ;;  %5663 = vmatmul.msk.f32.gmra.mxu3 %vm1082_vm1, %v2068_v46  ;;  %vm7698_vm12 = vmor %vm1032_vm10, %vm1033_vm11  ;;  %vm1047_vm14 = vweird.f32 %v7668_v0  ;;  %v1053_v35 = vand.u32 2147483648, %v7668_v0  ;;  %v1051_v42 = vand.u32 2147483647, %v7668_v0 }
 0x167   : > { %1134 = vst.msk [vmem:[#allocation2 + $0xc0] sm:$0xff] %vm1082_vm1, %v1079_v3  ;;  %v1029_v25 = vsub.f32 1.0, %v1028_v30  ;;  %3144 = vperm.xlu2 %6021, %v5780_v33   ;;  %3139 = vperm.xlu1 %6020, %v5779_v62   ;;  %v5952_v30 = vld [vmem:[%s9366_s4 + $0x40] sm:$0xff] }
 0x168   : > { %v1361_v39 = vld [vmem:[#allocation2 + $0xb2] sm:$0xff]  ;;  %3134 = vperm.xlu0 %6019, %v5778_v53   ;;  %4539 = vmatpush.msra.mxu2 %v5952_v30  ;;  %vm1052_vm3 = vcmp.eq.f32.partialorder %v1051_v42, 8.507059e+37  ;;  %v1896_v30 = vld [vmem:[#allocation2 + $0xa3] sm:$0xff] }
 0x169   : > { %v1160_v36 = vld [vmem:[#allocation2 + $0xb1] sm:$0xff]  ;;  %v1537_v50 = vmul.f32 %v6882_v1, %v1361_v39  ;;  %v1030_v26 = vmul.f32 %v6122_v52, %v1029_v25  ;;  %v7702_v59 = vpop.permute.xlu2 %2439  ;;  %v2069_v1 = vmul.f32 %v7372_v57, %v1893_v2  ;;  %v5782_v57 = vld [vmem:[%s9370_s8 + $0x428] sm:$0xff]  ;;  %v1054_v25 = vor.u32 1.1754944e-38, %v1053_v35 }
 0x16a   : > { %v1335_v22 = vmul.f32 %v9450_v41, %v1160_v36  ;;  %v7704_v43 = vpop.permute.xlu1 %2389 }
 0x16b   : > { %v6124_v48 = vpop.eup %6123  ;;  %v1031_v49 = vadd.f32 %v6122_v52, %v1030_v26  ;;  %v7706_v44 = vpop.permute.xlu0 %2384  ;;  %v5901_v26 = vld [vmem:[%s9366_s4 + $0x38] sm:$0xff] }
 0x16c   : > { %v1043_v47 = vmul.f32 %v6124_v48, %v7668_v0  ;;  %v7716_v6 = vpop.f32.mrf.mxu2  ;;  %vm1048_vm15 = vweird.f32 %v6124_v48  ;;  %v2070_v0 = vmul.f32 %v7238_v27, %v1894_v38  ;;  %4144 = vmatpush.msra.mxu1 %v5901_v26  ;;  %v5784_v27 = vld [vmem:[%s9370_s8 + $0x438] sm:$0xff]  ;;  %v5827_v38 = vld [vmem:[%s9370_s8 + $0x4c0] sm:$0xff]  ;;  %v1897_v26 = vld [vmem:[#allocation2 + $0xab] sm:$0xff] }
 0x16d   : > { %5593 = vmatmul.msk.f32.gmra.mxu1 %vm1082_vm1, %v1537_v50  ;;  %v1035_v63 = vsel %vm7698_vm12, %v6122_v52, %v1031_v49  ;;  %v5781_v52 = vld [vmem:[%s9370_s8 + $0x420] sm:$0xff]  ;;  %vm7741_vm2 = vmor %vm1047_vm14, %vm1048_vm15 }
 0x16e   : > { %5618 = vmatmul.msk.f32.gmra.mxu2 %vm1082_vm1, %v1335_v22  ;;  %v1040_v37 = vsel %vm1037_vm13, %v1039_v56, %v1035_v63  ;;  %v1044_v24 = vsub.f32 1.0, %v1043_v47  ;;  %5664 = vmatmul.msk.f32.gmra.mxu3 %vm1082_vm1, %v2069_v1  ;;  %v1362_v17 = vld [vmem:[#allocation2 + $0xba] sm:$0xff]  ;;  %v7730_v3 = vpop.f32.mrf.mxu1  ;;  %v5825_v22 = vld [vmem:[%s9370_s8 + $0x4b0] sm:$0xff]  ;;  %v1363_v1 = vld [vmem:[#allocation2 + $0xc2] sm:$0x1f] }
 0x16f   : > { %v1161_v46 = vld [vmem:[#allocation2 + $0xb9] sm:$0xff]  ;;  %v1080_v5 = vmul.f32 %v1040_v37, %v7549_v55  ;;  %3159 = vperm.xlu2 %6021, %v5783_v13   ;;  %3154 = vperm.xlu1 %6020, %v5782_v57   ;;  %v1538_v62 = vmul.f32 %v7097_v54, %v1362_v17  ;;  %v1162_v47 = vld [vmem:[#allocation2 + $0xc1] sm:$0x1f]  ;;  %v1539_v35 = vmul.f32 %v7088_v20, %v1363_v1  ;;  %v5928_v20 = vld [vmem:[%s9370_s8 + $0x648] sm:$0xff] }
 0x170   : > { %v1045_v33 = vmul.f32 %v6124_v48, %v1044_v24  ;;  %v1336_v53 = vmul.f32 %v9453_v29, %v1161_v46  ;;  %3149 = vperm.xlu0 %6019, %v5781_v52   ;;  %v1895_v63 = vld [vmem:[#allocation2 + $0x9b] sm:$0xff] }
 0x171   : > { %1135 = vst.msk [vmem:[#allocation2 + $0xc8] sm:$0xff] %vm1082_vm1, %v1080_v5  ;;  %v7745_v36 = vpop.permute.xlu2 %2724  ;;  %v2071_v42 = vmul.f32 %v7435_v61, %v1895_v63  ;;  %v5826_v52 = vld [vmem:[%s9370_s8 + $0x4b8] sm:$0xff]  ;;  %v5799_v5 = vld [vmem:[%s9366_s4 + $0x28] sm:$0xff] }
 0x172   : > { %v1046_v39 = vadd.f32 %v6124_v48, %v1045_v33  ;;  %v7747_v54 = vpop.permute.xlu1 %2404  ;;  %v5876_v61 = vld [vmem:[%s9370_s8 + $0x578] sm:$0xff]  ;;  %v2271_v33 = vld [vmem:[#allocation2 + $0xf] sm:$0xff]  ;;  %3354 = vmatpush.msrb.mxu3 %v5799_v5 }
 0x173   : > { %v7749_v50 = vpop.permute.xlu0 %2399  ;;  %v5828_v63 = vld [vmem:[%s9370_s8 + $0x4c8] sm:$0xff] }
 0x174   : > { %v1050_v2 = vsel %vm7741_vm2, %v6124_v48, %v1046_v39  ;;  %v5929_v39 = vld [vmem:[%s9370_s8 + $0x650] sm:$0xff] }
 0x175   : > { %5594 = vmatmul.msk.f32.gmra.mxu1 %vm1082_vm1, %v1538_v62  ;;  %v1055_v41 = vsel %vm1052_vm3, %v1054_v25, %v1050_v2  ;;  %v7766_v48 = vpop.f32.mrf.mxu2  ;;  %v2447_v62 = vmul.f32 %v7533_v8, %v2271_v33  ;;  %v2072_v25 = vmul.f32 %v7428_v51, %v1896_v30  ;;  %v5877_v8 = vld [vmem:[%s9370_s8 + $0x580] sm:$0xff]  ;;  %v2272_v51 = vld [vmem:[#allocation2 + $0x17] sm:$0xff] }
 0x176   : > { %5619 = vmatmul.msk.f32.gmra.mxu2 %vm1082_vm1, %v1336_v53  ;;  %v1081_v56 = vmul.f32 %v1055_v41, %v7603_v12  ;;  %5665 = vmatmul.msk.f32.gmra.mxu3 %vm1082_vm1, %v2070_v0  ;;  %v7772_v49 = vpop.f32.mrf.mxu1  ;;  %v9456_v12 = vld [vmem:[#allocation6_spill] sm:$0xff]  ;;  %v2448_v41 = vmul.f32 %v7526_v23, %v2272_v51 }
 0x177   : > { %3509 = vperm.xlu2 %6021, %v5825_v22   ;;  %4299 = vperm.xlu1 %6020, %v5927_v4   ;;  %v1337_v13 = vmul.f32 %v9456_v12, %v1162_v47  ;;  %v2073_v47 = vmul.f32 %v7277_v16, %v1897_v26  ;;  %v5878_v12 = vld [vmem:[%s9370_s8 + $0x588] sm:$0xff]  ;;  %v2273_v16 = vld [vmem:[#allocation2 + $0x1f] sm:$0xff] }
 0x178   : > { %1137 = vst.msk [vmem:[#allocation2 + $0xd0] sm:$0x1f] %vm1136_vm4, %v1081_v56  ;;  %3164 = vperm.xlu0 %6019, %v5784_v27   ;;  %v2666_v56 = vld [vmem:[#allocation2 + $0x10] sm:$0xff] }
 0x179   : > { %v7776_v57 = vpop.permute.xlu2 %2739 }
 0x17a   : > { %v7778_v37 = vpop.permute.xlu1 %2419 }
 0x17b   : > { %v7780_v24 = vpop.permute.xlu0 %2414 }
 0x17d   : > { %5595 = vmatmul.msk.f32.gmra.mxu1 %vm1082_vm1, %v1539_v35  ;;  %v7791_v17 = vpop.f32.mrf.mxu2  ;;  %v5930_v35 = vld [vmem:[%s9370_s8 + $0x658] sm:$0xff] }
 0x17e   : > { %5620 = vmatmul.msk.f32.gmra.mxu2 %vm1082_vm1, %v1337_v13  ;;  %5666 = vmatmul.msk.f32.gmra.mxu3 %vm1082_vm1, %v2071_v42  ;;  %v7797_v46 = vpop.f32.mrf.mxu1  ;;  %v1898_v42 = vld [vmem:[#allocation2 + $0xb3] sm:$0xff] }
 0x17f   : > { %3514 = vperm.xlu2 %6021, %v5826_v52   ;;  %4304 = vperm.xlu1 %6020, %v5928_v20   ;;  %v2449_v52 = vmul.f32 %v7370_v32, %v2273_v16  ;;  %v2074_v33 = vmul.f32 %v7481_v60, %v1898_v42  ;;  %v5879_v60 = vld [vmem:[%s9370_s8 + $0x590] sm:$0xff]  ;;  %v1900_v42 = vld [vmem:[#allocation2 + $0xc3] sm:$0x1f] }
 0x180   : > { %3904 = vperm.xlu0 %6019, %v5876_v61   ;;  %v2667_v61 = vld [vmem:[#allocation2 + $0x18] sm:$0xff] }
 0x181   : > { %v7803_v29 = vpop.permute.xlu2 %2754 }
 0x182   : > { %v7805_v53 = vpop.permute.xlu1 %2434 }
 0x183   : > { %v7807_v55 = vpop.permute.xlu0 %2429 }
 0x185   : > { %5698 = vmatmul.msk.f32.vlgmr.msrb.gmra.mxu1 %vm1082_vm1, %v2447_v62  ;;  %v7817_v2 = vpop.f32.mrf.mxu2  ;;  %v2843_v62 = vmul.f32 %v7745_v36, %v2667_v61 }
 0x186   : > { %5667 = vmatmul.msk.f32.gmra.mxu3 %vm1082_vm1, %v2072_v25  ;;  %v5829_v25 = vld [vmem:[%s9370_s8 + $0x4d0] sm:$0xff] }
 0x187   : > { %v7823_v0 = vpop.f32.mrf.mxu1  ;;  %3519 = vperm.xlu2 %6021, %v5827_v38   ;;  %4309 = vperm.xlu1 %6020, %v5929_v39   ;;  %v5931_v38 = vld [vmem:[%s9370_s8 + $0x660] sm:$0xff] }
 0x188   : > { %3909 = vperm.xlu0 %6019, %v5877_v8   ;;  %v2274_v39 = vld [vmem:[#allocation2 + $0x27] sm:$0xff]  ;;  %v1899_v8 = vld [vmem:[#allocation2 + $0xbb] sm:$0xff] }
 0x189   : > { %v7826_v22 = vpop.permute.xlu2 %2769  ;;  %v2450_v51 = vmul.f32 %v7581_v7, %v2274_v39 }
 0x18a   : > { %v2720_v4 = vpop.permute.xlu1 %2719 }
 0x18b   : > { %v7828_v27 = vpop.permute.xlu0 %2444  ;;  %v2842_v1 = vmul.f32 %v2720_v4, %v2666_v56 }
 0x18d   : > { %5699 = vmatmul.msk.f32.gmra.mxu1 %vm1082_vm1, %v2448_v41  ;;  %5749 = vmatmul.msk.f32.vlgmr.msrb.gmra.mxu2 %vm1082_vm1, %v2842_v1  ;;  %v2668_v41 = vld [vmem:[#allocation2 + $0x20] sm:$0xff] }
 0x18e   : > { %v7838_v23 = vpop.f32.mrf.mxu2  ;;  %5668 = vmatmul.msk.f32.gmra.mxu3 %vm1082_vm1, %v2073_v47  ;;  %v2075_v47 = vmul.f32 %v7475_v28, %v1899_v8  ;;  %v2275_v28 = vld [vmem:[#allocation2 + $0x2f] sm:$0xff] }
 0x18f   : > { %v7845_v13 = vpop.f32.mrf.mxu1  ;;  %3524 = vperm.xlu2 %6021, %v5828_v63   ;;  %4314 = vperm.xlu1 %6020, %v5930_v35   ;;  %v5830_v63 = vld [vmem:[%s9370_s8 + $0x4d8] sm:$0xff]  ;;  %v5932_v35 = vld [vmem:[%s9370_s8 + $0x668] sm:$0xff] }
 0x190   : > { %3914 = vperm.xlu0 %6019, %v5878_v12   ;;  %v5880_v12 = vld [vmem:[%s9370_s8 + $0x598] sm:$0xff] }
 0x191   : > { %v7848_v20 = vpop.permute.xlu2 %2784 }
 0x192   : > { %v2735_v5 = vpop.permute.xlu1 %2734 }
 0x193   : > { %v2730_v30 = vpop.permute.xlu0 %2729 }
 0x194   : > { %v2844_v1 = vmul.f32 %v2730_v30, %v2668_v41  ;;  %v2669_v30 = vld [vmem:[#allocation2 + $0x28] sm:$0xff] }
 0x195   : > { %5700 = vmatmul.msk.f32.gmra.mxu1 %vm1082_vm1, %v2449_v52  ;;  %5750 = vmatmul.msk.f32.gmra.mxu2 %vm1082_vm1, %v2843_v62  ;;  %v2451_v52 = vmul.f32 %v7576_v31, %v2275_v28  ;;  %v5933_v31 = vld [vmem:[%s9370_s8 + $0x670] sm:$0xff]  ;;  %v5785_v28 = vld [vmem:[%s9370_s8 + $0x440] sm:$0xff] }
 0x196   : > { %v7859_v32 = vpop.f32.mrf.mxu2  ;;  %5669 = vmatmul.msk.f32.gmra.mxu3 %vm1082_vm1, %v2074_v33 }
 0x197   : > { %v7866_v36 = vpop.f32.mrf.mxu1  ;;  %3529 = vperm.xlu2 %6021, %v5829_v25   ;;  %4319 = vperm.xlu1 %6020, %v5931_v38   ;;  %v2845_v25 = vmul.f32 %v2735_v5, %v2669_v30  ;;  %v2076_v38 = vmul.f32 %v7324_v11, %v1900_v42  ;;  %v5881_v5 = vld [vmem:[%s9370_s8 + $0x5a0] sm:$0xff]  ;;  %v2276_v11 = vld [vmem:[#allocation2 + $0x37] sm:$0xff]  ;;  %v5882_v42 = vld [vmem:[%s9370_s8 + $0x5a8] sm:$0xff] }
 0x198   : > { %3919 = vperm.xlu0 %6019, %v5879_v60   ;;  %v5831_v60 = vld [vmem:[%s9370_s8 + $0x4e0] sm:$0xff] }
 0x199   : > { %v7869_v26 = vpop.permute.xlu2 %2799 }
 0x19a   : > { %v7871_v4 = vpop.permute.xlu1 %2749 }
 0x19b   : > { %v2745_v56 = vpop.permute.xlu0 %2744 }
 0x19d   : > { %5701 = vmatmul.msk.f32.gmra.mxu1 %vm1082_vm1, %v2450_v51  ;;  %5751 = vmatmul.msk.f32.gmra.mxu2 %vm1082_vm1, %v2844_v1  ;;  %v2452_v51 = vmul.f32 %v7426_v58, %v2276_v11  ;;  %v2670_v1 = vld [vmem:[#allocation2 + $0x30] sm:$0xff] }
 0x19e   : > { %v7881_v7 = vpop.f32.mrf.mxu2  ;;  %5670 = vmatmul.msk.f32.gmra.mxu3 %vm1082_vm1, %v2075_v47 }
 0x19f   : > { %v7888_v16 = vpop.f32.mrf.mxu1  ;;  %3534 = vperm.xlu2 %6021, %v5830_v63   ;;  %4324 = vperm.xlu1 %6020, %v5932_v35   ;;  %v2846_v35 = vmul.f32 %v7776_v57, %v2670_v1  ;;  %v2277_v57 = vld [vmem:[#allocation2 + $0x3f] sm:$0xff]  ;;  %v5786_v1 = vld [vmem:[%s9370_s8 + $0x448] sm:$0xff] }
 0x1a0   : > { %9457 = vst [vmem:[#allocation5_spill] sm:$0xff] %v7888_v16  ;;  %3924 = vperm.xlu0 %6019, %v5880_v12   ;;  %v5934_v12 = vld [vmem:[%s9370_s8 + $0x678] sm:$0xff]  ;;  %v2453_v30 = vmul.f32 %v7628_v19, %v2277_v57  ;;  %v5883_v19 = vld [vmem:[%s9370_s8 + $0x5b0] sm:$0xff] }
 0x1a1   : > { %v7891_v61 = vpop.permute.xlu2 %2814 }
 0x1a2   : > { %v7893_v33 = vpop.permute.xlu1 %2764 }
 0x1a3   : > { %v7895_v62 = vpop.permute.xlu0 %2759 }
 0x1a5   : > { %5702 = vmatmul.msk.f32.gmra.mxu1 %vm1082_vm1, %v2451_v52  ;;  %5752 = vmatmul.msk.f32.gmra.mxu2 %vm1082_vm1, %v2845_v25 }
 0x1a6   : > { %v7905_v39 = vpop.f32.mrf.mxu2  ;;  %5671 = vmatmul.msk.f32.gmra.mxu3 %vm1082_vm1, %v2076_v38  ;;  %v3061_v38 = vld [vmem:[#allocation2 + $0x11] sm:$0xff] }
 0x1a7   : > { %9458 = vst [vmem:[#allocation4_spill] sm:$0xff] %v7905_v39  ;;  %v7912_v8 = vpop.f32.mrf.mxu1  ;;  %3539 = vperm.xlu2 %6021, %v5831_v60   ;;  %4329 = vperm.xlu1 %6020, %v5933_v31   ;;  %v2671_v60 = vld [vmem:[#allocation2 + $0x38] sm:$0xff]  ;;  %v8031_v39 = vpop.f32.mrf.mxu3 }
 0x1a8   : > { %9459 = vst [vmem:[#allocation6_spill] sm:$0xff] %v7912_v8  ;;  %3929 = vperm.xlu0 %6019, %v5881_v5   ;;  %v3062_v8 = vld [vmem:[#allocation2 + $0x19] sm:$0xff] }
 0x1a9   : > { %v7915_v41 = vpop.permute.xlu2 %2829 }
 0x1aa   : > { %v7917_v47 = vpop.permute.xlu1 %2779 }
 0x1ab   : > { %v7919_v63 = vpop.permute.xlu0 %2774 }
 0x1ad   : > { %5703 = vmatmul.msk.f32.gmra.mxu1 %vm1082_vm1, %v2452_v51  ;;  %5753 = vmatmul.msk.f32.gmra.mxu2 %vm1082_vm1, %v2846_v35  ;;  %v2847_v51 = vmul.f32 %v2745_v56, %v2671_v60  ;;  %v5832_v56 = vld [vmem:[%s9370_s8 + $0x4e8] sm:$0xff] }
 0x1ae   : > { %v7929_v58 = vpop.f32.mrf.mxu2 }
 0x1af   : > { %9460 = vst [vmem:[#allocation7_spill] sm:$0xff] %v7929_v58  ;;  %v7935_v52 = vpop.f32.mrf.mxu1  ;;  %4334 = vperm.xlu2 %6021, %v5934_v12   ;;  %3169 = vperm.xlu1 %6020, %v5785_v28   ;;  %v5850_v28 = vld [vmem:[%s9366_s4 + $0x30] sm:$0xff] }
 0x1b0   : > { %9461 = vst [vmem:[#allocation8_spill] sm:$0xff] %v7935_v52  ;;  %3934 = vperm.xlu0 %6019, %v5882_v42   ;;  %v2278_v42 = vld [vmem:[#allocation2 + $0x47] sm:$0xff]  ;;  %3749 = vmatpush.msra.mxu0 %v5850_v28 }
 0x1b1   : > { %v3115_v25 = vpop.permute.xlu2 %3114  ;;  %v2454_v57 = vmul.f32 %v7622_v34, %v2278_v42 }
 0x1b2   : > { %v3237_v31 = vmul.f32 %v3115_v25, %v3061_v38  ;;  %v7938_v5 = vpop.permute.xlu1 %2794  ;;  %v2672_v25 = vld [vmem:[#allocation2 + $0x40] sm:$0xff] }
 0x1b3   : > { %v7940_v11 = vpop.permute.xlu0 %2789 }
 0x1b4   : > { %5800 = vmatmul.msk.f32.vlgmr.msrb.gmra.mxu3 %vm1082_vm1, %v3237_v31  ;;  %v2848_v31 = vmul.f32 %v7871_v4, %v2672_v25  ;;  %v2279_v4 = vld [vmem:[#allocation2 + $0x4f] sm:$0xff] }
 0x1b5   : > { %5704 = vmatmul.msk.f32.gmra.mxu1 %vm1082_vm1, %v2453_v30  ;;  %5754 = vmatmul.msk.f32.gmra.mxu2 %vm1082_vm1, %v2847_v51  ;;  %v5884_v51 = vld [vmem:[%s9370_s8 + $0x5b8] sm:$0xff]  ;;  %v2455_v28 = vmul.f32 %v7473_v21, %v2279_v4  ;;  %v5787_v21 = vld [vmem:[%s9370_s8 + $0x450] sm:$0xff] }
 0x1b6   : > { %v7950_v35 = vpop.f32.mrf.mxu2 }
 0x1b7   : > { %9462 = vst [vmem:[#allocation9_spill] sm:$0xff] %v7950_v35  ;;  %3174 = vperm.xlu2 %6021, %v5786_v1   ;;  %3939 = vperm.xlu1 %6020, %v5883_v19   ;;  %v5833_v1 = vld [vmem:[%s9370_s8 + $0x4f0] sm:$0xff]  ;;  %v5935_v19 = vld [vmem:[%s9370_s8 + $0x680] sm:$0xff] }
 0x1b8   : > { %v7956_v12 = vpop.f32.mrf.mxu1  ;;  %3544 = vperm.xlu0 %6019, %v5832_v56  }
 0x1b9   : > { %9463 = vst [vmem:[#allocation10_spill] sm:$0xff] %v7956_v12  ;;  %v7962_v30 = vpop.permute.xlu2 %3129 }
 0x1ba   : > { %v7964_v38 = vpop.permute.xlu1 %2809 }
 0x1bb   : > { %v7966_v60 = vpop.permute.xlu0 %2804 }
 0x1bd   : > { %5705 = vmatmul.msk.f32.gmra.mxu1 %vm1082_vm1, %v2454_v57  ;;  %5755 = vmatmul.msk.f32.gmra.mxu2 %vm1082_vm1, %v2848_v31  ;;  %v2673_v57 = vld [vmem:[#allocation2 + $0x48] sm:$0xff] }
 0x1be   : > { %v2849_v31 = vmul.f32 %v7803_v29, %v2673_v57  ;;  %v2280_v29 = vld [vmem:[#allocation2 + $0x57] sm:$0xff] }
 0x1bf   : > { %v7976_v34 = vpop.f32.mrf.mxu2  ;;  %3944 = vperm.xlu2 %6021, %v5884_v51   ;;  %3549 = vperm.xlu1 %6020, %v5833_v1   ;;  %v5834_v51 = vld [vmem:[%s9370_s8 + $0x4f8] sm:$0xff]  ;;  %v5936_v1 = vld [vmem:[%s9370_s8 + $0x688] sm:$0xff] }
 0x1c0   : > { %9464 = vst [vmem:[#allocation11_spill] sm:$0xff] %v7976_v34  ;;  %4339 = vperm.xlu0 %6019, %v5935_v19  }
 0x1c1   : > { %v7985_v42 = vpop.permute.xlu2 %3144 }
 0x1c2   : > { %v7982_v56 = vpop.f32.mrf.mxu1  ;;  %v7987_v25 = vpop.permute.xlu1 %2824 }
 0x1c3   : > { %9465 = vst [vmem:[#allocation12_spill] sm:$0xff] %v7982_v56  ;;  %v7989_v34 = vpop.permute.xlu0 %2819  ;;  %v2674_v56 = vld [vmem:[#allocation2 + $0x50] sm:$0xff] }
 0x1c4   : > { %v2850_v35 = vmul.f32 %v7895_v62, %v2674_v56  ;;  %v2281_v62 = vld [vmem:[#allocation2 + $0x5f] sm:$0xff] }
 0x1c5   : > { %5706 = vmatmul.msk.f32.gmra.mxu1 %vm1082_vm1, %v2455_v28  ;;  %5756 = vmatmul.msk.f32.gmra.mxu2 %vm1082_vm1, %v2849_v31  ;;  %v2456_v28 = vmul.f32 %v7670_v18, %v2280_v29  ;;  %v5885_v18 = vld [vmem:[%s9370_s8 + $0x5c0] sm:$0xff]  ;;  %v2457_v29 = vmul.f32 %v7664_v10, %v2281_v62 }
 0x1c6   : > { %v5789_v10 = vld [vmem:[%s9370_s8 + $0x460] sm:$0xff] }
 0x1c7   : > { %3554 = vperm.xlu2 %6021, %v5834_v51   ;;  %4344 = vperm.xlu1 %6020, %v5936_v1   ;;  %v5937_v51 = vld [vmem:[%s9370_s8 + $0x690] sm:$0xff]  ;;  %v5788_v1 = vld [vmem:[%s9370_s8 + $0x458] sm:$0xff]  ;;  %v3457_v62 = vld [vmem:[#allocation2 + $0x25] sm:$0xff] }
 0x1c8   : > { %3179 = vperm.xlu0 %6019, %v5787_v21  }
 0x1c9   : > { %v8003_v19 = vpop.f32.mrf.mxu2  ;;  %v8008_v57 = vpop.permute.xlu2 %3159 }
 0x1ca   : > { %9466 = vst [vmem:[#allocation13_spill] sm:$0xff] %v8003_v19  ;;  %v8005_v4 = vpop.f32.mrf.mxu1  ;;  %v8010_v12 = vpop.permute.xlu1 %2839  ;;  %v2675_v19 = vld [vmem:[#allocation2 + $0x58] sm:$0xff] }
 0x1cb   : > { %9467 = vst [vmem:[#allocation14_spill] sm:$0xff] %v8005_v4  ;;  %v8012_v31 = vpop.permute.xlu0 %2834  ;;  %v3456_v4 = vld [vmem:[#allocation2 + $0x1d] sm:$0xff]  ;;  %v2851_v16 = vmul.f32 %v7893_v33, %v2675_v19 }
 0x1cc   : > { %v5835_v33 = vld [vmem:[%s9370_s8 + $0x500] sm:$0xff] }
 0x1cd   : > { %5707 = vmatmul.msk.f32.gmra.mxu1 %vm1082_vm1, %v2456_v28  ;;  %5757 = vmatmul.msk.f32.gmra.mxu2 %vm1082_vm1, %v2850_v35 }
 0x1cf   : > { %4349 = vperm.xlu2 %6021, %v5937_v51   ;;  %3184 = vperm.xlu1 %6020, %v5788_v1  }
 0x1d0   : > { %3949 = vperm.xlu0 %6019, %v5885_v18  }
 0x1d1   : > { %v8026_v21 = vpop.f32.mrf.mxu2  ;;  %v3510_v28 = vpop.permute.xlu2 %3509 }
 0x1d2   : > { %9468 = vst [vmem:[#allocation15_spill] sm:$0xff] %v8026_v21  ;;  %v8028_v56 = vpop.f32.mrf.mxu1  ;;  %v3632_v52 = vmul.f32 %v3510_v28, %v3456_v4  ;;  %v3125_v58 = vpop.permute.xlu1 %3124  ;;  %v5886_v4 = vld [vmem:[%s9370_s8 + $0x5c8] sm:$0xff] }
 0x1d3   : > { %9469 = vst [vmem:[#allocation16_spill] sm:$0xff] %v8028_v56  ;;  %v3120_v35 = vpop.permute.xlu0 %3119  ;;  %v8055_v21 = vpop.f32.mrf.mxu3 }
 0x1d4   : > { %v3238_v51 = vmul.f32 %v3120_v35, %v3062_v8  ;;  %5851 = vmatmul.msk.f32.vlgmr.msra.gmra.mxu0 %vm1082_vm1, %v3632_v52  ;;  %v2282_v8 = vld [vmem:[#allocation2 + $0x67] sm:$0xff] }
 0x1d5   : > { %5708 = vmatmul.msk.f32.gmra.mxu1 %vm1082_vm1, %v2457_v29  ;;  %5758 = vmatmul.msk.f32.gmra.mxu2 %vm1082_vm1, %v2851_v16  ;;  %v2458_v1 = vmul.f32 %v7524_v40, %v2282_v8  ;;  %v2676_v29 = vld [vmem:[#allocation2 + $0x60] sm:$0xff]  ;;  %v5887_v40 = vld [vmem:[%s9370_s8 + $0x5d0] sm:$0xff] }
 0x1d6   : > { %5801 = vmatmul.msk.f32.gmra.mxu3 %vm1082_vm1, %v3238_v51  ;;  %v3063_v16 = vld [vmem:[#allocation2 + $0x21] sm:$0xff]  ;;  %v2852_v56 = vmul.f32 %v7826_v22, %v2676_v29  ;;  %v5938_v22 = vld [vmem:[%s9370_s8 + $0x698] sm:$0xff] }
 0x1d7   : > { %3189 = vperm.xlu2 %6021, %v5789_v10   ;;  %3954 = vperm.xlu1 %6020, %v5886_v4   ;;  %v3239_v10 = vmul.f32 %v3125_v58, %v3063_v16  ;;  %v5836_v4 = vld [vmem:[%s9370_s8 + $0x508] sm:$0xff] }
 0x1d8   : > { %3559 = vperm.xlu0 %6019, %v5835_v33   ;;  %v2283_v58 = vld [vmem:[#allocation2 + $0x6f] sm:$0xff] }
 0x1d9   : > { %v8047_v19 = vpop.f32.mrf.mxu2  ;;  %v3515_v18 = vpop.permute.xlu2 %3514  ;;  %v2459_v8 = vmul.f32 %v7706_v44, %v2283_v58  ;;  %v2677_v29 = vld [vmem:[#allocation2 + $0x68] sm:$0xff]  ;;  %v5837_v44 = vld [vmem:[%s9370_s8 + $0x510] sm:$0xff] }
 0x1da   : > { %9470 = vst [vmem:[#allocation17_spill] sm:$0xff] %v8047_v19  ;;  %v8049_v52 = vpop.f32.mrf.mxu1  ;;  %v3633_v28 = vmul.f32 %v3515_v18, %v3457_v62  ;;  %v8052_v35 = vpop.permute.xlu1 %3139  ;;  %v3458_v62 = vld [vmem:[#allocation2 + $0x2d] sm:$0xff] }
 0x1db   : > { %9471 = vst [vmem:[#allocation18_spill] sm:$0xff] %v8049_v52  ;;  %v3135_v51 = vpop.permute.xlu0 %3134  ;;  %v8089_v58 = vpop.f32.mrf.mxu3 }
 0x1dc   : > { %5852 = vmatmul.msk.f32.gmra.mxu0 %vm1082_vm1, %v3633_v28 }
 0x1dd   : > { %5709 = vmatmul.msk.f32.gmra.mxu1 %vm1082_vm1, %v2458_v1  ;;  %5759 = vmatmul.msk.f32.gmra.mxu2 %vm1082_vm1, %v2852_v56 }
 0x1de   : > { %5802 = vmatmul.msk.f32.gmra.mxu3 %vm1082_vm1, %v3239_v10  ;;  %v2853_v10 = vmul.f32 %v7919_v63, %v2677_v29  ;;  %v5790_v63 = vld [vmem:[%s9370_s8 + $0x468] sm:$0xff]  ;;  %v3459_v29 = vld [vmem:[#allocation2 + $0x35] sm:$0xff] }
 0x1df   : > { %3959 = vperm.xlu2 %6021, %v5887_v40   ;;  %3564 = vperm.xlu1 %6020, %v5836_v4   ;;  %v6226_v40 = vld [vmem:[#allocation2 + $0x29] sm:$0xff] }
 0x1e0   : > { %4354 = vperm.xlu0 %6019, %v5938_v22   ;;  %v3240_v4 = vmul.f32 %v6226_v40, %v7962_v30  ;;  %v5939_v22 = vld [vmem:[%s9370_s8 + $0x6a0] sm:$0xff]  ;;  %v2284_v30 = vld [vmem:[#allocation2 + $0x77] sm:$0xff] }
 0x1e1   : > { %v8073_v1 = vpop.f32.mrf.mxu2  ;;  %v3520_v18 = vpop.permute.xlu2 %3519  ;;  %v3065_v40 = vld [vmem:[#allocation2 + $0x31] sm:$0xff] }
 0x1e2   : > { %v8070_v33 = vpop.f32.mrf.mxu1  ;;  %9473 = vst [vmem:[#allocation20_spill] sm:$0xff] %v8073_v1  ;;  %v3634_v56 = vmul.f32 %v3520_v18, %v3458_v62  ;;  %v8075_v16 = vpop.permute.xlu1 %3154  ;;  %v2460_v18 = vmul.f32 %v7704_v43, %v2284_v30  ;;  %v3241_v52 = vmul.f32 %v3135_v51, %v3065_v40  ;;  %v5940_v43 = vld [vmem:[%s9370_s8 + $0x6a8] sm:$0xff] }
 0x1e3   : > { %9472 = vst [vmem:[#allocation19_spill] sm:$0xff] %v8070_v33  ;;  %v8077_v28 = vpop.permute.xlu0 %3149  ;;  %v8119_v51 = vpop.f32.mrf.mxu3 }
 0x1e4   : > { %5853 = vmatmul.msk.f32.gmra.mxu0 %vm1082_vm1, %v3634_v56  ;;  %v2678_v56 = vld [vmem:[#allocation2 + $0x70] sm:$0xff] }
 0x1e5   : > { %5710 = vmatmul.msk.f32.gmra.mxu1 %vm1082_vm1, %v2459_v8  ;;  %5760 = vmatmul.msk.f32.gmra.mxu2 %vm1082_vm1, %v2853_v10  ;;  %v2854_v1 = vmul.f32 %v7917_v47, %v2678_v56  ;;  %v5888_v47 = vld [vmem:[%s9370_s8 + $0x5d8] sm:$0xff] }
 0x1e6   : > { %5803 = vmatmul.msk.f32.gmra.mxu3 %vm1082_vm1, %v3240_v4 }
 0x1e7   : > { %3569 = vperm.xlu2 %6021, %v5837_v44   ;;  %4359 = vperm.xlu1 %6020, %v5939_v22   ;;  %v5791_v22 = vld [vmem:[%s9370_s8 + $0x470] sm:$0xff] }
 0x1e8   : > { %3194 = vperm.xlu0 %6019, %v5790_v63  }
 0x1e9   : > { %v3525_v62 = vpop.permute.xlu2 %3524  ;;  %v8104_v44 = vpop.f32.mrf.mxu2 }
 0x1ea   : > { %v8096_v8 = vpop.f32.mrf.mxu1  ;;  %v3635_v33 = vmul.f32 %v3525_v62, %v3459_v29  ;;  %v8099_v10 = vpop.permute.xlu1 %4299  ;;  %9475 = vst [vmem:[#allocation22_spill] sm:$0xff] %v8104_v44  ;;  %v3460_v62 = vld [vmem:[#allocation2 + $0x3d] sm:$0xff]  ;;  %v3463_v44 = vld [vmem:[#allocation2 + $0x55] sm:$0xff] }
 0x1eb   : > { %9474 = vst [vmem:[#allocation21_spill] sm:$0xff] %v8096_v8  ;;  %v8101_v4 = vpop.permute.xlu0 %3164  ;;  %v2679_v29 = vld [vmem:[#allocation2 + $0x78] sm:$0xff] }
 0x1ec   : > { %5854 = vmatmul.msk.f32.gmra.mxu0 %vm1082_vm1, %v3635_v33  ;;  %v2285_v33 = vld [vmem:[#allocation2 + $0x7f] sm:$0xff]  ;;  %v2855_v8 = vmul.f32 %v7848_v20, %v2679_v29 }
 0x1ed   : > { %5711 = vmatmul.msk.f32.gmra.mxu1 %vm1082_vm1, %v2460_v18  ;;  %5761 = vmatmul.msk.f32.gmra.mxu2 %vm1082_vm1, %v2854_v1  ;;  %v2461_v30 = vmul.f32 %v7574_v9, %v2285_v33  ;;  %v3066_v1 = vld [vmem:[#allocation2 + $0x39] sm:$0xff]  ;;  %v2286_v33 = vld [vmem:[#allocation2 + $0x87] sm:$0xff] }
 0x1ee   : > { %5804 = vmatmul.msk.f32.gmra.mxu3 %vm1082_vm1, %v3241_v52  ;;  %v5792_v9 = vld [vmem:[%s9370_s8 + $0x478] sm:$0xff] }
 0x1ef   : > { %4364 = vperm.xlu2 %6021, %v5940_v43   ;;  %3199 = vperm.xlu1 %6020, %v5791_v22   ;;  %v3242_v43 = vmul.f32 %v8052_v35, %v3066_v1  ;;  %v5889_v22 = vld [vmem:[%s9370_s8 + $0x5e0] sm:$0xff]  ;;  %v5838_v20 = vld [vmem:[%s9370_s8 + $0x518] sm:$0xff]  ;;  %v8145_v35 = vpop.f32.mrf.mxu0 }
 0x1f0   : > { %3964 = vperm.xlu0 %6019, %v5888_v47   ;;  %9478 = vst [vmem:[#allocation25_spill] sm:$0xff] %v8145_v35  ;;  %v2680_v1 = vld [vmem:[#allocation2 + $0x80] sm:$0xff] }
 0x1f1   : > { %v3530_v18 = vpop.permute.xlu2 %3529  ;;  %v8138_v47 = vpop.f32.mrf.mxu2 }
 0x1f2   : > { %v8121_v63 = vpop.f32.mrf.mxu1  ;;  %v3636_v56 = vmul.f32 %v3530_v18, %v3460_v62  ;;  %v8124_v52 = vpop.permute.xlu1 %4304  ;;  %9477 = vst [vmem:[#allocation24_spill] sm:$0xff] %v8138_v47  ;;  %v2462_v18 = vmul.f32 %v7749_v50, %v2286_v33  ;;  %v5890_v50 = vld [vmem:[%s9370_s8 + $0x5e8] sm:$0xff] }
 0x1f3   : > { %9476 = vst [vmem:[#allocation23_spill] sm:$0xff] %v8121_v63  ;;  %v8126_v40 = vpop.permute.xlu0 %3904  ;;  %v8150_v62 = vpop.f32.mrf.mxu3  ;;  %v2287_v33 = vld [vmem:[#allocation2 + $0x8f] sm:$0xff] }
 0x1f4   : > { %5855 = vmatmul.msk.f32.gmra.mxu0 %vm1082_vm1, %v3636_v56  ;;  %v3067_v56 = vld [vmem:[#allocation2 + $0x41] sm:$0xff] }
 0x1f5   : > { %5712 = vmatmul.msk.f32.gmra.mxu1 %vm1082_vm1, %v2461_v30  ;;  %5762 = vmatmul.msk.f32.gmra.mxu2 %vm1082_vm1, %v2855_v8  ;;  %v3461_v8 = vld [vmem:[#allocation2 + $0x45] sm:$0xff] }
 0x1f6   : > { %5805 = vmatmul.msk.f32.gmra.mxu3 %vm1082_vm1, %v3242_v43 }
 0x1f7   : > { %3204 = vperm.xlu2 %6021, %v5792_v9   ;;  %3969 = vperm.xlu1 %6020, %v5889_v22   ;;  %v2856_v9 = vmul.f32 %v7940_v11, %v2680_v1  ;;  %v3243_v22 = vmul.f32 %v7985_v42, %v3067_v56  ;;  %v5941_v11 = vld [vmem:[%s9370_s8 + $0x6b0] sm:$0xff] }
 0x1f8   : > { %3574 = vperm.xlu0 %6019, %v5838_v20   ;;  %v5839_v20 = vld [vmem:[%s9370_s8 + $0x520] sm:$0xff]  ;;  %v3462_v56 = vld [vmem:[#allocation2 + $0x4d] sm:$0xff] }
 0x1f9   : > { %v3535_v29 = vpop.permute.xlu2 %3534  ;;  %v8171_v42 = vpop.f32.mrf.mxu2 }
 0x1fa   : > { %v8147_v30 = vpop.f32.mrf.mxu1  ;;  %v3637_v43 = vmul.f32 %v3535_v29, %v3461_v8  ;;  %v8152_v63 = vpop.permute.xlu1 %4309  ;;  %9480 = vst [vmem:[#allocation27_spill] sm:$0xff] %v8171_v42  ;;  %v2463_v8 = vmul.f32 %v7747_v54, %v2287_v33  ;;  %v5840_v54 = vld [vmem:[%s9370_s8 + $0x528] sm:$0xff]  ;;  %v5942_v33 = vld [vmem:[%s9370_s8 + $0x6b8] sm:$0xff] }
 0x1fb   : > { %9479 = vst [vmem:[#allocation26_spill] sm:$0xff] %v8147_v30  ;;  %v8154_v47 = vpop.permute.xlu0 %3909  ;;  %v8175_v29 = vpop.f32.mrf.mxu0 }
 0x1fc   : > { %5856 = vmatmul.msk.f32.gmra.mxu0 %vm1082_vm1, %v3637_v43  ;;  %9482 = vst [vmem:[#allocation29_spill] sm:$0xff] %v8175_v29  ;;  %v2681_v43 = vld [vmem:[#allocation2 + $0x88] sm:$0xff] }
 0x1fd   : > { %5713 = vmatmul.msk.f32.gmra.mxu1 %vm1082_vm1, %v2462_v18  ;;  %5763 = vmatmul.msk.f32.gmra.mxu2 %vm1082_vm1, %v2856_v9  ;;  %v3068_v9 = vld [vmem:[#allocation2 + $0x49] sm:$0xff] }
 0x1fe   : > { %5806 = vmatmul.msk.f32.gmra.mxu3 %vm1082_vm1, %v3243_v22 }
 0x1ff   : > { %3974 = vperm.xlu2 %6021, %v5890_v50   ;;  %3579 = vperm.xlu1 %6020, %v5839_v20   ;;  %v2857_v50 = vmul.f32 %v7938_v5, %v2681_v43  ;;  %v3244_v20 = vmul.f32 %v8077_v28, %v3068_v9  ;;  %v5793_v5 = vld [vmem:[%s9370_s8 + $0x480] sm:$0xff]  ;;  %v2288_v28 = vld [vmem:[#allocation2 + $0x97] sm:$0xff] }
 0x200   : > { %4369 = vperm.xlu0 %6019, %v5941_v11   ;;  %v8185_v11 = vpop.f32.mrf.mxu3  ;;  %v2682_v9 = vld [vmem:[#allocation2 + $0x90] sm:$0xff] }
 0x201   : > { %v3540_v1 = vpop.permute.xlu2 %3539  ;;  %v2858_v29 = vmul.f32 %v7869_v26, %v2682_v9  ;;  %v5891_v26 = vld [vmem:[%s9370_s8 + $0x5f0] sm:$0xff] }
 0x202   : > { %v8173_v18 = vpop.f32.mrf.mxu1  ;;  %v3638_v22 = vmul.f32 %v3540_v1, %v3462_v56  ;;  %v8178_v30 = vpop.permute.xlu1 %4314  ;;  %v2464_v1 = vmul.f32 %v7620_v45, %v2288_v28  ;;  %v5943_v45 = vld [vmem:[%s9370_s8 + $0x6c0] sm:$0xff] }
 0x203   : > { %9481 = vst [vmem:[#allocation28_spill] sm:$0xff] %v8173_v18  ;;  %v8180_v35 = vpop.permute.xlu0 %3914  ;;  %v8202_v56 = vpop.f32.mrf.mxu2  ;;  %v2289_v28 = vld [vmem:[#allocation2 + $0x9f] sm:$0xff] }
 0x204   : > { %5857 = vmatmul.msk.f32.gmra.mxu0 %vm1082_vm1, %v3638_v22  ;;  %9484 = vst [vmem:[#allocation31_spill] sm:$0xff] %v8202_v56  ;;  %v3069_v22 = vld [vmem:[#allocation2 + $0x51] sm:$0xff]  ;;  %v2465_v9 = vmul.f32 %v7780_v24, %v2289_v28 }
 0x205   : > { %5714 = vmatmul.msk.f32.gmra.mxu1 %vm1082_vm1, %v2463_v8  ;;  %5764 = vmatmul.msk.f32.gmra.mxu2 %vm1082_vm1, %v2857_v50  ;;  %v5795_v24 = vld [vmem:[%s9370_s8 + $0x490] sm:$0xff] }
 0x206   : > { %5807 = vmatmul.msk.f32.gmra.mxu3 %vm1082_vm1, %v3244_v20 }
 0x207   : > { %3584 = vperm.xlu2 %6021, %v5840_v54   ;;  %4374 = vperm.xlu1 %6020, %v5942_v33   ;;  %v3245_v54 = vmul.f32 %v8075_v16, %v3069_v22  ;;  %v8213_v33 = vpop.f32.mrf.mxu0 }
 0x208   : > { %3209 = vperm.xlu0 %6019, %v5793_v5   ;;  %9485 = vst [vmem:[#allocation32_spill] sm:$0xff] %v8213_v33  ;;  %v5794_v5 = vld [vmem:[%s9370_s8 + $0x488] sm:$0xff]  ;;  %v8226_v16 = vpop.f32.mrf.mxu3 }
 0x209   : > { %v8204_v43 = vpop.permute.xlu2 %4334 }
 0x20a   : > { %v8199_v8 = vpop.f32.mrf.mxu1  ;;  %v8206_v50 = vpop.permute.xlu1 %4319 }
 0x20b   : > { %9483 = vst [vmem:[#allocation30_spill] sm:$0xff] %v8199_v8  ;;  %v8208_v20 = vpop.permute.xlu0 %3919 }
 0x20d   : > { %5715 = vmatmul.msk.f32.gmra.mxu1 %vm1082_vm1, %v2464_v1  ;;  %5765 = vmatmul.msk.f32.gmra.mxu2 %vm1082_vm1, %v2858_v29  ;;  %v2683_v29 = vld [vmem:[#allocation2 + $0x98] sm:$0xff] }
 0x20e   : > { %5808 = vmatmul.msk.f32.gmra.mxu3 %vm1082_vm1, %v3245_v54  ;;  %v3070_v54 = vld [vmem:[#allocation2 + $0x59] sm:$0xff]  ;;  %v2859_v56 = vmul.f32 %v7966_v60, %v2683_v29  ;;  %v5841_v60 = vld [vmem:[%s9370_s8 + $0x530] sm:$0xff] }
 0x20f   : > { %4379 = vperm.xlu2 %6021, %v5943_v45   ;;  %3214 = vperm.xlu1 %6020, %v5794_v5   ;;  %v3246_v45 = vmul.f32 %v8008_v57, %v3070_v54  ;;  %v5892_v5 = vld [vmem:[%s9370_s8 + $0x5f8] sm:$0xff]  ;;  %v2290_v57 = vld [vmem:[#allocation2 + $0xa7] sm:$0xff] }
 0x210   : > { %3979 = vperm.xlu0 %6019, %v5891_v26   ;;  %v8231_v22 = vpop.f32.mrf.mxu2  ;;  %v8253_v26 = vpop.f32.mrf.mxu0  ;;  %v2466_v29 = vmul.f32 %v7778_v37, %v2290_v57  ;;  %v5893_v37 = vld [vmem:[%s9370_s8 + $0x600] sm:$0xff]  ;;  %v5842_v57 = vld [vmem:[%s9370_s8 + $0x538] sm:$0xff] }
 0x211   : > { %9487 = vst [vmem:[#allocation34_spill] sm:$0xff] %v8231_v22  ;;  %v8233_v33 = vpop.permute.xlu2 %3174  ;;  %v8255_v28 = vpop.f32.mrf.mxu3  ;;  %v3072_v22 = vld [vmem:[#allocation2 + $0x69] sm:$0xff] }
 0x212   : > { %v8228_v1 = vpop.f32.mrf.mxu1  ;;  %v8235_v8 = vpop.permute.xlu1 %4324  ;;  %9488 = vst [vmem:[#allocation35_spill] sm:$0xff] %v8253_v26  ;;  %v3071_v26 = vld [vmem:[#allocation2 + $0x61] sm:$0xff] }
 0x213   : > { %9486 = vst [vmem:[#allocation33_spill] sm:$0xff] %v8228_v1  ;;  %v8237_v18 = vpop.permute.xlu0 %3924  ;;  %v2684_v1 = vld [vmem:[#allocation2 + $0xa0] sm:$0xff] }
 0x215   : > { %5716 = vmatmul.msk.f32.gmra.mxu1 %vm1082_vm1, %v2465_v9  ;;  %5766 = vmatmul.msk.f32.gmra.mxu2 %vm1082_vm1, %v2859_v56 }
 0x216   : > { %5809 = vmatmul.msk.f32.gmra.mxu3 %vm1082_vm1, %v3246_v45  ;;  %v5170_v45 = vld [vmem:[%s9368_s6] sm:$0xff] }
 0x217   : > { %3219 = vperm.xlu2 %6021, %v5795_v24   ;;  %3984 = vperm.xlu1 %6020, %v5892_v5  }
 0x218   : > { %3589 = vperm.xlu0 %6019, %v5841_v60   ;;  %v8260_v54 = vpop.f32.mrf.mxu2  ;;  %5265 = vmatpush.msra.mxu3 %v5170_v45  ;;  %v3247_v60 = vmul.f32 %v8101_v4, %v3071_v26  ;;  %v2291_v4 = vld [vmem:[#allocation2 + $0xaf] sm:$0xff] }
 0x219   : > { %9490 = vst [vmem:[#allocation37_spill] sm:$0xff] %v8260_v54  ;;  %v8262_v56 = vpop.permute.xlu2 %3944 }
 0x21a   : > { %v8257_v9 = vpop.f32.mrf.mxu1  ;;  %v8267_v24 = vpop.permute.xlu1 %4329 }
 0x21b   : > { %9489 = vst [vmem:[#allocation36_spill] sm:$0xff] %v8257_v9  ;;  %v8269_v5 = vpop.permute.xlu0 %3929  ;;  %v2860_v9 = vmul.f32 %v7964_v38, %v2684_v1  ;;  %v5944_v38 = vld [vmem:[%s9370_s8 + $0x6c8] sm:$0xff]  ;;  %v8285_v1 = vpop.f32.mrf.mxu0 }
 0x21c   : > { %9491 = vst [vmem:[#allocation38_spill] sm:$0xff] %v8285_v1 }
 0x21d   : > { %5717 = vmatmul.msk.f32.gmra.mxu1 %vm1082_vm1, %v2466_v29  ;;  %5767 = vmatmul.msk.f32.gmra.mxu2 %vm1082_vm1, %v2860_v9  ;;  %v2467_v29 = vmul.f32 %v7662_v15, %v2291_v4  ;;  %v2685_v9 = vld [vmem:[#allocation2 + $0xa8] sm:$0xff]  ;;  %v5843_v15 = vld [vmem:[%s9370_s8 + $0x540] sm:$0xff]  ;;  %v2292_v4 = vld [vmem:[#allocation2 + $0xb7] sm:$0xff] }
 0x21e   : > { %5810 = vmatmul.msk.f32.gmra.mxu3 %vm1082_vm1, %v3247_v60 }
 0x21f   : > { %3989 = vperm.xlu2 %6021, %v5893_v37   ;;  %3594 = vperm.xlu1 %6020, %v5842_v57   ;;  %v2861_v37 = vmul.f32 %v7891_v61, %v2685_v9  ;;  %v8297_v57 = vpop.f32.mrf.mxu3  ;;  %v5796_v61 = vld [vmem:[%s9370_s8 + $0x498] sm:$0xff] }
 0x220   : > { %4384 = vperm.xlu0 %6019, %v5944_v38   ;;  %v8290_v45 = vpop.f32.mrf.mxu2  ;;  %v5945_v38 = vld [vmem:[%s9370_s8 + $0x6d0] sm:$0xff] }
 0x221   : > { %9493 = vst [vmem:[#allocation40_spill] sm:$0xff] %v8290_v45  ;;  %v8292_v54 = vpop.permute.xlu2 %3554 }
 0x222   : > { %v8287_v26 = vpop.f32.mrf.mxu1  ;;  %v3170_v60 = vpop.permute.xlu1 %3169 }
 0x223   : > { %9492 = vst [vmem:[#allocation39_spill] sm:$0xff] %v8287_v26  ;;  %v8294_v42 = vpop.permute.xlu0 %3934  ;;  %v3248_v1 = vmul.f32 %v3170_v60, %v3072_v22  ;;  %v2686_v26 = vld [vmem:[#allocation2 + $0xb0] sm:$0xff]  ;;  %v8320_v19 = vpop.f32.mrf.mxu0 }
 0x224   : > { %9497 = vst [vmem:[#allocation44_spill] sm:$0xff] %v8320_v19 }
 0x225   : > { %5718 = vmatmul.msk.f32.gmra.mxu1 %vm1082_vm1, %v2467_v29  ;;  %5768 = vmatmul.msk.f32.gmra.mxu2 %vm1082_vm1, %v2861_v37  ;;  %v2468_v29 = vmul.f32 %v7807_v55, %v2292_v4  ;;  %v3073_v37 = vld [vmem:[#allocation2 + $0x71] sm:$0xff]  ;;  %v5797_v4 = vld [vmem:[%s9370_s8 + $0x4a0] sm:$0xff] }
 0x226   : > { %5811 = vmatmul.msk.f32.gmra.mxu3 %vm1082_vm1, %v3248_v1  ;;  %v5946_v55 = vld [vmem:[%s9370_s8 + $0x6d8] sm:$0xff] }
 0x227   : > { %3599 = vperm.xlu2 %6021, %v5843_v15   ;;  %4389 = vperm.xlu1 %6020, %v5945_v38   ;;  %v2862_v15 = vmul.f32 %v7989_v34, %v2686_v26  ;;  %v3249_v38 = vmul.f32 %v8233_v33, %v3073_v37  ;;  %v5894_v34 = vld [vmem:[%s9370_s8 + $0x608] sm:$0xff] }
 0x228   : > { %3224 = vperm.xlu0 %6019, %v5796_v61   ;;  %v8314_v9 = vpop.f32.mrf.mxu2 }
 0x229   : > { %9495 = vst [vmem:[#allocation42_spill] sm:$0xff] %v8314_v9  ;;  %v8316_v60 = vpop.permute.xlu2 %4349 }
 0x22a   : > { %v8311_v22 = vpop.f32.mrf.mxu1  ;;  %9496 = vst [vmem:[#allocation43_spill] sm:$0xff] %v8316_v60  ;;  %v8318_v45 = vpop.permute.xlu1 %3939  ;;  %v3074_v60 = vld [vmem:[#allocation2 + $0x79] sm:$0xff] }
 0x22b   : > { %9494 = vst [vmem:[#allocation41_spill] sm:$0xff] %v8311_v22  ;;  %v3545_v1 = vpop.permute.xlu0 %3544  ;;  %v8331_v22 = vpop.f32.mrf.mxu3 }
 0x22c   : > { %v3639_v61 = vmul.f32 %v3545_v1, %v3463_v44  ;;  %v2293_v44 = vld [vmem:[#allocation2 + $0xbf] sm:$0xff] }
 0x22d   : > { %5719 = vmatmul.msk.f32.gmra.mxu1 %vm1082_vm1, %v2468_v29  ;;  %5769 = vmatmul.msk.f32.gmra.mxu2 %vm1082_vm1, %v2862_v15  ;;  %v2469_v26 = vmul.f32 %v7805_v53, %v2293_v44  ;;  %v2687_v1 = vld [vmem:[#allocation2 + $0xb8] sm:$0xff]  ;;  %v5895_v53 = vld [vmem:[%s9370_s8 + $0x610] sm:$0xff] }
 0x22e   : > { %5812 = vmatmul.msk.f32.gmra.mxu3 %vm1082_vm1, %v3249_v38  ;;  %5858 = vmatmul.msk.f32.gmra.mxu0 %vm1082_vm1, %v3639_v61  ;;  %v3464_v38 = vld [vmem:[#allocation2 + $0x5d] sm:$0xff]  ;;  %v2863_v9 = vmul.f32 %v7987_v25, %v2687_v1  ;;  %v2294_v25 = vld [vmem:[#allocation2 + $0xc7] sm:$0xff] }
 0x22f   : > { %4394 = vperm.xlu2 %6021, %v5946_v55   ;;  %3229 = vperm.xlu1 %6020, %v5797_v4   ;;  %v5798_v55 = vld [vmem:[%s9370_s8 + $0x4a8] sm:$0x1f]  ;;  %v8354_v4 = vpop.f32.mrf.mxu0  ;;  %v2470_v1 = vmul.f32 %v7702_v59, %v2294_v25  ;;  %v5845_v25 = vld [vmem:[%s9370_s8 + $0x550] sm:$0xff] }
 0x230   : > { %3994 = vperm.xlu0 %6019, %v5894_v34   ;;  %v8340_v29 = vpop.f32.mrf.mxu2  ;;  %9500 = vst [vmem:[#allocation47_spill] sm:$0xff] %v8354_v4  ;;  %v5844_v34 = vld [vmem:[%s9370_s8 + $0x548] sm:$0xff] }
 0x231   : > { %9498 = vst [vmem:[#allocation45_spill] sm:$0xff] %v8340_v29  ;;  %v8342_v37 = vpop.permute.xlu2 %3189 }
 0x232   : > { %v2584_v33 = vpop.f32.mrf.mxu1  ;;  %v3550_v15 = vpop.permute.xlu1 %3549 }
 0x233   : > { %v8344_v19 = vpop.permute.xlu0 %4339  ;;  %v3640_v61 = vmul.f32 %v3550_v15, %v3464_v38  ;;  %v8361_v44 = vpop.f32.mrf.mxu3 }
 0x234   : > { %9499 = vst [vmem:[#allocation46_spill] sm:$0xff] %v8344_v19 }
 0x235   : > { %5720 = vmatmul.msk.f32.gmra.mxu1 %vm1082_vm1, %v2469_v26  ;;  %5770 = vmatmul.msk.f32.gmra.mxu2 %vm1082_vm1, %v2863_v9  ;;  %v2688_v9 = vld [vmem:[#allocation2 + $0xc0] sm:$0xff] }
 0x236   : > { %5859 = vmatmul.msk.f32.gmra.mxu0 %vm1082_vm1, %v3640_v61  ;;  %v2864_v19 = vmul.f32 %v7915_v41, %v2688_v9  ;;  %v3465_v61 = vld [vmem:[#allocation2 + $0x65] sm:$0xff] }
 0x237   : > { %3234 = vperm.xlu2 %6021, %v5798_v55   ;;  %3999 = vperm.xlu1 %6020, %v5895_v53   ;;  %v1820_v53 = vadd.f32 %v7716_v6, %v7686_v14  ;;  %v3641_v59 = vmul.f32 %v8292_v54, %v3465_v61  ;;  %v5947_v41 = vld [vmem:[%s9370_s8 + $0x6e0] sm:$0xff]  ;;  %v2295_v6 = vld [vmem:[#allocation2 + $0xcf] sm:$0x1f]  ;;  %v8388_v54 = vpop.f32.mrf.mxu0 }
 0x238   : > { %3604 = vperm.xlu0 %6019, %v5844_v34   ;;  %v8364_v15 = vpop.f32.mrf.mxu2  ;;  %v5896_v34 = vld [vmem:[%s9370_s8 + $0x618] sm:$0xff] }
 0x239   : > { %9501 = vst [vmem:[#allocation48_spill] sm:$0xff] %v8364_v15  ;;  %v8366_v38 = vpop.permute.xlu2 %3959  ;;  %v2252_v14 = vadd.f32 %v8031_v39, %v1820_v53  ;;  %v3075_v39 = vld [vmem:[#allocation2 + $0x81] sm:$0xff] }
 0x23a   : > { %v2587_v26 = vpop.f32.mrf.mxu1  ;;  %v8368_v29 = vpop.permute.xlu1 %4344 }
 0x23b   : > { %v3180_v4 = vpop.permute.xlu0 %3179  ;;  %v8391_v9 = vpop.f32.mrf.mxu3 }
 0x23c   : > { %v3250_v55 = vmul.f32 %v3180_v4, %v3074_v60  ;;  %v2689_v60 = vld [vmem:[#allocation2 + $0xc8] sm:$0xff]  ;;  %v2647_v4 = vadd.f32 %v2584_v33, %v2252_v14 }
 0x23d   : > { %5721 = vmatmul.msk.f32.gmra.mxu1 %vm1082_vm1, %v2470_v1  ;;  %5771 = vmatmul.msk.f32.gmra.mxu2 %vm1082_vm1, %v2864_v19  ;;  %v2471_v19 = vmul.f32 %v7828_v27, %v2295_v6  ;;  %v5897_v27 = vld [vmem:[%s9370_s8 + $0x620] sm:$0xff] }
 0x23e   : > { %5813 = vmatmul.msk.f32.gmra.mxu3 %vm1082_vm1, %v3250_v55  ;;  %5860 = vmatmul.msk.f32.gmra.mxu0 %vm1082_vm1, %v3641_v59  ;;  %v2865_v59 = vmul.f32 %v8012_v31, %v2689_v60  ;;  %v5948_v31 = vld [vmem:[%s9370_s8 + $0x6e8] sm:$0xff] }
 0x23f   : > { %4004 = vperm.xlu2 %6021, %v5896_v34   ;;  %3609 = vperm.xlu1 %6020, %v5845_v25   ;;  %v1823_v25 = vadd.f32 %v7766_v48, %v7730_v3  ;;  %v2690_v3 = vld [vmem:[#allocation2 + $0xd0] sm:$0x1f]  ;;  %v3851_v48 = vld [vmem:[#allocation2 + $0x1e] sm:$0xff]  ;;  %v8415_v60 = vpop.f32.mrf.mxu0 }
 0x240   : > { %4399 = vperm.xlu0 %6019, %v5947_v41   ;;  %v2979_v61 = vpop.f32.mrf.mxu2  ;;  %v5846_v41 = vld [vmem:[%s9370_s8 + $0x558] sm:$0xff] }
 0x241   : > { %v8393_v55 = vadd.f32 %v2979_v61, %v2647_v4  ;;  %v8399_v34 = vpop.permute.xlu2 %3569  ;;  %v4027_v4 = vmul.f32 %v8126_v40, %v3851_v48  ;;  %v3076_v61 = vld [vmem:[#allocation2 + $0x89] sm:$0xff]  ;;  %v1826_v40 = vadd.f32 %v7791_v17, %v7772_v49 }
 0x242   : > { %v2590_v1 = vpop.f32.mrf.mxu1  ;;  %v3185_v15 = vpop.permute.xlu1 %3184  ;;  %v3852_v17 = vld [vmem:[#allocation2 + $0x26] sm:$0xff] }
 0x243   : > { %9502 = vst [vmem:[#allocation49_spill] sm:$0xff] %v8393_v55  ;;  %v8395_v53 = vpop.permute.xlu0 %3949  ;;  %v3251_v33 = vmul.f32 %v3185_v15, %v3075_v39  ;;  %v2253_v15 = vadd.f32 %v8055_v21, %v1823_v25  ;;  %v3466_v55 = vld [vmem:[#allocation2 + $0x6d] sm:$0xff]  ;;  %v2866_v21 = vmul.f32 %v8010_v12, %v2690_v3  ;;  %v8423_v25 = vpop.f32.mrf.mxu3  ;;  %v2254_v49 = vadd.f32 %v8089_v58, %v1826_v40 }
 0x244   : > { %v5949_v12 = vld [vmem:[%s9370_s8 + $0x6f0] sm:$0xff]  ;;  %v4028_v3 = vmul.f32 %v8154_v47, %v3852_v17 }
 0x245   : > { %5722 = vmatmul.msk.f32.gmra.mxu1 %vm1082_vm1, %v2471_v19  ;;  %5772 = vmatmul.msk.f32.gmra.mxu2 %vm1082_vm1, %v2865_v59  ;;  %v2648_v14 = vadd.f32 %v2587_v26, %v2253_v15  ;;  %v3252_v26 = vmul.f32 %v8342_v37, %v3076_v61  ;;  %v2649_v37 = vadd.f32 %v2590_v1, %v2254_v49  ;;  %v3467_v61 = vld [vmem:[#allocation2 + $0x75] sm:$0xff] }
 0x246   : > { %5814 = vmatmul.msk.f32.gmra.mxu3 %vm1082_vm1, %v3251_v33  ;;  %v1829_v1 = vadd.f32 %v7817_v2, %v7797_v46  ;;  %v5899_v47 = vld [vmem:[%s9370_s8 + $0x630] sm:$0xff] }
 0x247   : > { %4009 = vperm.xlu2 %6021, %v5897_v27   ;;  %3614 = vperm.xlu1 %6020, %v5846_v41   ;;  %v5898_v41 = vld [vmem:[%s9370_s8 + $0x628] sm:$0xff] }
 0x248   : > { %4404 = vperm.xlu0 %6019, %v5948_v31   ;;  %v2982_v19 = vpop.f32.mrf.mxu2  ;;  %v5847_v31 = vld [vmem:[%s9370_s8 + $0x560] sm:$0xff]  ;;  %v3853_v2 = vld [vmem:[#allocation2 + $0x2e] sm:$0xff] }
 0x249   : > { %v8418_v39 = vadd.f32 %v2982_v19, %v2648_v14  ;;  %v8435_v15 = vpop.permute.xlu2 %4364  ;;  %v4246_v14 = vld [vmem:[#allocation2 + $0x1f] sm:$0xff]  ;;  %v4029_v49 = vmul.f32 %v8180_v35, %v3853_v2  ;;  %v5900_v35 = vld [vmem:[%s9370_s8 + $0x638] sm:$0x1f] }
 0x24a   : > { %v2593_v6 = vpop.f32.mrf.mxu1  ;;  %v8420_v59 = vpop.permute.xlu1 %3954  ;;  %v4422_v58 = vmul.f32 %v8099_v10, %v4246_v14  ;;  %v5950_v10 = vld [vmem:[%s9370_s8 + $0x6f8] sm:$0xff] }
 0x24b   : > { %v3560_v33 = vpop.permute.xlu0 %3559  ;;  %v8461_v40 = vpop.f32.mrf.mxu3 }
 0x24c   : > { %v3642_v27 = vmul.f32 %v3560_v33, %v3466_v55 }
 0x24d   : > { %5902 = vmatmul.msk.f32.vlgmr.msra.gmra.mxu1 %vm1082_vm1, %v4027_v4  ;;  %5773 = vmatmul.msk.f32.gmra.mxu2 %vm1082_vm1, %v2866_v21  ;;  %v8449_v21 = vpop.f32.mrf.mxu0 }
 0x24e   : > { %5815 = vmatmul.msk.f32.gmra.mxu3 %vm1082_vm1, %v3252_v26  ;;  %5861 = vmatmul.msk.f32.gmra.mxu0 %vm1082_vm1, %v3642_v27  ;;  %v5848_v27 = vld [vmem:[%s9370_s8 + $0x568] sm:$0xff] }
 0x24f   : > { %4014 = vperm.xlu2 %6021, %v5898_v41   ;;  %3619 = vperm.xlu1 %6020, %v5847_v31   ;;  %v2255_v41 = vadd.f32 %v8119_v51, %v1829_v1  ;;  %v3077_v51 = vld [vmem:[#allocation2 + $0x91] sm:$0xff] }
 0x250   : > { %4409 = vperm.xlu0 %6019, %v5949_v12   ;;  %v2985_v48 = vpop.f32.mrf.mxu2  ;;  %v5849_v1 = vld [vmem:[%s9370_s8 + $0x570] sm:$0x1f] }
 0x251   : > { %v8445_v4 = vadd.f32 %v2985_v48, %v2649_v37  ;;  %v8469_v46 = vpop.permute.xlu2 %3204  ;;  %v2650_v31 = vadd.f32 %v2593_v6, %v2255_v41  ;;  %v4247_v37 = vld [vmem:[#allocation2 + $0x27] sm:$0xff]  ;;  %v1832_v6 = vadd.f32 %v7838_v23, %v7823_v0  ;;  %v5951_v0 = vld [vmem:[%s9370_s8 + $0x700] sm:$0x1f] }
 0x252   : > { %v2596_v55 = vpop.f32.mrf.mxu1  ;;  %v3565_v19 = vpop.permute.xlu1 %3564 }
 0x253   : > { %v8447_v33 = vpop.permute.xlu0 %4354  ;;  %v3643_v26 = vmul.f32 %v3565_v19, %v3467_v61  ;;  %v4423_v19 = vmul.f32 %v8124_v52, %v4247_v37  ;;  %v3468_v61 = vld [vmem:[#allocation2 + $0x7d] sm:$0xff]  ;;  %v2256_v23 = vadd.f32 %v8150_v62, %v1832_v6  ;;  %v8496_v52 = vpop.f32.mrf.mxu3 }
 0x254   : > { %v3078_v62 = vld [vmem:[#allocation2 + $0x99] sm:$0xff] }
 0x255   : > { %5903 = vmatmul.msk.f32.gmra.mxu1 %vm1082_vm1, %v4028_v3  ;;  %5953 = vmatmul.msk.f32.vlgmr.msra.gmra.mxu2 %vm1082_vm1, %v4422_v58 }
 0x256   : > { %5862 = vmatmul.msk.f32.gmra.mxu0 %vm1082_vm1, %v3643_v26  ;;  %v3644_v26 = vmul.f32 %v8399_v34, %v3468_v61  ;;  %v3854_v34 = vld [vmem:[#allocation2 + $0x36] sm:$0xff] }
 0x257   : > { %4019 = vperm.xlu2 %6021, %v5899_v47   ;;  %3624 = vperm.xlu1 %6020, %v5848_v27   ;;  %v8487_v47 = vpop.f32.mrf.mxu0  ;;  %v2651_v27 = vadd.f32 %v2596_v55, %v2256_v23  ;;  %v4030_v41 = vmul.f32 %v8208_v20, %v3854_v34  ;;  %v1835_v55 = vadd.f32 %v7859_v32, %v7845_v13  ;;  %v3469_v34 = vld [vmem:[#allocation2 + $0x85] sm:$0xff] }
 0x258   : > { %4414 = vperm.xlu0 %6019, %v5950_v10   ;;  %v2988_v17 = vpop.f32.mrf.mxu2 }
 0x259   : > { %v8472_v3 = vadd.f32 %v2988_v17, %v2650_v31  ;;  %v8499_v2 = vpop.permute.xlu2 %3974  ;;  %v2257_v20 = vadd.f32 %v8185_v11, %v1835_v55 }
 0x25a   : > { %v2599_v12 = vpop.f32.mrf.mxu1  ;;  %v8474_v48 = vpop.permute.xlu1 %4359 }
 0x25b   : > { %v3195_v14 = vpop.permute.xlu0 %3194  ;;  %v2652_v6 = vadd.f32 %v2599_v12, %v2257_v20 }
 0x25c   : > { %v3253_v58 = vmul.f32 %v3195_v14, %v3077_v51 }
 0x25d   : > { %5904 = vmatmul.msk.f32.gmra.mxu1 %vm1082_vm1, %v4029_v49  ;;  %5954 = vmatmul.msk.f32.gmra.mxu2 %vm1082_vm1, %v4423_v19  ;;  %v4248_v49 = vld [vmem:[#allocation2 + $0x2f] sm:$0xff] }
 0x25e   : > { %5816 = vmatmul.msk.f32.gmra.mxu3 %vm1082_vm1, %v3253_v58  ;;  %5863 = vmatmul.msk.f32.gmra.mxu0 %vm1082_vm1, %v3644_v26  ;;  %v4424_v51 = vmul.f32 %v8152_v63, %v4248_v49  ;;  %v3855_v58 = vld [vmem:[#allocation2 + $0x3e] sm:$0xff] }
 0x25f   : > { %4024 = vperm.xlu2 %6021, %v5900_v35   ;;  %3629 = vperm.xlu1 %6020, %v5849_v1   ;;  %v8512_v61 = vpop.f32.mrf.mxu0  ;;  %v8514_v35 = vpop.f32.mrf.mxu3  ;;  %v4031_v63 = vmul.f32 %v8237_v18, %v3855_v58  ;;  %v4250_v58 = vld [vmem:[#allocation2 + $0x3f] sm:$0xff] }
 0x260   : > { %4419 = vperm.xlu0 %6019, %v5951_v0   ;;  %v2991_v31 = vpop.f32.mrf.mxu2  ;;  %v3079_v0 = vld [vmem:[#allocation2 + $0xa1] sm:$0xff] }
 0x261   : > { %v8501_v17 = vadd.f32 %v2991_v31, %v2651_v27  ;;  %v4249_v27 = vld [vmem:[#allocation2 + $0x37] sm:$0xff]  ;;  %v3255_v11 = vmul.f32 %v8469_v46, %v3079_v0  ;;  %v1838_v31 = vadd.f32 %v7881_v7, %v7866_v36  ;;  %v3470_v7 = vld [vmem:[#allocation2 + $0x8d] sm:$0xff] }
 0x262   : > { %v2602_v10 = vpop.f32.mrf.mxu1  ;;  %v3200_v37 = vpop.permute.xlu1 %3199  ;;  %v4425_v18 = vmul.f32 %v8178_v30, %v4249_v27 }
 0x263   : > { %v8503_v14 = vpop.permute.xlu0 %3964  ;;  %v3254_v19 = vmul.f32 %v3200_v37, %v3078_v62  ;;  %v2258_v49 = vadd.f32 %v8226_v16, %v1838_v31  ;;  %v3856_v37 = vld [vmem:[#allocation2 + $0x46] sm:$0xff] }
 0x265   : > { %5905 = vmatmul.msk.f32.gmra.mxu1 %vm1082_vm1, %v4030_v41  ;;  %5955 = vmatmul.msk.f32.gmra.mxu2 %vm1082_vm1, %v4424_v51  ;;  %v3585_v41 = vpop.permute.xlu2 %3584  ;;  %v2653_v62 = vadd.f32 %v2602_v10, %v2258_v49  ;;  %v4426_v10 = vmul.f32 %v8206_v50, %v4250_v58 }
 0x266   : > { %5817 = vmatmul.msk.f32.gmra.mxu3 %vm1082_vm1, %v3254_v19  ;;  %v4032_v19 = vmul.f32 %v8269_v5, %v3856_v37 }
 0x267   : > { %v8530_v51 = vpop.f32.mrf.mxu0  ;;  %v8541_v0 = vpop.f32.mrf.mxu3 }
 0x268   : > { %v2994_v1 = vpop.f32.mrf.mxu2 }
 0x269   : > { %v8517_v23 = vadd.f32 %v2994_v1, %v2652_v6  ;;  %v9503_v6 = vld [vmem:[#allocation5_spill] sm:$0xff] }
 0x26a   : > { %v2605_v26 = vpop.f32.mrf.mxu1  ;;  %v8519_v13 = vpop.permute.xlu1 %3969 }
 0x26b   : > { %v3575_v32 = vpop.permute.xlu0 %3574 }
 0x26c   : > { %v3645_v12 = vmul.f32 %v3575_v32, %v3469_v34  ;;  %v3857_v34 = vld [vmem:[#allocation2 + $0x4e] sm:$0xff] }
 0x26d   : > { %5906 = vmatmul.msk.f32.gmra.mxu1 %vm1082_vm1, %v4031_v63  ;;  %5956 = vmatmul.msk.f32.gmra.mxu2 %vm1082_vm1, %v4425_v18  ;;  %v9504_v63 = vld [vmem:[#allocation4_spill] sm:$0xff]  ;;  %v8543_v32 = vpop.permute.xlu2 %4379  ;;  %v3471_v18 = vld [vmem:[#allocation2 + $0x95] sm:$0xff] }
 0x26e   : > { %5818 = vmatmul.msk.f32.gmra.mxu3 %vm1082_vm1, %v3255_v11  ;;  %5864 = vmatmul.msk.f32.gmra.mxu0 %vm1082_vm1, %v3645_v12  ;;  %v1841_v1 = vadd.f32 %v9504_v63, %v9503_v6  ;;  %v4033_v12 = vmul.f32 %v8294_v42, %v3857_v34  ;;  %v3858_v63 = vld [vmem:[#allocation2 + $0x56] sm:$0xff] }
 0x26f   : > { %v8562_v6 = vpop.f32.mrf.mxu3 }
 0x270   : > { %v2997_v55 = vpop.f32.mrf.mxu2  ;;  %v2259_v5 = vadd.f32 %v8255_v28, %v1841_v1 }
 0x271   : > { %v8533_v20 = vadd.f32 %v2997_v55, %v2653_v62  ;;  %v3080_v62 = vld [vmem:[#allocation2 + $0xa9] sm:$0xff]  ;;  %v3647_v55 = vmul.f32 %v3585_v41, %v3471_v18 }
 0x272   : > { %v2608_v46 = vpop.f32.mrf.mxu1  ;;  %v3580_v36 = vpop.permute.xlu1 %3579  ;;  %v2654_v27 = vadd.f32 %v2605_v26, %v2259_v5  ;;  %v4034_v5 = vmul.f32 %v8318_v45, %v3858_v63  ;;  %v4252_v18 = vld [vmem:[#allocation2 + $0x4f] sm:$0xff] }
 0x273   : > { %v8535_v30 = vpop.permute.xlu0 %4369  ;;  %v3646_v16 = vmul.f32 %v3580_v36, %v3470_v7  ;;  %v9505_v36 = vld [vmem:[#allocation6_spill] sm:$0xff]  ;;  %v9506_v7 = vld [vmem:[#allocation7_spill] sm:$0xff]  ;;  %v8556_v26 = vpop.f32.mrf.mxu0 }
 0x274   : > { %v1844_v58 = vadd.f32 %v9506_v7, %v9505_v36 }
 0x275   : > { %5907 = vmatmul.msk.f32.gmra.mxu1 %vm1082_vm1, %v4032_v19  ;;  %5957 = vmatmul.msk.f32.gmra.mxu2 %vm1082_vm1, %v4426_v10  ;;  %v4251_v19 = vld [vmem:[#allocation2 + $0x47] sm:$0xff]  ;;  %v3220_v41 = vpop.permute.xlu2 %3219 }
 0x276   : > { %5865 = vmatmul.msk.f32.gmra.mxu0 %vm1082_vm1, %v3646_v16  ;;  %v4427_v42 = vmul.f32 %v8235_v8, %v4251_v19  ;;  %v2260_v16 = vadd.f32 %v8297_v57, %v1844_v58 }
 0x277   : > { %v8579_v36 = vpop.f32.mrf.mxu3 }
 0x278   : > { %v3000_v31 = vpop.f32.mrf.mxu2  ;;  %v2655_v1 = vadd.f32 %v2608_v46, %v2260_v16 }
 0x279   : > { %v8549_v49 = vadd.f32 %v3000_v31, %v2654_v27 }
 0x27a   : > { %v2611_v11 = vpop.f32.mrf.mxu1  ;;  %v8551_v50 = vpop.permute.xlu1 %4374 }
 0x27b   : > { %v3210_v37 = vpop.permute.xlu0 %3209  ;;  %v8575_v46 = vpop.f32.mrf.mxu0 }
 0x27c   : > { %v3256_v28 = vmul.f32 %v3210_v37, %v3080_v62  ;;  %v9507_v37 = vld [vmem:[#allocation8_spill] sm:$0xff]  ;;  %v9508_v62 = vld [vmem:[#allocation9_spill] sm:$0xff] }
 0x27d   : > { %5908 = vmatmul.msk.f32.gmra.mxu1 %vm1082_vm1, %v4033_v12  ;;  %5958 = vmatmul.msk.f32.gmra.mxu2 %vm1082_vm1, %v4427_v42  ;;  %v3081_v12 = vld [vmem:[#allocation2 + $0xb1] sm:$0xff]  ;;  %v1847_v19 = vadd.f32 %v9508_v62, %v9507_v37  ;;  %v8582_v16 = vpop.permute.xlu2 %3989 }
 0x27e   : > { %5819 = vmatmul.msk.f32.gmra.mxu3 %vm1082_vm1, %v3256_v28  ;;  %5866 = vmatmul.msk.f32.gmra.mxu0 %vm1082_vm1, %v3647_v55  ;;  %v4428_v55 = vmul.f32 %v8267_v24, %v4252_v18  ;;  %v3859_v28 = vld [vmem:[#allocation2 + $0x5e] sm:$0xff] }
 0x27f   : > { %v2261_v45 = vadd.f32 %v8331_v22, %v1847_v19  ;;  %v4035_v42 = vmul.f32 %v8262_v56, %v3859_v28  ;;  %v4253_v22 = vld [vmem:[#allocation2 + $0x57] sm:$0xff]  ;;  %v8598_v28 = vpop.f32.mrf.mxu3 }
 0x280   : > { %v3003_v34 = vpop.f32.mrf.mxu2  ;;  %v4429_v56 = vmul.f32 %v8204_v43, %v4253_v22  ;;  %v9512_v22 = vld [vmem:[#allocation12_spill] sm:$0xff] }
 0x281   : > { %v8566_v27 = vadd.f32 %v3003_v34, %v2655_v1  ;;  %v2656_v7 = vadd.f32 %v2611_v11, %v2261_v45  ;;  %v3082_v1 = vld [vmem:[#allocation2 + $0xb9] sm:$0xff] }
 0x282   : > { %v2614_v10 = vpop.f32.mrf.mxu1  ;;  %v3215_v8 = vpop.permute.xlu1 %3214  ;;  %v9510_v11 = vld [vmem:[#allocation11_spill] sm:$0xff] }
 0x283   : > { %v8568_v31 = vpop.permute.xlu0 %3979  ;;  %v3257_v57 = vmul.f32 %v3215_v8, %v3081_v12  ;;  %v3472_v8 = vld [vmem:[#allocation2 + $0x9d] sm:$0xff]  ;;  %v3258_v12 = vmul.f32 %v3220_v41, %v3082_v1  ;;  %v8596_v19 = vpop.f32.mrf.mxu0  ;;  %v3473_v1 = vld [vmem:[#allocation2 + $0xa5] sm:$0xff] }
 0x285   : > { %5909 = vmatmul.msk.f32.gmra.mxu1 %vm1082_vm1, %v4034_v5  ;;  %5959 = vmatmul.msk.f32.gmra.mxu2 %vm1082_vm1, %v4428_v55  ;;  %v3860_v55 = vld [vmem:[#allocation2 + $0x66] sm:$0xff] }
 0x286   : > { %5820 = vmatmul.msk.f32.gmra.mxu3 %vm1082_vm1, %v3257_v57  ;;  %v9509_v57 = vld [vmem:[#allocation10_spill] sm:$0xff] }
 0x287   : > { %v1850_v37 = vadd.f32 %v9510_v11, %v9509_v57  ;;  %v3600_v11 = vpop.permute.xlu2 %3599 }
 0x288   : > { %v3006_v63 = vpop.f32.mrf.mxu2 }
 0x289   : > { %v8584_v24 = vadd.f32 %v3006_v63, %v2656_v7  ;;  %v2262_v62 = vadd.f32 %v8361_v44, %v1850_v37  ;;  %v4036_v7 = vmul.f32 %v8395_v53, %v3860_v55  ;;  %v3861_v37 = vld [vmem:[#allocation2 + $0x6e] sm:$0xff] }
 0x28a   : > { %v2617_v58 = vpop.f32.mrf.mxu1  ;;  %v8586_v5 = vpop.permute.xlu1 %3984  ;;  %v4037_v55 = vmul.f32 %v8420_v59, %v3861_v37 }
 0x28b   : > { %v3590_v34 = vpop.permute.xlu0 %3589  ;;  %v2657_v41 = vadd.f32 %v2614_v10, %v2262_v62  ;;  %v9514_v10 = vld [vmem:[#allocation46_spill] sm:$0xff] }
 0x28c   : > { %v3648_v18 = vmul.f32 %v3590_v34, %v3472_v8  ;;  %v4254_v8 = vld [vmem:[#allocation2 + $0x5f] sm:$0xff] }
 0x28d   : > { %5910 = vmatmul.msk.f32.gmra.mxu1 %vm1082_vm1, %v4035_v42  ;;  %5960 = vmatmul.msk.f32.gmra.mxu2 %vm1082_vm1, %v4429_v56  ;;  %v4430_v57 = vmul.f32 %v9514_v10, %v4254_v8  ;;  %v9517_v10 = vld [vmem:[#allocation15_spill] sm:$0xff] }
 0x28e   : > { %5821 = vmatmul.msk.f32.gmra.mxu3 %vm1082_vm1, %v3258_v12  ;;  %5867 = vmatmul.msk.f32.gmra.mxu0 %vm1082_vm1, %v3648_v18  ;;  %v9513_v12 = vld [vmem:[#allocation13_spill] sm:$0xff] }
 0x28f   : > { %v1853_v18 = vadd.f32 %v9513_v12, %v9512_v22  ;;  %v3083_v22 = vld [vmem:[#allocation2 + $0xc1] sm:$0xff]  ;;  %v8628_v37 = vpop.permute.xlu2 %4394 }
 0x290   : > { %v3009_v42 = vpop.f32.mrf.mxu2 }
 0x291   : > { %v8601_v63 = vadd.f32 %v3009_v42, %v2657_v41  ;;  %v2263_v53 = vadd.f32 %v8391_v9, %v1853_v18  ;;  %v8613_v41 = vpop.f32.mrf.mxu3  ;;  %v3474_v42 = vld [vmem:[#allocation2 + $0xad] sm:$0xff]  ;;  %v9516_v18 = vld [vmem:[#allocation14_spill] sm:$0xff] }
 0x292   : > { %v2620_v45 = vpop.f32.mrf.mxu1  ;;  %v3595_v43 = vpop.permute.xlu1 %3594  ;;  %v4255_v9 = vld [vmem:[#allocation2 + $0x67] sm:$0xff]  ;;  %v3650_v12 = vmul.f32 %v3600_v11, %v3474_v42  ;;  %v1856_v59 = vadd.f32 %v9517_v10, %v9516_v18  ;;  %v9520_v18 = vld [vmem:[#allocation17_spill] sm:$0xff] }
 0x293   : > { %9511 = vst [vmem:[#allocation5_spill] sm:$0xff] %v8601_v63  ;;  %v8603_v34 = vpop.permute.xlu0 %4384  ;;  %v3649_v44 = vmul.f32 %v3595_v43, %v3473_v1  ;;  %v2658_v56 = vadd.f32 %v2617_v58, %v2263_v53 }
 0x294   : > { %v2264_v53 = vadd.f32 %v8423_v25, %v1856_v59  ;;  %v9521_v59 = vld [vmem:[#allocation43_spill] sm:$0xff] }
 0x295   : > { %5911 = vmatmul.msk.f32.gmra.mxu1 %vm1082_vm1, %v4036_v7  ;;  %5961 = vmatmul.msk.f32.gmra.mxu2 %vm1082_vm1, %v4430_v57  ;;  %v4431_v57 = vmul.f32 %v8368_v29, %v4255_v9  ;;  %v3084_v29 = vld [vmem:[#allocation2 + $0xc9] sm:$0xff] }
 0x296   : > { %5868 = vmatmul.msk.f32.gmra.mxu0 %vm1082_vm1, %v3649_v44  ;;  %v8619_v44 = vpop.f32.mrf.mxu0  ;;  %v2659_v11 = vadd.f32 %v2620_v45, %v2264_v53 }
 0x298   : > { %v3012_v7 = vpop.f32.mrf.mxu2 }
 0x299   : > { %v8615_v43 = vadd.f32 %v3012_v7, %v2658_v56  ;;  %v3862_v56 = vld [vmem:[#allocation2 + $0x76] sm:$0xff]  ;;  %v8640_v45 = vpop.f32.mrf.mxu3 }
 0x29a   : > { %v2623_v62 = vpop.f32.mrf.mxu1  ;;  %v8617_v1 = vpop.permute.xlu1 %4389 }
 0x29b   : > { %9515 = vst [vmem:[#allocation4_spill] sm:$0xff] %v8615_v43  ;;  %v3225_v8 = vpop.permute.xlu0 %3224  ;;  %v4257_v43 = vld [vmem:[#allocation2 + $0x77] sm:$0xff] }
 0x29c   : > { %v3259_v58 = vmul.f32 %v3225_v8, %v3083_v22 }
 0x29d   : > { %5912 = vmatmul.msk.f32.gmra.mxu1 %vm1082_vm1, %v4037_v55  ;;  %5962 = vmatmul.msk.f32.gmra.mxu2 %vm1082_vm1, %v4431_v57  ;;  %v4038_v55 = vmul.f32 %v8366_v38, %v3862_v56  ;;  %v3863_v56 = vld [vmem:[#allocation2 + $0x7e] sm:$0xff] }
 0x29e   : > { %5822 = vmatmul.msk.f32.gmra.mxu3 %vm1082_vm1, %v3259_v58  ;;  %5869 = vmatmul.msk.f32.gmra.mxu0 %vm1082_vm1, %v3650_v12  ;;  %v4256_v58 = vld [vmem:[#allocation2 + $0x6f] sm:$0xff]  ;;  %v8642_v53 = vpop.f32.mrf.mxu0 }
 0x29f   : > { %v9519_v12 = vld [vmem:[#allocation16_spill] sm:$0xff]  ;;  %v4432_v57 = vmul.f32 %v9521_v59, %v4256_v58 }
 0x2a0   : > { %v3015_v42 = vpop.f32.mrf.mxu2  ;;  %v1859_v10 = vadd.f32 %v9520_v18, %v9519_v12  ;;  %v3085_v12 = vld [vmem:[#allocation2 + $0xd1] sm:$0x1f] }
 0x2a1   : > { %v8632_v8 = vadd.f32 %v3015_v42, %v2659_v11  ;;  %v3235_v11 = vpop.permute.xlu2 %3234 }
 0x2a2   : > { %v2626_v7 = vpop.f32.mrf.mxu1  ;;  %v3230_v22 = vpop.permute.xlu1 %3229  ;;  %v2265_v38 = vadd.f32 %v8461_v40, %v1859_v10  ;;  %v9522_v10 = vld [vmem:[#allocation18_spill] sm:$0xff] }
 0x2a3   : > { %9518 = vst [vmem:[#allocation6_spill] sm:$0xff] %v8632_v8  ;;  %v8634_v9 = vpop.permute.xlu0 %3994  ;;  %v3260_v25 = vmul.f32 %v3230_v22, %v3084_v29  ;;  %v4039_v22 = vmul.f32 %v8503_v14, %v3863_v56  ;;  %v3475_v8 = vld [vmem:[#allocation2 + $0xb5] sm:$0xff]  ;;  %v8661_v56 = vpop.f32.mrf.mxu3 }
 0x2a4   : > { %v2660_v42 = vadd.f32 %v2623_v62, %v2265_v38  ;;  %v4433_v62 = vmul.f32 %v8447_v33, %v4257_v43  ;;  %v3476_v43 = vld [vmem:[#allocation2 + $0xbd] sm:$0xff] }
 0x2a5   : > { %5913 = vmatmul.msk.f32.gmra.mxu1 %vm1082_vm1, %v4038_v55  ;;  %5963 = vmatmul.msk.f32.gmra.mxu2 %vm1082_vm1, %v4432_v57  ;;  %v9523_v57 = vld [vmem:[#allocation20_spill] sm:$0xff] }
 0x2a6   : > { %5823 = vmatmul.msk.f32.gmra.mxu3 %vm1082_vm1, %v3260_v25  ;;  %v3261_v25 = vmul.f32 %v3235_v11, %v3085_v12  ;;  %v1862_v63 = vadd.f32 %v9523_v57, %v9522_v10  ;;  %v8656_v38 = vpop.f32.mrf.mxu0  ;;  %v3864_v11 = vld [vmem:[#allocation2 + $0x86] sm:$0xff]  ;;  %v3865_v57 = vld [vmem:[#allocation2 + $0x8e] sm:$0xff] }
 0x2a8   : > { %v3018_v29 = vpop.f32.mrf.mxu2  ;;  %v2266_v14 = vadd.f32 %v8496_v52, %v1862_v63  ;;  %v9525_v52 = vld [vmem:[#allocation22_spill] sm:$0xff] }
 0x2a9   : > { %v8648_v18 = vadd.f32 %v3018_v29, %v2660_v42 }
 0x2aa   : > { %v2629_v55 = vpop.f32.mrf.mxu1  ;;  %v8650_v58 = vpop.permute.xlu1 %3999  ;;  %v2661_v42 = vadd.f32 %v2626_v7, %v2266_v14 }
 0x2ab   : > { %v3605_v59 = vpop.permute.xlu0 %3604 }
 0x2ac   : > { %v3651_v40 = vmul.f32 %v3605_v59, %v3475_v8  ;;  %v4258_v59 = vld [vmem:[#allocation2 + $0x7f] sm:$0xff] }
 0x2ad   : > { %5914 = vmatmul.msk.f32.gmra.mxu1 %vm1082_vm1, %v4039_v22  ;;  %5964 = vmatmul.msk.f32.gmra.mxu2 %vm1082_vm1, %v4433_v62  ;;  %v4040_v22 = vmul.f32 %v8519_v13, %v3864_v11  ;;  %v4434_v10 = vmul.f32 %v8474_v48, %v4258_v59  ;;  %v8676_v62 = vpop.f32.mrf.mxu3  ;;  %v3477_v48 = vld [vmem:[#allocation2 + $0xc5] sm:$0xff]  ;;  %v9526_v59 = vld [vmem:[#allocation21_spill] sm:$0xff] }
 0x2ae   : > { %5824 = vmatmul.msk.f32.gmra.mxu3 %vm1082_vm1, %v3261_v25  ;;  %5870 = vmatmul.msk.f32.gmra.mxu0 %vm1082_vm1, %v3651_v40  ;;  %v9524_v40 = vld [vmem:[#allocation19_spill] sm:$0xff]  ;;  %v8674_v13 = vpop.f32.mrf.mxu0 }
 0x2af   : > { %v1865_v63 = vadd.f32 %v9525_v52, %v9524_v40 }
 0x2b0   : > { %v3021_v29 = vpop.f32.mrf.mxu2 }
 0x2b1   : > { %v8665_v12 = vadd.f32 %v3021_v29, %v2661_v42  ;;  %v2267_v7 = vadd.f32 %v8514_v35, %v1865_v63  ;;  %v4041_v42 = vmul.f32 %v8499_v2, %v3865_v57  ;;  %v3866_v2 = vld [vmem:[#allocation2 + $0x96] sm:$0xff] }
 0x2b2   : > { %v2632_v8 = vpop.f32.mrf.mxu1  ;;  %v3610_v33 = vpop.permute.xlu1 %3609  ;;  %v4042_v57 = vmul.f32 %v8568_v31, %v3866_v2 }
 0x2b3   : > { %v3652_v25 = vmul.f32 %v3610_v33, %v3476_v43  ;;  %v2662_v14 = vadd.f32 %v2629_v55, %v2267_v7  ;;  %v4259_v43 = vld [vmem:[#allocation2 + $0x87] sm:$0xff] }
 0x2b4   : > { %v4435_v52 = vmul.f32 %v8435_v15, %v4259_v43  ;;  %v3478_v15 = vld [vmem:[#allocation2 + $0xcd] sm:$0xff]  ;;  %v9528_v43 = vld [vmem:[#allocation23_spill] sm:$0xff] }
 0x2b5   : > { %5915 = vmatmul.msk.f32.gmra.mxu1 %vm1082_vm1, %v4040_v22  ;;  %5965 = vmatmul.msk.f32.gmra.mxu2 %vm1082_vm1, %v4434_v10 }
 0x2b6   : > { %5871 = vmatmul.msk.f32.gmra.mxu0 %vm1082_vm1, %v3652_v25  ;;  %v9527_v25 = vld [vmem:[#allocation24_spill] sm:$0xff]  ;;  %v8688_v7 = vpop.f32.mrf.mxu0 }
 0x2b7   : > { %v1868_v40 = vadd.f32 %v9527_v25, %v9526_v59  ;;  %v3867_v25 = vld [vmem:[#allocation2 + $0x9e] sm:$0xff] }
 0x2b8   : > { %v3024_v22 = vpop.f32.mrf.mxu2  ;;  %v4043_v2 = vmul.f32 %v8586_v5, %v3867_v25  ;;  %v9534_v25 = vld [vmem:[#allocation28_spill] sm:$0xff] }
 0x2b9   : > { %v8679_v29 = vadd.f32 %v3024_v22, %v2662_v14  ;;  %v2268_v55 = vadd.f32 %v8541_v0, %v1868_v40 }
 0x2ba   : > { %v2635_v11 = vpop.f32.mrf.mxu1  ;;  %v3615_v33 = vpop.permute.xlu1 %3614 }
 0x2bb   : > { %v3653_v35 = vmul.f32 %v3615_v33, %v3477_v48  ;;  %v2663_v63 = vadd.f32 %v2632_v8, %v2268_v55  ;;  %v4260_v48 = vld [vmem:[#allocation2 + $0x8f] sm:$0xff] }
 0x2bc   : > { %v4436_v8 = vmul.f32 %v8535_v30, %v4260_v48  ;;  %v3479_v55 = vld [vmem:[#allocation2 + $0xd5] sm:$0xff] }
 0x2bd   : > { %5916 = vmatmul.msk.f32.gmra.mxu1 %vm1082_vm1, %v4041_v42  ;;  %5966 = vmatmul.msk.f32.gmra.mxu2 %vm1082_vm1, %v4435_v52  ;;  %v8691_v42 = vpop.f32.mrf.mxu3  ;;  %v9530_v48 = vld [vmem:[#allocation25_spill] sm:$0xff] }
 0x2be   : > { %5872 = vmatmul.msk.f32.gmra.mxu0 %vm1082_vm1, %v3653_v35  ;;  %v9529_v35 = vld [vmem:[#allocation27_spill] sm:$0xff] }
 0x2bf   : > { %v1871_v59 = vadd.f32 %v9529_v35, %v9528_v43  ;;  %v9532_v43 = vld [vmem:[#allocation26_spill] sm:$0xff]  ;;  %v9533_v35 = vld [vmem:[#allocation31_spill] sm:$0xff] }
 0x2c0   : > { %v3027_v14 = vpop.f32.mrf.mxu2 }
 0x2c1   : > { %v8693_v22 = vadd.f32 %v3027_v14, %v2663_v63  ;;  %v2269_v31 = vadd.f32 %v8562_v6, %v1871_v59  ;;  %v9531_v6 = vld [vmem:[#allocation47_spill] sm:$0xff] }
 0x2c2   : > { %v2638_v10 = vpop.f32.mrf.mxu1  ;;  %v3620_v33 = vpop.permute.xlu1 %3619 }
 0x2c3   : > { %v3654_v0 = vmul.f32 %v3620_v33, %v3478_v15  ;;  %v2664_v40 = vadd.f32 %v2635_v11, %v2269_v31  ;;  %v8705_v33 = vpop.f32.mrf.mxu0  ;;  %v4261_v15 = vld [vmem:[#allocation2 + $0x97] sm:$0xff]  ;;  %v1874_v11 = vadd.f32 %v9533_v35, %v9532_v43 }
 0x2c4   : > { %v4437_v59 = vmul.f32 %v8551_v50, %v4261_v15  ;;  %v9535_v50 = vld [vmem:[#allocation29_spill] sm:$0xff]  ;;  %v9536_v43 = vld [vmem:[#allocation34_spill] sm:$0xff] }
 0x2c5   : > { %5917 = vmatmul.msk.f32.gmra.mxu1 %vm1082_vm1, %v4042_v57  ;;  %5967 = vmatmul.msk.f32.gmra.mxu2 %vm1082_vm1, %v4436_v8  ;;  %v8713_v8 = vpop.f32.mrf.mxu3  ;;  %v2270_v31 = vadd.f32 %v8579_v36, %v1874_v11  ;;  %v1805_v15 = vadd.f32 %v8388_v54, %v9535_v50  ;;  %v4262_v36 = vld [vmem:[#allocation2 + $0x9f] sm:$0xff] }
 0x2c6   : > { %5873 = vmatmul.msk.f32.gmra.mxu0 %vm1082_vm1, %v3654_v0  ;;  %v1802_v0 = vadd.f32 %v9531_v6, %v9530_v48  ;;  %v9537_v54 = vld [vmem:[#allocation30_spill] sm:$0xff] }
 0x2c7   : > { %v2247_v11 = vadd.f32 %v8556_v26, %v1805_v15 }
 0x2c8   : > { %v3030_v63 = vpop.f32.mrf.mxu2  ;;  %v2246_v5 = vadd.f32 %v8530_v51, %v1802_v0 }
 0x2c9   : > { %v8703_v57 = vadd.f32 %v3030_v63, %v2664_v40 }
 0x2ca   : > { %v4146_v52 = vpop.f32.mrf.mxu1  ;;  %v3625_v14 = vpop.permute.xlu1 %3624  ;;  %v2641_v40 = vadd.f32 %v9534_v25, %v2246_v5  ;;  %v2642_v5 = vadd.f32 %v9537_v54, %v2247_v11 }
 0x2cb   : > { %v3655_v30 = vmul.f32 %v3625_v14, %v3479_v55  ;;  %v3868_v55 = vld [vmem:[#allocation2 + $0xa6] sm:$0xff]  ;;  %v3480_v14 = vld [vmem:[#allocation2 + $0xdd] sm:$0x1f]  ;;  %v4005_v11 = vpop.permute.xlu2 %4004 }
 0x2cc   : > { %v4044_v48 = vmul.f32 %v8582_v16, %v3868_v55  ;;  %v8730_v16 = vpop.f32.mrf.mxu0 }
 0x2cd   : > { %5918 = vmatmul.msk.f32.gmra.mxu1 %vm1082_vm1, %v4043_v2  ;;  %5968 = vmatmul.msk.f32.gmra.mxu2 %vm1082_vm1, %v4437_v59  ;;  %v2665_v2 = vadd.f32 %v2638_v10, %v2270_v31  ;;  %v4438_v59 = vmul.f32 %v8543_v32, %v4262_v36  ;;  %v8735_v25 = vpop.f32.mrf.mxu3  ;;  %v8742_v32 = vld [vmem:[%s9367_s5] ss:$0 sm:$0xff]  ;;  %v9540_v36 = vld [vmem:[#allocation33_spill] sm:$0xff] }
 0x2ce   : > { %5874 = vmatmul.msk.f32.gmra.mxu0 %vm1082_vm1, %v3655_v30  ;;  %v3036_v30 = vadd.f32 %v9536_v43, %v2641_v40  ;;  %v9538_v40 = vld [vmem:[#allocation37_spill] sm:$0xff]  ;;  %v4263_v43 = vld [vmem:[#allocation2 + $0xa7] sm:$0xff] }
 0x2cf   : > { %v3037_v55 = vadd.f32 %v9538_v40, %v2642_v5 }
 0x2d0   : > { %v3033_v6 = vpop.f32.mrf.mxu2  ;;  %v3431_v10 = vadd.f32 %v8598_v28, %v3036_v30  ;;  %v4439_v30 = vmul.f32 %v8603_v34, %v4263_v43  ;;  %v9544_v43 = vld [vmem:[#allocation42_spill] sm:$0xff] }
 0x2d1   : > { %v8724_v35 = vadd.f32 %v3033_v6, %v2665_v2  ;;  %v3869_v2 = vld [vmem:[#allocation2 + $0xae] sm:$0xff]  ;;  %v3432_v50 = vadd.f32 %v8613_v41, %v3037_v55 }
 0x2d2   : > { %v4149_v63 = vpop.f32.mrf.mxu1  ;;  %v3630_v51 = vpop.permute.xlu1 %3629  ;;  %v3826_v31 = vadd.f32 %v8656_v38, %v3431_v10  ;;  %v4045_v28 = vmul.f32 %v8634_v9, %v3869_v2  ;;  %v9539_v6 = vld [vmem:[#allocation32_spill] sm:$0xff]  ;;  %v9542_v2 = vld [vmem:[#allocation35_spill] sm:$0xff] }
 0x2d3   : > { %v3656_v0 = vmul.f32 %v3630_v51, %v3480_v14  ;;  %v1808_v38 = vadd.f32 %v8415_v60, %v9539_v6  ;;  %v3827_v9 = vadd.f32 %v8674_v13, %v3432_v50  ;;  %v9541_v10 = vld [vmem:[#allocation40_spill] sm:$0xff]  ;;  %v1811_v13 = vadd.f32 %v8449_v21, %v9542_v2 }
 0x2d4   : > { %v4221_v26 = vadd.f32 %v4146_v52, %v3826_v31  ;;  %v8758_v41 = vpop.f32.mrf.mxu0  ;;  %v9543_v50 = vld [vmem:[#allocation36_spill] sm:$0xff] }
 0x2d5   : > { %5919 = vmatmul.msk.f32.gmra.mxu1 %vm1082_vm1, %v4044_v48  ;;  %5969 = vmatmul.msk.f32.gmra.mxu2 %vm1082_vm1, %v4438_v59  ;;  %v2248_v52 = vadd.f32 %v8575_v46, %v1808_v38  ;;  %v8761_v54 = vpop.f32.mrf.mxu3  ;;  %v3870_v46 = vld [vmem:[#allocation2 + $0xb6] sm:$0xff]  ;;  %v4222_v34 = vadd.f32 %v4149_v63, %v3827_v9  ;;  %v2249_v6 = vadd.f32 %v8596_v19, %v1811_v13 }
 0x2d6   : > { %5875 = vmatmul.msk.f32.gmra.mxu0 %vm1082_vm1, %v3656_v0  ;;  %v4046_v40 = vmul.f32 %v8650_v58, %v3870_v46 }
 0x2d7   : > { %v2643_v0 = vadd.f32 %v9540_v36, %v2248_v52  ;;  %v2644_v58 = vadd.f32 %v9543_v50, %v2249_v6  ;;  %v4010_v36 = vpop.permute.xlu2 %4009  ;;  %v3872_v6 = vld [vmem:[#allocation2 + $0xc6] sm:$0xff] }
 0x2d8   : > { %v4541_v48 = vpop.f32.mrf.mxu2 }
 0x2d9   : > { %v4616_v15 = vadd.f32 %v4541_v48, %v4221_v26  ;;  %v3038_v59 = vadd.f32 %v9541_v10, %v2643_v0  ;;  %v4264_v48 = vld [vmem:[#allocation2 + $0xaf] sm:$0xff]  ;;  %v3039_v52 = vadd.f32 %v9544_v43, %v2644_v58  ;;  %v4048_v43 = vmul.f32 %v4010_v36, %v3872_v6 }
 0x2da   : > { %v4152_v14 = vpop.f32.mrf.mxu1  ;;  %v4440_v38 = vmul.f32 %v8617_v1, %v4264_v48 }
 0x2db   : > { %v8752_v51 = vadd.f32 %v8742_v32, %v4616_v15  ;;  %v3433_v26 = vadd.f32 %v8640_v45, %v3038_v59 }
 0x2dc   : > { %v8783_v46 = vpop.f32.mrf.mxu0 }
 0x2dd   : > { %5920 = vmatmul.msk.f32.gmra.mxu1 %vm1082_vm1, %v4045_v28  ;;  %v4670_v60 = vmul.f32 -1.702, %v8752_v51  ;;  %5970 = vmatmul.msk.f32.gmra.mxu2 %vm1082_vm1, %v4439_v30  ;;  %v3828_v15 = vadd.f32 %v8688_v7, %v3433_v26  ;;  %v3871_v30 = vld [vmem:[#allocation2 + $0xbe] sm:$0xff]  ;;  %v3434_v7 = vadd.f32 %v8661_v56, %v3039_v52 }
 0x2de   : > { %v4047_v1 = vmul.f32 %v4005_v11, %v3871_v30 }
 0x2df   : > { %v4695_v5 = vmul.f32 1.442695, %v4670_v60  ;;  %v4223_v0 = vadd.f32 %v4152_v14, %v3828_v15  ;;  %v4400_v60 = vpop.permute.xlu0 %4399  ;;  %v4265_v14 = vld [vmem:[#allocation2 + $0xb7] sm:$0xff]  ;;  %v3829_v13 = vadd.f32 %v8705_v33, %v3434_v7  ;;  %v9547_v15 = vld [vmem:[#allocation44_spill] sm:$0xff]  ;;  %v4015_v30 = vpop.permute.xlu2 %4014  ;;  %v4266_v7 = vld [vmem:[#allocation2 + $0xbf] sm:$0xff] }
 0x2e0   : > { %v4544_v55 = vpop.f32.mrf.mxu2  ;;  %v4441_v11 = vmul.f32 %v8628_v37, %v4265_v14  ;;  %v4442_v36 = vmul.f32 %v4400_v60, %v4266_v7  ;;  %v9549_v14 = vld [vmem:[#allocation41_spill] sm:$0xff]  ;;  %v9550_v60 = vld [vmem:[#allocation48_spill] sm:$0xff] }
 0x2e1   : > { %6125 = vpow2.f32 %v4695_v5  ;;  %v4617_v28 = vadd.f32 %v4544_v55, %v4222_v34  ;;  %v8785_v34 = vpop.f32.mrf.mxu3 }
 0x2e2   : > { %v4155_v31 = vpop.f32.mrf.mxu1 }
 0x2e3   : > { %v8771_v63 = vadd.f32 %v8742_v32, %v4617_v28  ;;  %v9546_v28 = vld [vmem:[#allocation39_spill] sm:$0xff] }
 0x2e5   : > { %5921 = vmatmul.msk.f32.gmra.mxu1 %vm1082_vm1, %v4046_v40  ;;  %v4671_v21 = vmul.f32 -1.702, %v8771_v63  ;;  %5971 = vmatmul.msk.f32.gmra.mxu2 %vm1082_vm1, %v4440_v38  ;;  %v9545_v40 = vld [vmem:[#allocation38_spill] sm:$0xff]  ;;  %v4224_v38 = vadd.f32 %v4155_v31, %v3829_v13 }
 0x2e6   : > { %v1814_v55 = vadd.f32 %v8487_v47, %v9545_v40 }
 0x2e7   : > { %v6126_v45 = vpop.eup %6125  ;;  %v4697_v19 = vmul.f32 1.442695, %v4671_v21  ;;  %v1817_v21 = vadd.f32 %v8512_v61, %v9547_v15 }
 0x2e8   : > { %v8780_v10 = vadd.f32 1.0, %v6126_v45  ;;  %v4547_v59 = vpop.f32.mrf.mxu2  ;;  %v2250_v56 = vadd.f32 %v8619_v44, %v1814_v55  ;;  %v9548_v45 = vld [vmem:[#allocation45_spill] sm:$0xff] }
 0x2e9   : > { %6127 = vpow2.f32 %v4697_v19  ;;  %v4618_v5 = vadd.f32 %v4547_v59, %v4223_v0  ;;  %v8807_v0 = vpop.f32.mrf.mxu0  ;;  %v8814_v61 = vpop.f32.mrf.mxu3 }
 0x2ea   : > { %v8778_v9 = vpop.f32.mrf.mxu1  ;;  %6129 = vrcp.f32 %v8780_v10  ;;  %v2645_v47 = vadd.f32 %v9546_v28, %v2250_v56  ;;  %v4781_v56 = vand.u32 2147483648, %v8780_v10  ;;  %vm4775_vm6 = vweird.f32 %v8780_v10 }
 0x2eb   : > { %v8793_v2 = vadd.f32 %v8742_v32, %v4618_v5  ;;  %v4405_v5 = vpop.permute.xlu0 %4404 }
 0x2ec   : > { %v3040_v44 = vadd.f32 %v9548_v45, %v2645_v47  ;;  %v4782_v45 = vor.u32 1.1754944e-38, %v4781_v56 }
 0x2ed   : > { %5922 = vmatmul.msk.f32.gmra.mxu1 %vm1082_vm1, %v4047_v1  ;;  %v4672_v26 = vmul.f32 -1.702, %v8793_v2  ;;  %5972 = vmatmul.msk.f32.gmra.mxu2 %vm1082_vm1, %v4441_v11  ;;  %v2251_v1 = vadd.f32 %v8642_v53, %v1817_v21 }
 0x2ee   : > { %v3435_v59 = vadd.f32 %v8676_v62, %v3040_v44  ;;  %v4779_v62 = vand.u32 2147483647, %v8780_v10 }
 0x2ef   : > { %v6128_v48 = vpop.eup %6127  ;;  %v4699_v50 = vmul.f32 1.442695, %v4672_v26  ;;  %v2646_v11 = vadd.f32 %v9549_v14, %v2251_v1 }
 0x2f0   : > { %v6130_v37 = vpop.eup %6129  ;;  %v8805_v33 = vadd.f32 1.0, %v6128_v48  ;;  %v4550_v52 = vpop.f32.mrf.mxu2  ;;  %v3830_v26 = vadd.f32 %v8730_v16, %v3435_v59  ;;  %v3873_v48 = vld [vmem:[#allocation2 + $0xce] sm:$0xff]  ;;  %vm4780_vm8 = vcmp.eq.f32.partialorder %v4779_v62, 8.507059e+37 }
 0x2f1   : > { %v4771_v19 = vmul.f32 %v6130_v37, %v8780_v10  ;;  %6131 = vpow2.f32 %v4699_v50  ;;  %v4619_v31 = vadd.f32 %v4550_v52, %v4224_v38  ;;  %vm4776_vm5 = vweird.f32 %v6130_v37  ;;  %v4267_v10 = vld [vmem:[#allocation2 + $0xc7] sm:$0xff]  ;;  %v8836_v59 = vpop.f32.mrf.mxu0 }
 0x2f2   : > { %v8800_v58 = vpop.f32.mrf.mxu1  ;;  %6133 = vrcp.f32 %v8805_v33  ;;  %v3041_v47 = vadd.f32 %v9550_v60, %v2646_v11  ;;  %v4049_v21 = vmul.f32 %v4015_v30, %v3873_v48  ;;  %vm4777_vm7 = vmor %vm4775_vm6, %vm4776_vm5  ;;  %v4225_v44 = vadd.f32 %v8778_v9, %v3830_v26  ;;  %v4020_v30 = vpop.permute.xlu2 %4019 }
 0x2f3   : > { %v4772_v40 = vsub.f32 1.0, %v4771_v19  ;;  %v8817_v55 = vadd.f32 %v8742_v32, %v4619_v31  ;;  %v4443_v9 = vmul.f32 %v4405_v5, %v4267_v10  ;;  %v4796_v14 = vand.u32 2147483648, %v8805_v33  ;;  %v8840_v11 = vpop.f32.mrf.mxu3 }
 0x2f4   : > { %v3436_v31 = vadd.f32 %v8691_v42, %v3041_v47  ;;  %v3874_v42 = vld [vmem:[#allocation2 + $0xd6] sm:$0xff]  ;;  %vm4790_vm10 = vweird.f32 %v8805_v33 }
 0x2f5   : > { %5923 = vmatmul.msk.f32.gmra.mxu1 %vm1082_vm1, %v4048_v43  ;;  %v4773_v53 = vmul.f32 %v6130_v37, %v4772_v40  ;;  %v4673_v13 = vmul.f32 -1.702, %v8817_v55  ;;  %5973 = vmatmul.msk.f32.gmra.mxu2 %vm1082_vm1, %v4442_v36  ;;  %v4410_v40 = vpop.permute.xlu0 %4409  ;;  %v9551_v47 = vld [vmem:[#allocation49_spill] sm:$0xff] }
 0x2f6   : > { %v3831_v5 = vadd.f32 %v8758_v41, %v3436_v31  ;;  %v3437_v48 = vadd.f32 %v8713_v8, %v9551_v47 }
 0x2f7   : > { %v6132_v28 = vpop.eup %6131  ;;  %v4774_v6 = vadd.f32 %v6130_v37, %v4773_v53  ;;  %v4701_v38 = vmul.f32 1.442695, %v4673_v13  ;;  %v4794_v53 = vand.u32 2147483647, %v8805_v33 }
 0x2f8   : > { %v6134_v15 = vpop.eup %6133  ;;  %v8830_v43 = vadd.f32 1.0, %v6132_v28  ;;  %v4553_v52 = vpop.f32.mrf.mxu2 }
 0x2f9   : > { %v4778_v16 = vsel %vm4777_vm7, %v6130_v37, %v4774_v6  ;;  %v4786_v19 = vmul.f32 %v6134_v15, %v8805_v33  ;;  %6135 = vpow2.f32 %v4701_v38  ;;  %v4620_v37 = vadd.f32 %v4553_v52, %v4225_v44  ;;  %v4268_v33 = vld [vmem:[#allocation2 + $0xcf] sm:$0xff] }
 0x2fa   : > { %v8827_v50 = vpop.f32.mrf.mxu1  ;;  %v4783_v1 = vsel %vm4780_vm8, %v4782_v45, %v4778_v16  ;;  %6137 = vrcp.f32 %v8830_v43  ;;  %vm4791_vm9 = vweird.f32 %v6134_v15  ;;  %v4050_v6 = vmul.f32 %v4020_v30, %v3874_v42 }
 0x2fb   : > { %v5145_v7 = vmul.f32 %v4783_v1, %v8752_v51  ;;  %v4787_v36 = vsub.f32 1.0, %v4786_v19  ;;  %v8844_v62 = vadd.f32 %v8742_v32, %v4620_v37  ;;  %vm4792_vm11 = vmor %vm4790_vm10, %vm4791_vm9  ;;  %v4797_v38 = vor.u32 1.1754944e-38, %v4796_v14  ;;  %v8872_v14 = vpop.f32.mrf.mxu3 }
 0x2fc   : > { %vm4795_vm12 = vcmp.eq.f32.partialorder %v4794_v53, 8.507059e+37  ;;  %v4226_v19 = vadd.f32 %v8800_v58, %v3831_v5  ;;  %v4444_v8 = vmul.f32 %v4410_v40, %v4268_v33  ;;  %v4811_v1 = vand.u32 2147483648, %v8830_v43  ;;  %v4269_v5 = vld [vmem:[#allocation2 + $0xd7] sm:$0xff] }
 0x2fd   : > { %5924 = vmatmul.msk.f32.gmra.mxu1 %vm1082_vm1, %v4049_v21  ;;  %v4788_v56 = vmul.f32 %v6134_v15, %v4787_v36  ;;  %5974 = vmatmul.msk.f32.gmra.mxu2 %vm1082_vm1, %v4443_v9  ;;  %v4674_v26 = vmul.f32 -1.702, %v8844_v62  ;;  %v3832_v30 = vadd.f32 %v8783_v46, %v3437_v48  ;;  %v4025_v9 = vpop.permute.xlu2 %4024  ;;  %v8864_v36 = vpop.f32.mrf.mxu0  ;;  %v4809_v58 = vand.u32 2147483647, %v8830_v43 }
 0x2fe   : > { %5978 = vmatmul.msk.f32.vlgmr.msra.gmra.mxu3 %vm1082_vm1, %v5145_v7  ;;  %v3875_v7 = vld [vmem:[#allocation2 + $0xde] sm:$0x1f]  ;;  %vm4805_vm14 = vweird.f32 %v8830_v43 }
 0x2ff   : > { %v6136_v51 = vpop.eup %6135  ;;  %v4789_v13 = vadd.f32 %v6134_v15, %v4788_v56  ;;  %v4703_v52 = vmul.f32 1.442695, %v4674_v26  ;;  %v4227_v46 = vadd.f32 %v8827_v50, %v3832_v30  ;;  %vm4810_vm2 = vcmp.eq.f32.partialorder %v4809_v58, 8.507059e+37 }
 0x300   : > { %v6138_v60 = vpop.eup %6137  ;;  %v8855_v21 = vadd.f32 1.0, %v6136_v51  ;;  %v4556_v45 = vpop.f32.mrf.mxu2  ;;  %v4051_v51 = vmul.f32 %v4025_v9, %v3875_v7  ;;  %v4270_v7 = vld [vmem:[#allocation2 + $0xdf] sm:$0x1f] }
 0x301   : > { %v4793_v44 = vsel %vm4792_vm11, %v6134_v15, %v4789_v13  ;;  %v4801_v41 = vmul.f32 %v6138_v60, %v8830_v43  ;;  %v4621_v15 = vadd.f32 %v4556_v45, %v4226_v19  ;;  %vm4806_vm13 = vweird.f32 %v6138_v60 }
 0x302   : > { %v8851_v28 = vpop.f32.mrf.mxu1  ;;  %v4798_v16 = vsel %vm4795_vm12, %v4797_v38, %v4793_v44  ;;  %6139 = vrcp.f32 %v8855_v21  ;;  %vm4807_vm15 = vmor %vm4805_vm14, %vm4806_vm13  ;;  %v4812_v13 = vor.u32 1.1754944e-38, %v4811_v1  ;;  %v3438_v43 = vadd.f32 %v8735_v25, %v8418_v39 }
 0x303   : > { %v5146_v31 = vmul.f32 %v4798_v16, %v8771_v63  ;;  %v4802_v10 = vsub.f32 1.0, %v4801_v41  ;;  %6141 = vpow2.f32 %v4703_v52  ;;  %v4415_v63 = vpop.permute.xlu0 %4414  ;;  %v8870_v40 = vadd.f32 %v8742_v32, %v4621_v15 }
 0x304   : > { %v4445_v52 = vmul.f32 %v4415_v63, %v4269_v5  ;;  %vm4820_vm4 = vweird.f32 %v8855_v21 }
 0x305   : > { %5925 = vmatmul.msk.f32.gmra.mxu1 %vm1082_vm1, %v4050_v6  ;;  %v4803_v37 = vmul.f32 %v6138_v60, %v4802_v10  ;;  %5975 = vmatmul.msk.f32.gmra.mxu2 %vm1082_vm1, %v4444_v8  ;;  %v4675_v26 = vmul.f32 -1.702, %v8870_v40  ;;  %v4824_v8 = vand.u32 2147483647, %v8855_v21  ;;  %v8893_v39 = vpop.f32.mrf.mxu0 }
 0x306   : > { %5979 = vmatmul.msk.f32.gmra.mxu3 %vm1082_vm1, %v5146_v31  ;;  %v4826_v31 = vand.u32 2147483648, %v8855_v21 }
 0x307   : > { %v4804_v42 = vadd.f32 %v6138_v60, %v4803_v37  ;;  %v4705_v41 = vmul.f32 1.442695, %v4675_v26  ;;  %vm4825_vm6 = vcmp.eq.f32.partialorder %v4824_v8, 8.507059e+37 }
 0x308   : > { %v6140_v53 = vpop.eup %6139  ;;  %v4559_v47 = vpop.f32.mrf.mxu2  ;;  %v4827_v37 = vor.u32 1.1754944e-38, %v4826_v31 }
 0x309   : > { %v6142_v48 = vpop.eup %6141  ;;  %v4808_v6 = vsel %vm4807_vm15, %v6138_v60, %v4804_v42  ;;  %v4816_v38 = vmul.f32 %v6140_v53, %v8855_v21  ;;  %v4622_v45 = vadd.f32 %v4559_v47, %v4227_v46  ;;  %v3833_v60 = vadd.f32 %v8807_v0, %v3438_v43 }
 0x30a   : > { %v8876_v56 = vpop.f32.mrf.mxu1  ;;  %v4813_v50 = vsel %vm4810_vm2, %v4812_v13, %v4808_v6  ;;  %v8882_v44 = vadd.f32 1.0, %v6142_v48  ;;  %vm4821_vm3 = vweird.f32 %v6140_v53 }
 0x30b   : > { %v5147_v33 = vmul.f32 %v4813_v50, %v8793_v2  ;;  %v4817_v16 = vsub.f32 1.0, %v4816_v38  ;;  %v8887_v19 = vadd.f32 %v8742_v32, %v4622_v45  ;;  %v8898_v2 = vpop.f32.mrf.mxu3  ;;  %v4228_v1 = vadd.f32 %v8851_v28, %v3833_v60  ;;  %v4420_v9 = vpop.permute.xlu0 %4419  ;;  %vm4822_vm5 = vmor %vm4820_vm4, %vm4821_vm3 }
 0x30c   : > { %6143 = vrcp.f32 %v8882_v44  ;;  %v4446_v21 = vmul.f32 %v4420_v9, %v4270_v7  ;;  %vm4835_vm8 = vweird.f32 %v8882_v44 }
 0x30d   : > { %5926 = vmatmul.msk.f32.gmra.mxu1 %vm1082_vm1, %v4051_v51  ;;  %v4818_v25 = vmul.f32 %v6140_v53, %v4817_v16  ;;  %6145 = vpow2.f32 %v4705_v41  ;;  %v4676_v10 = vmul.f32 -1.702, %v8887_v19  ;;  %5976 = vmatmul.msk.f32.gmra.mxu2 %vm1082_vm1, %v4445_v52  ;;  %v3439_v51 = vadd.f32 %v8761_v54, %v8445_v4  ;;  %v8915_v45 = vpop.f32.mrf.mxu0 }
 0x30e   : > { %5980 = vmatmul.msk.f32.gmra.mxu3 %vm1082_vm1, %v5147_v33  ;;  %v4841_v4 = vand.u32 2147483648, %v8882_v44 }
 0x30f   : > { %v4819_v0 = vadd.f32 %v6140_v53, %v4818_v25  ;;  %v4707_v15 = vmul.f32 1.442695, %v4676_v10  ;;  %v3834_v48 = vadd.f32 %v8836_v59, %v3439_v51  ;;  %v4839_v59 = vand.u32 2147483647, %v8882_v44 }
 0x310   : > { %v4562_v58 = vpop.f32.mrf.mxu2 }
 0x311   : > { %v4823_v63 = vsel %vm4822_vm5, %v6140_v53, %v4819_v0  ;;  %6147 = vpow2.f32 %v4707_v15  ;;  %v4623_v42 = vadd.f32 %v4562_v58, %v4228_v1  ;;  %v4229_v54 = vadd.f32 %v8876_v56, %v3834_v48 }
 0x312   : > { %v4173_v30 = vpop.f32.mrf.mxu1  ;;  %v6144_v46 = vpop.eup %6143  ;;  %v4828_v5 = vsel %vm4825_vm6, %v4827_v37, %v4823_v63  ;;  %v4842_v56 = vor.u32 1.1754944e-38, %v4841_v4  ;;  %vm4840_vm10 = vcmp.eq.f32.partialorder %v4839_v59, 8.507059e+37  ;;  %v3440_v0 = vadd.f32 %v8785_v34, %v8472_v3 }
 0x313   : > { %v6146_v13 = vpop.eup %6145  ;;  %v5148_v28 = vmul.f32 %v4828_v5, %v8817_v55  ;;  %v4831_v26 = vmul.f32 %v6144_v46, %v8882_v44  ;;  %v8907_v47 = vadd.f32 %v8742_v32, %v4623_v42  ;;  %vm4836_vm7 = vweird.f32 %v6144_v46  ;;  %v8923_v8 = vpop.f32.mrf.mxu3 }
 0x314   : > { %v4750_v53 = vadd.f32 1.0, %v6146_v13  ;;  %vm4837_vm9 = vmor %vm4835_vm8, %vm4836_vm7  ;;  %v3835_v7 = vadd.f32 %v8864_v36, %v3440_v0 }
 0x315   : > { %v4832_v6 = vsub.f32 1.0, %v4831_v26  ;;  %v4677_v38 = vmul.f32 -1.702, %v8907_v47  ;;  %5977 = vmatmul.msk.f32.gmra.mxu2 %vm1082_vm1, %v4446_v21 }
 0x316   : > { %5981 = vmatmul.msk.f32.gmra.mxu3 %vm1082_vm1, %v5148_v28  ;;  %6149 = vrcp.f32 %v4750_v53  ;;  %v4854_v51 = vand.u32 2147483647, %v4750_v53  ;;  %v4856_v5 = vand.u32 2147483648, %v4750_v53  ;;  %v4230_v13 = vadd.f32 %v4173_v30, %v3835_v7 }
 0x317   : > { %v6148_v55 = vpop.eup %6147  ;;  %v4833_v43 = vmul.f32 %v6144_v46, %v4832_v6  ;;  %v4709_v50 = vmul.f32 1.442695, %v4677_v38  ;;  %vm4850_vm12 = vweird.f32 %v4750_v53 }
 0x318   : > { %v8920_v52 = vadd.f32 1.0, %v6148_v55  ;;  %v4565_v33 = vpop.f32.mrf.mxu2  ;;  %vm4855_vm14 = vcmp.eq.f32.partialorder %v4854_v51, 8.507059e+37  ;;  %v4857_v30 = vor.u32 1.1754944e-38, %v4856_v5 }
 0x319   : > { %v4834_v16 = vadd.f32 %v6144_v46, %v4833_v43  ;;  %6151 = vpow2.f32 %v4709_v50  ;;  %v4624_v60 = vadd.f32 %v4565_v33, %v4229_v54 }
 0x31a   : > { %v8918_v41 = vpop.f32.mrf.mxu1  ;;  %6153 = vrcp.f32 %v8920_v52  ;;  %v4869_v38 = vand.u32 2147483647, %v8920_v52  ;;  %v4871_v4 = vand.u32 2147483648, %v8920_v52  ;;  %vm4865_vm2 = vweird.f32 %v8920_v52 }
 0x31b   : > { %v4838_v31 = vsel %vm4837_vm9, %v6144_v46, %v4834_v16  ;;  %v8927_v25 = vadd.f32 %v8742_v32, %v4624_v60  ;;  %v8943_v6 = vpop.f32.mrf.mxu3 }
 0x31c   : > { %v6150_v10 = vpop.eup %6149  ;;  %v4843_v1 = vsel %vm4840_vm10, %v4842_v56, %v4838_v31  ;;  %v4872_v0 = vor.u32 1.1754944e-38, %v4871_v4  ;;  %vm4870_vm4 = vcmp.eq.f32.partialorder %v4869_v38, 8.507059e+37 }
 0x31d   : > { %v5149_v44 = vmul.f32 %v4843_v1, %v8844_v62  ;;  %v4846_v15 = vmul.f32 %v6150_v10, %v4750_v53  ;;  %v4678_v9 = vmul.f32 -1.702, %v8927_v25  ;;  %v8939_v62 = vpop.f32.mrf.mxu0  ;;  %vm4851_vm11 = vweird.f32 %v6150_v10 }
 0x31e   : > { %vm4852_vm13 = vmor %vm4850_vm12, %vm4851_vm11  ;;  %v3441_v53 = vadd.f32 %v8814_v61, %v8501_v17 }
 0x31f   : > { %v6152_v37 = vpop.eup %6151  ;;  %v4847_v58 = vsub.f32 1.0, %v4846_v15  ;;  %v4711_v63 = vmul.f32 1.442695, %v4678_v9  ;;  %5982 = vmatmul.msk.f32.gmra.mxu3 %vm1082_vm1, %v5149_v44 }
 0x320   : > { %v6154_v46 = vpop.eup %6153  ;;  %v8937_v3 = vadd.f32 1.0, %v6152_v37  ;;  %v4568_v34 = vpop.f32.mrf.mxu2 }
 0x321   : > { %v4848_v21 = vmul.f32 %v6150_v10, %v4847_v58  ;;  %v4861_v36 = vmul.f32 %v6154_v46, %v8920_v52  ;;  %6155 = vpow2.f32 %v4711_v63  ;;  %v4625_v48 = vadd.f32 %v4568_v34, %v4230_v13 }
 0x322   : > { %v8934_v42 = vpop.f32.mrf.mxu1  ;;  %6157 = vrcp.f32 %v8937_v3  ;;  %vm4866_vm15 = vweird.f32 %v6154_v46  ;;  %v3442_v52 = vadd.f32 %v8840_v11, %v8517_v23  ;;  %v4886_v63 = vand.u32 2147483648, %v8937_v3 }
 0x323   : > { %v4849_v28 = vadd.f32 %v6150_v10, %v4848_v21  ;;  %v4862_v26 = vsub.f32 1.0, %v4861_v36  ;;  %v8948_v43 = vadd.f32 %v8742_v32, %v4625_v48  ;;  %vm4867_vm3 = vmor %vm4865_vm2, %vm4866_vm15  ;;  %v8967_v58 = vpop.f32.mrf.mxu3  ;;  %v4884_v23 = vand.u32 2147483647, %v8937_v3 }
 0x324   : > { %v3837_v37 = vadd.f32 %v8915_v45, %v3442_v52  ;;  %vm4880_vm6 = vweird.f32 %v8937_v3  ;;  %v3443_v21 = vadd.f32 %v8872_v14, %v8533_v20  ;;  %v4887_v36 = vor.u32 1.1754944e-38, %v4886_v63 }
 0x325   : > { %v4853_v54 = vsel %vm4852_vm13, %v6150_v10, %v4849_v28  ;;  %v4863_v55 = vmul.f32 %v6154_v46, %v4862_v26  ;;  %v4679_v60 = vmul.f32 -1.702, %v8948_v43  ;;  %v3836_v10 = vadd.f32 %v8893_v39, %v3441_v53  ;;  %v8958_v15 = vpop.f32.mrf.mxu0 }
 0x326   : > { %v4858_v59 = vsel %vm4855_vm14, %v4857_v30, %v4853_v54  ;;  %v4232_v13 = vadd.f32 %v8934_v42, %v3837_v37  ;;  %vm4885_vm8 = vcmp.eq.f32.partialorder %v4884_v23, 8.507059e+37  ;;  %v3838_v54 = vadd.f32 %v8939_v62, %v3443_v21 }
 0x327   : > { %v6156_v50 = vpop.eup %6155  ;;  %v5150_v33 = vmul.f32 %v4858_v59, %v8870_v40  ;;  %v4864_v16 = vadd.f32 %v6154_v46, %v4863_v55  ;;  %v4713_v40 = vmul.f32 1.442695, %v4679_v60  ;;  %v4231_v39 = vadd.f32 %v8918_v41, %v3836_v10 }
 0x328   : > { %v6158_v31 = vpop.eup %6157  ;;  %v8956_v1 = vadd.f32 1.0, %v6156_v50  ;;  %v4571_v44 = vpop.f32.mrf.mxu2  ;;  %v3444_v52 = vadd.f32 %v8898_v2, %v8549_v49 }
 0x329   : > { %v4868_v17 = vsel %vm4867_vm3, %v6154_v46, %v4864_v16  ;;  %v4876_v61 = vmul.f32 %v6158_v31, %v8937_v3  ;;  %5983 = vmatmul.msk.f32.gmra.mxu3 %vm1082_vm1, %v5150_v33  ;;  %v4626_v46 = vadd.f32 %v4571_v44, %v4231_v39  ;;  %vm4881_vm5 = vweird.f32 %v6158_v31 }
 0x32a   : > { %v4182_v56 = vpop.f32.mrf.mxu1  ;;  %v4873_v9 = vsel %vm4870_vm4, %v4872_v0, %v4868_v17  ;;  %6159 = vrcp.f32 %v8956_v1  ;;  %vm4882_vm7 = vmor %vm4880_vm6, %vm4881_vm5  ;;  %v4899_v53 = vand.u32 2147483647, %v8956_v1  ;;  %v4901_v59 = vand.u32 2147483648, %v8956_v1 }
 0x32b   : > { %v4877_v7 = vsub.f32 1.0, %v4876_v61  ;;  %6161 = vpow2.f32 %v4713_v40  ;;  %v5151_v51 = vmul.f32 %v4873_v9, %v8887_v19  ;;  %v8973_v11 = vadd.f32 %v8742_v32, %v4626_v46  ;;  %v8992_v60 = vpop.f32.mrf.mxu3 }
 0x32c   : > { %vm4895_vm10 = vweird.f32 %v8956_v1  ;;  %v4902_v44 = vor.u32 1.1754944e-38, %v4901_v59  ;;  %vm4900_vm12 = vcmp.eq.f32.partialorder %v4899_v53, 8.507059e+37 }
 0x32d   : > { %v4878_v5 = vmul.f32 %v6158_v31, %v4877_v7  ;;  %v4680_v19 = vmul.f32 -1.702, %v8973_v11  ;;  %v8983_v55 = vpop.f32.mrf.mxu0 }
 0x32f   : > { %v4879_v41 = vadd.f32 %v6158_v31, %v4878_v5  ;;  %v4715_v4 = vmul.f32 1.442695, %v4680_v19 }
 0x330   : > { %v6160_v34 = vpop.eup %6159  ;;  %v4574_v28 = vpop.f32.mrf.mxu2 }
 0x331   : > { %v6162_v26 = vpop.eup %6161  ;;  %v4883_v48 = vsel %vm4882_vm7, %v6158_v31, %v4879_v41  ;;  %v4891_v30 = vmul.f32 %v6160_v34, %v8956_v1  ;;  %5984 = vmatmul.msk.f32.gmra.mxu3 %vm1082_vm1, %v5151_v51  ;;  %v4627_v3 = vadd.f32 %v4574_v28, %v4232_v13  ;;  %vm4896_vm9 = vweird.f32 %v6160_v34 }
 0x332   : > { %v4185_v45 = vpop.f32.mrf.mxu1  ;;  %v4888_v38 = vsel %vm4885_vm8, %v4887_v36, %v4883_v48  ;;  %v4754_v42 = vadd.f32 1.0, %v6162_v26  ;;  %v4233_v31 = vadd.f32 %v4182_v56, %v3838_v54  ;;  %vm4897_vm11 = vmor %vm4895_vm10, %vm4896_vm9  ;;  %v3839_v1 = vadd.f32 %v8958_v15, %v3444_v52 }
 0x333   : > { %v4892_v20 = vsub.f32 1.0, %v4891_v30  ;;  %v8986_v14 = vadd.f32 %v8742_v32, %v4627_v3  ;;  %v5152_v50 = vmul.f32 %v4888_v38, %v8907_v47  ;;  %v9008_v36 = vpop.f32.mrf.mxu3  ;;  %v3445_v3 = vadd.f32 %v8923_v8, %v8566_v27 }
 0x334   : > { %6163 = vrcp.f32 %v4754_v42  ;;  %v4916_v23 = vand.u32 2147483648, %v4754_v42  ;;  %v4234_v41 = vadd.f32 %v4185_v45, %v3839_v1  ;;  %v4914_v13 = vand.u32 2147483647, %v4754_v42 }
 0x335   : > { %v4893_v33 = vmul.f32 %v6160_v34, %v4892_v20  ;;  %6165 = vpow2.f32 %v4715_v4  ;;  %v4681_v16 = vmul.f32 -1.702, %v8986_v14  ;;  %v9002_v63 = vpop.f32.mrf.mxu0  ;;  %vm4910_vm14 = vweird.f32 %v4754_v42 }
 0x336   : > { %v4917_v45 = vor.u32 1.1754944e-38, %v4916_v23  ;;  %vm4915_vm2 = vcmp.eq.f32.partialorder %v4914_v13, 8.507059e+37  ;;  %v3840_v53 = vadd.f32 %v8983_v55, %v3445_v3 }
 0x337   : > { %v4894_v62 = vadd.f32 %v6160_v34, %v4893_v33  ;;  %v4717_v10 = vmul.f32 1.442695, %v4681_v16 }
 0x338   : > { %v4577_v17 = vpop.f32.mrf.mxu2 }
 0x339   : > { %v4898_v61 = vsel %vm4897_vm11, %v6160_v34, %v4894_v62  ;;  %6167 = vpow2.f32 %v4717_v10  ;;  %5985 = vmatmul.msk.f32.gmra.mxu3 %vm1082_vm1, %v5152_v50  ;;  %v4628_v47 = vadd.f32 %v4577_v17, %v4233_v31 }
 0x33a   : > { %v4188_v0 = vpop.f32.mrf.mxu1  ;;  %v6164_v40 = vpop.eup %6163  ;;  %v4903_v9 = vsel %vm4900_vm12, %v4902_v44, %v4898_v61 }
 0x33b   : > { %v6166_v39 = vpop.eup %6165  ;;  %v4906_v7 = vmul.f32 %v6164_v40, %v4754_v42  ;;  %v8999_v56 = vadd.f32 %v8742_v32, %v4628_v47  ;;  %v5153_v46 = vmul.f32 %v4903_v9, %v8927_v25  ;;  %vm4911_vm13 = vweird.f32 %v6164_v40  ;;  %v9024_v31 = vpop.f32.mrf.mxu3 }
 0x33c   : > { %v4755_v37 = vadd.f32 1.0, %v6166_v39  ;;  %vm4912_vm15 = vmor %vm4910_vm14, %vm4911_vm13  ;;  %v4235_v27 = vadd.f32 %v4188_v0, %v3840_v53 }
 0x33d   : > { %v4907_v51 = vsub.f32 1.0, %v4906_v7  ;;  %v4682_v5 = vmul.f32 -1.702, %v8999_v56  ;;  %v3799_v4 = vpop.f32.mrf.mxu0 }
 0x33e   : > { %6169 = vrcp.f32 %v4755_v37  ;;  %v4929_v10 = vand.u32 2147483647, %v4755_v37  ;;  %v4931_v44 = vand.u32 2147483648, %v4755_v37  ;;  %vm4925_vm4 = vweird.f32 %v4755_v37 }
 0x33f   : > { %v6168_v49 = vpop.eup %6167  ;;  %v4908_v2 = vmul.f32 %v6164_v40, %v4907_v51  ;;  %v4719_v34 = vmul.f32 1.442695, %v4682_v5 }
 0x340   : > { %v9010_v15 = vadd.f32 1.0, %v6168_v49  ;;  %v4580_v19 = vpop.f32.mrf.mxu2  ;;  %vm4930_vm6 = vcmp.eq.f32.partialorder %v4929_v10, 8.507059e+37  ;;  %v4932_v52 = vor.u32 1.1754944e-38, %v4931_v44 }
 0x341   : > { %v4909_v28 = vadd.f32 %v6164_v40, %v4908_v2  ;;  %6171 = vpow2.f32 %v4719_v34  ;;  %5986 = vmatmul.msk.f32.gmra.mxu3 %vm1082_vm1, %v5153_v46  ;;  %v4629_v25 = vadd.f32 %v4580_v19, %v4234_v41  ;;  %v3446_v46 = vadd.f32 %v8943_v6, %v8584_v24 }
 0x342   : > { %v9006_v21 = vpop.f32.mrf.mxu1  ;;  %6173 = vrcp.f32 %v9010_v15  ;;  %v4944_v0 = vand.u32 2147483647, %v9010_v15  ;;  %v4946_v9 = vand.u32 2147483648, %v9010_v15  ;;  %vm4940_vm8 = vweird.f32 %v9010_v15 }
 0x343   : > { %v4913_v26 = vsel %vm4912_vm15, %v6164_v40, %v4909_v28  ;;  %v9015_v48 = vadd.f32 %v8742_v32, %v4629_v25  ;;  %v3841_v34 = vadd.f32 %v9002_v63, %v3446_v46 }
 0x344   : > { %v6170_v30 = vpop.eup %6169  ;;  %v4918_v38 = vsel %vm4915_vm2, %v4917_v45, %v4913_v26  ;;  %v4947_v19 = vor.u32 1.1754944e-38, %v4946_v9  ;;  %vm4945_vm10 = vcmp.eq.f32.partialorder %v4944_v0, 8.507059e+37  ;;  %v9048_v26 = vpop.f32.mrf.mxu3 }
 0x345   : > { %v5154_v42 = vmul.f32 %v4918_v38, %v8948_v43  ;;  %v4921_v54 = vmul.f32 %v6170_v30, %v4755_v37  ;;  %v4683_v20 = vmul.f32 -1.702, %v9015_v48  ;;  %vm4926_vm3 = vweird.f32 %v6170_v30  ;;  %v3802_v5 = vpop.f32.mrf.mxu0 }
 0x346   : > { %vm4927_vm5 = vmor %vm4925_vm4, %vm4926_vm3  ;;  %v4236_v63 = vadd.f32 %v9006_v21, %v3841_v34 }
 0x347   : > { %v6172_v59 = vpop.eup %6171  ;;  %v4922_v50 = vsub.f32 1.0, %v4921_v54  ;;  %v4721_v33 = vmul.f32 1.442695, %v4683_v20 }
 0x348   : > { %v6174_v62 = vpop.eup %6173  ;;  %v9026_v8 = vadd.f32 1.0, %v6172_v59  ;;  %v4583_v17 = vpop.f32.mrf.mxu2 }
 0x349   : > { %v4923_v43 = vmul.f32 %v6170_v30, %v4922_v50  ;;  %v4936_v61 = vmul.f32 %v6174_v62, %v9010_v15  ;;  %6175 = vpow2.f32 %v4721_v33  ;;  %5987 = vmatmul.msk.f32.gmra.mxu3 %vm1082_vm1, %v5154_v42  ;;  %v4630_v40 = vadd.f32 %v4583_v17, %v4235_v27 }
 0x34a   : > { %v9022_v16 = vpop.f32.mrf.mxu1  ;;  %6177 = vrcp.f32 %v9026_v8  ;;  %vm4941_vm7 = vweird.f32 %v6174_v62  ;;  %v4961_v42 = vand.u32 2147483648, %v9026_v8  ;;  %v4959_v59 = vand.u32 2147483647, %v9026_v8 }
 0x34b   : > { %v4924_v55 = vadd.f32 %v6170_v30, %v4923_v43  ;;  %v4937_v47 = vsub.f32 1.0, %v4936_v61  ;;  %v9034_v1 = vadd.f32 %v8742_v32, %v4630_v40  ;;  %vm4942_vm9 = vmor %vm4940_vm8, %vm4941_vm7  ;;  %vm4955_vm12 = vweird.f32 %v9026_v8 }
 0x34c   : > { %v4962_v10 = vor.u32 1.1754944e-38, %v4961_v42  ;;  %vm4960_vm14 = vcmp.eq.f32.partialorder %v4959_v59, 8.507059e+37  ;;  %v9073_v9 = vpop.f32.mrf.mxu3 }
 0x34d   : > { %v4928_v39 = vsel %vm4927_vm5, %v6170_v30, %v4924_v55  ;;  %v4938_v7 = vmul.f32 %v6174_v62, %v4937_v47  ;;  %v4684_v49 = vmul.f32 -1.702, %v9034_v1  ;;  %v3805_v17 = vpop.f32.mrf.mxu0 }
 0x34e   : > { %v4933_v51 = vsel %vm4930_vm6, %v4932_v52, %v4928_v39  ;;  %v9068_v52 = vld [vmem:[%s9367_s5] ss:$0 sm:$0xff] }
 0x34f   : > { %v6176_v37 = vpop.eup %6175  ;;  %v5155_v23 = vmul.f32 %v4933_v51, %v8973_v11  ;;  %v4939_v41 = vadd.f32 %v6174_v62, %v4938_v7  ;;  %v4723_v45 = vmul.f32 1.442695, %v4684_v49  ;;  %v9552_v11 = vld [vmem:[#allocation5_spill] sm:$0xff] }
 0x350   : > { %v6178_v13 = vpop.eup %6177  ;;  %v9042_v28 = vadd.f32 1.0, %v6176_v37  ;;  %v4586_v25 = vpop.f32.mrf.mxu2  ;;  %v3447_v15 = vadd.f32 %v8967_v58, %v9552_v11 }
 0x351   : > { %v4943_v24 = vsel %vm4942_vm9, %v6174_v62, %v4939_v41  ;;  %v4951_v6 = vmul.f32 %v6178_v13, %v9026_v8  ;;  %5988 = vmatmul.msk.f32.gmra.mxu3 %vm1082_vm1, %v5155_v23  ;;  %v4631_v54 = vadd.f32 %v4586_v25, %v4236_v63  ;;  %vm4956_vm11 = vweird.f32 %v6178_v13  ;;  %v9553_v62 = vld [vmem:[#allocation4_spill] sm:$0xff] }
 0x352   : > { %v4197_v2 = vpop.f32.mrf.mxu1  ;;  %v4948_v30 = vsel %vm4945_vm10, %v4947_v19, %v4943_v24  ;;  %6179 = vrcp.f32 %v9042_v28  ;;  %v3842_v38 = vadd.f32 %v3799_v4, %v3447_v15  ;;  %v3448_v4 = vadd.f32 %v8992_v60, %v9553_v62  ;;  %vm4957_vm13 = vmor %vm4955_vm12, %vm4956_vm11  ;;  %v9554_v24 = vld [vmem:[#allocation6_spill] sm:$0xff] }
 0x353   : > { %v4952_v3 = vsub.f32 1.0, %v4951_v6  ;;  %6181 = vpow2.f32 %v4723_v45  ;;  %v5156_v20 = vmul.f32 %v4948_v30, %v8986_v14  ;;  %v9056_v58 = vadd.f32 %v8742_v32, %v4631_v54 }
 0x354   : > { %v4237_v21 = vadd.f32 %v9022_v16, %v3842_v38  ;;  %v3843_v40 = vadd.f32 %v3802_v5, %v3448_v4  ;;  %v4974_v39 = vand.u32 2147483647, %v9042_v28  ;;  %v4976_v7 = vand.u32 2147483648, %v9042_v28  ;;  %v9086_v63 = vpop.f32.mrf.mxu3 }
 0x355   : > { %v4953_v53 = vmul.f32 %v6178_v13, %v4952_v3  ;;  %v4685_v14 = vmul.f32 -1.702, %v9056_v58  ;;  %vm4970_vm2 = vweird.f32 %v9042_v28  ;;  %v3808_v34 = vpop.f32.mrf.mxu0  ;;  %v3449_v6 = vadd.f32 %v9008_v36, %v9554_v24 }
 0x356   : > { %v4238_v23 = vadd.f32 %v4197_v2, %v3843_v40  ;;  %v4977_v49 = vor.u32 1.1754944e-38, %v4976_v7  ;;  %vm4975_vm4 = vcmp.eq.f32.partialorder %v4974_v39, 8.507059e+37 }
 0x357   : > { %v4954_v50 = vadd.f32 %v6178_v13, %v4953_v53  ;;  %v4725_v47 = vmul.f32 1.442695, %v4685_v14  ;;  %v3844_v30 = vadd.f32 %v3805_v17, %v3449_v6 }
 0x358   : > { %v6180_v33 = vpop.eup %6179  ;;  %v4589_v44 = vpop.f32.mrf.mxu2 }
 0x359   : > { %v6182_v27 = vpop.eup %6181  ;;  %v4958_v43 = vsel %vm4957_vm13, %v6178_v13, %v4954_v50  ;;  %v4966_v32 = vmul.f32 %v6180_v33, %v9042_v28  ;;  %5989 = vmatmul.msk.f32.gmra.mxu3 %vm1082_vm1, %v5156_v20  ;;  %v4632_v8 = vadd.f32 %v4589_v44, %v4237_v21  ;;  %vm4971_vm15 = vweird.f32 %v6180_v33 }
 0x35a   : > { %v4200_v61 = vpop.f32.mrf.mxu1  ;;  %v4963_v16 = vsel %vm4960_vm14, %v4962_v10, %v4958_v43  ;;  %v4759_v55 = vadd.f32 1.0, %v6182_v27  ;;  %vm4972_vm3 = vmor %vm4970_vm2, %vm4971_vm15  ;;  %v3450_v43 = vadd.f32 %v9024_v31, %v8648_v18 }
 0x35b   : > { %v4967_v60 = vsub.f32 1.0, %v4966_v32  ;;  %v9071_v0 = vadd.f32 %v9068_v52, %v4632_v8  ;;  %v5157_v46 = vmul.f32 %v4963_v16, %v8999_v56  ;;  %v4239_v53 = vadd.f32 %v4200_v61, %v3844_v30 }
 0x35c   : > { %6183 = vrcp.f32 %v4759_v55  ;;  %v4991_v20 = vand.u32 2147483648, %v4759_v55  ;;  %v4989_v50 = vand.u32 2147483647, %v4759_v55  ;;  %vm4985_vm6 = vweird.f32 %v4759_v55 }
 0x35d   : > { %v4968_v51 = vmul.f32 %v6180_v33, %v4967_v60  ;;  %6185 = vpow2.f32 %v4725_v47  ;;  %v4686_v37 = vmul.f32 -1.702, %v9071_v0  ;;  %v3811_v14 = vpop.f32.mrf.mxu0  ;;  %v9101_v47 = vpop.f32.mrf.mxu3  ;;  %v3845_v40 = vadd.f32 %v3808_v34, %v3450_v43 }
 0x35e   : > { %v4992_v10 = vor.u32 1.1754944e-38, %v4991_v20  ;;  %vm4990_vm8 = vcmp.eq.f32.partialorder %v4989_v50, 8.507059e+37 }
 0x35f   : > { %v4969_v5 = vadd.f32 %v6180_v33, %v4968_v51  ;;  %v4727_v41 = vmul.f32 1.442695, %v4686_v37 }
 0x360   : > { %v4592_v13 = vpop.f32.mrf.mxu2 }
 0x361   : > { %v4973_v19 = vsel %vm4972_vm3, %v6180_v33, %v4969_v5  ;;  %6187 = vpow2.f32 %v4727_v41  ;;  %5990 = vmatmul.msk.f32.gmra.mxu3 %vm1082_vm1, %v5157_v46  ;;  %v4633_v25 = vadd.f32 %v4592_v13, %v4238_v23 }
 0x362   : > { %v6184_v56 = vpop.eup %6183  ;;  %v4978_v45 = vsel %vm4975_vm4, %v4977_v49, %v4973_v19  ;;  %v4203_v28 = vpop.f32.mrf.mxu1 }
 0x363   : > { %v6186_v11 = vpop.eup %6185  ;;  %v4981_v15 = vmul.f32 %v6184_v56, %v4759_v55  ;;  %v9084_v2 = vadd.f32 %v9068_v52, %v4633_v25  ;;  %v5158_v38 = vmul.f32 %v4978_v45, %v9015_v48  ;;  %vm4986_vm5 = vweird.f32 %v6184_v56 }
 0x364   : > { %v4760_v3 = vadd.f32 1.0, %v6186_v11  ;;  %vm4987_vm7 = vmor %vm4985_vm6, %vm4986_vm5  ;;  %v4240_v5 = vadd.f32 %v4203_v28, %v3845_v40  ;;  %v3451_v11 = vadd.f32 %v9048_v26, %v8665_v12 }
 0x365   : > { %v4982_v42 = vsub.f32 1.0, %v4981_v15  ;;  %v4687_v54 = vmul.f32 -1.702, %v9084_v2  ;;  %v9118_v20 = vpop.f32.mrf.mxu3 }
 0x366   : > { %6189 = vrcp.f32 %v4760_v3  ;;  %v5004_v51 = vand.u32 2147483647, %v4760_v3  ;;  %v5006_v37 = vand.u32 2147483648, %v4760_v3  ;;  %vm5000_vm10 = vweird.f32 %v4760_v3 }
 0x367   : > { %v6188_v36 = vpop.eup %6187  ;;  %v4983_v59 = vmul.f32 %v6184_v56, %v4982_v42  ;;  %v4729_v21 = vmul.f32 1.442695, %v4687_v54 }
 0x368   : > { %v9090_v33 = vadd.f32 1.0, %v6188_v36  ;;  %v4595_v62 = vpop.f32.mrf.mxu2  ;;  %vm5005_vm12 = vcmp.eq.f32.partialorder %v5004_v51, 8.507059e+37  ;;  %v5007_v34 = vor.u32 1.1754944e-38, %v5006_v37 }
 0x369   : > { %v4984_v4 = vadd.f32 %v6184_v56, %v4983_v59  ;;  %6191 = vpow2.f32 %v4729_v21  ;;  %5991 = vmatmul.msk.f32.gmra.mxu3 %vm1082_vm1, %v5158_v38  ;;  %v4634_v48 = vadd.f32 %v4595_v62, %v4239_v53  ;;  %v3846_v53 = vadd.f32 %v3811_v14, %v3451_v11 }
 0x36a   : > { %6193 = vrcp.f32 %v9090_v33  ;;  %v4206_v16 = vpop.f32.mrf.mxu1  ;;  %v5019_v19 = vand.u32 2147483647, %v9090_v33  ;;  %v5021_v25 = vand.u32 2147483648, %v9090_v33  ;;  %vm5015_vm14 = vweird.f32 %v9090_v33 }
 0x36b   : > { %v4988_v44 = vsel %vm4987_vm7, %v6184_v56, %v4984_v4  ;;  %v9095_v27 = vadd.f32 %v9068_v52, %v4634_v48  ;;  %v3814_v56 = vpop.f32.mrf.mxu0  ;;  %v3452_v21 = vadd.f32 %v9073_v9, %v8679_v29  ;;  %v4241_v62 = vadd.f32 %v4206_v16, %v3846_v53  ;;  %v9138_v29 = vld [vmem:[%s9369_s7] ss:$0 sm:$0xff] }
 0x36c   : > { %v6190_v17 = vpop.eup %6189  ;;  %v4993_v32 = vsel %vm4990_vm8, %v4992_v10, %v4988_v44  ;;  %v5022_v36 = vor.u32 1.1754944e-38, %v5021_v25  ;;  %vm5020_vm2 = vcmp.eq.f32.partialorder %v5019_v19, 8.507059e+37  ;;  %v3453_v16 = vadd.f32 %v9086_v63, %v8693_v22  ;;  %v5369_v25 = vld [vmem:[%s9153_s13] sm:$0xff] }
 0x36d   : > { %v5159_v61 = vmul.f32 %v4993_v32, %v9034_v1  ;;  %v4996_v8 = vmul.f32 %v6190_v17, %v4760_v3  ;;  %v4688_v55 = vmul.f32 -1.702, %v9095_v27  ;;  %vm5001_vm9 = vweird.f32 %v6190_v17 }
 0x36e   : > { %vm5002_vm11 = vmor %vm5000_vm10, %vm5001_vm9  ;;  %v3847_v48 = vadd.f32 %v3814_v56, %v3452_v21 }
 0x36f   : > { %v6192_v60 = vpop.eup %6191  ;;  %v4997_v39 = vsub.f32 1.0, %v4996_v8  ;;  %v4731_v7 = vmul.f32 1.442695, %v4688_v55 }
 0x370   : > { %v6194_v46 = vpop.eup %6193  ;;  %v9103_v23 = vadd.f32 1.0, %v6192_v60  ;;  %v4598_v18 = vpop.f32.mrf.mxu2 }
 0x371   : > { %v4998_v31 = vmul.f32 %v6190_v17, %v4997_v39  ;;  %v5011_v1 = vmul.f32 %v6194_v46, %v9090_v33  ;;  %6195 = vpow2.f32 %v4731_v7  ;;  %5992 = vmatmul.msk.f32.gmra.mxu3 %vm1082_vm1, %v5159_v61  ;;  %v4635_v13 = vadd.f32 %v4598_v18, %v4240_v5 }
 0x372   : > { %6197 = vrcp.f32 %v9103_v23  ;;  %vm5016_vm13 = vweird.f32 %v6194_v46  ;;  %v4209_v38 = vpop.f32.mrf.mxu1  ;;  %v5036_v10 = vand.u32 2147483648, %v9103_v23  ;;  %v5034_v43 = vand.u32 2147483647, %v9103_v23 }
 0x373   : > { %v4999_v41 = vadd.f32 %v6190_v17, %v4998_v31  ;;  %v5012_v49 = vsub.f32 1.0, %v5011_v1  ;;  %v9111_v45 = vadd.f32 %v9068_v52, %v4635_v13  ;;  %vm5017_vm15 = vmor %vm5015_vm14, %vm5016_vm13  ;;  %v3817_v9 = vpop.f32.mrf.mxu0  ;;  %vm5030_vm4 = vweird.f32 %v9103_v23 }
 0x374   : > { %v4242_v8 = vadd.f32 %v4209_v38, %v3847_v48  ;;  %v5037_v55 = vor.u32 1.1754944e-38, %v5036_v10  ;;  %v9145_v7 = vstv %s9122_s19  ;;  %vm5035_vm6 = vcmp.eq.f32.partialorder %v5034_v43, 8.507059e+37  ;;  %v5370_v10 = vld [vmem:[%s9153_s13 + $0x8] sm:$0xff] }
 0x375   : > { %v5003_v24 = vsel %vm5002_vm11, %v6190_v17, %v4999_v41  ;;  %v5013_v6 = vmul.f32 %v6194_v46, %v5012_v49  ;;  %v4689_v42 = vmul.f32 -1.702, %v9111_v45  ;;  %v3848_v1 = vadd.f32 %v3817_v9, %v3453_v16 }
 0x376   : > { %v5008_v15 = vsel %vm5005_vm12, %v5007_v34, %v5003_v24 }
 0x377   : > { %v6196_v28 = vpop.eup %6195  ;;  %v5160_v30 = vmul.f32 %v5008_v15, %v9056_v58  ;;  %v5014_v3 = vadd.f32 %v6194_v46, %v5013_v6  ;;  %v4733_v58 = vmul.f32 1.442695, %v4689_v42 }
 0x378   : > { %v6198_v54 = vpop.eup %6197  ;;  %v9120_v59 = vadd.f32 1.0, %v6196_v28  ;;  %v4601_v50 = vpop.f32.mrf.mxu2 }
 0x379   : > { %v5018_v12 = vsel %vm5017_vm15, %v6194_v46, %v5014_v3  ;;  %v5026_v26 = vmul.f32 %v6198_v54, %v9103_v23  ;;  %5993 = vmatmul.msk.f32.gmra.mxu3 %vm1082_vm1, %v5160_v30  ;;  %v4636_v14 = vadd.f32 %v4601_v50, %v4241_v62  ;;  %vm5031_vm3 = vweird.f32 %v6198_v54 }
 0x37a   : > { %v5023_v33 = vsel %vm5020_vm2, %v5022_v36, %v5018_v12  ;;  %6199 = vrcp.f32 %v9120_v59  ;;  %vm5032_vm5 = vmor %vm5030_vm4, %vm5031_vm3  ;;  %v4212_v5 = vpop.f32.mrf.mxu1  ;;  %v5049_v49 = vand.u32 2147483647, %v9120_v59  ;;  %v5051_v19 = vand.u32 2147483648, %v9120_v59 }
 0x37b   : > { %v5027_v4 = vsub.f32 1.0, %v5026_v26  ;;  %6201 = vpow2.f32 %v4733_v58  ;;  %v5161_v44 = vmul.f32 %v5023_v33, %v9071_v0  ;;  %v9133_v32 = vadd.f32 %v9068_v52, %v4636_v14  ;;  %v3820_v42 = vpop.f32.mrf.mxu0 }
 0x37c   : > { %v4243_v11 = vadd.f32 %v4212_v5, %v3848_v1  ;;  %vm5045_vm8 = vweird.f32 %v9120_v59  ;;  %vm5050_vm10 = vcmp.eq.f32.partialorder %v5049_v49, 8.507059e+37  ;;  %v5052_v30 = vor.u32 1.1754944e-38, %v5051_v19 }
 0x37d   : > { %v5028_v17 = vmul.f32 %v6198_v54, %v5027_v4  ;;  %v4690_v40 = vmul.f32 -1.702, %v9133_v32 }
 0x37f   : > { %v5029_v61 = vadd.f32 %v6198_v54, %v5028_v17  ;;  %v4735_v18 = vmul.f32 1.442695, %v4690_v40 }
 0x380   : > { %v6200_v0 = vpop.eup %6199  ;;  %v4604_v60 = vpop.f32.mrf.mxu2 }
 0x381   : > { %v5267_v39 = vpop.f32.mrf.mxu3  ;;  %v6202_v46 = vpop.eup %6201  ;;  %v5033_v51 = vsel %vm5032_vm5, %v6198_v54, %v5029_v61  ;;  %v5041_v37 = vmul.f32 %v6200_v0, %v9120_v59  ;;  %5994 = vmatmul.msk.f32.gmra.mxu3 %vm1082_vm1, %v5161_v44  ;;  %v4637_v23 = vadd.f32 %v4604_v60, %v4242_v8  ;;  %vm5046_vm7 = vweird.f32 %v6200_v0 }
 0x382   : > { %v5038_v22 = vsel %vm5035_vm6, %v5037_v55, %v5033_v51  ;;  %v9155_v63 = vadd.f32 1.0, %v6202_v46  ;;  %v5268_v31 = vadd.f32 %v9138_v29, %v5267_v39  ;;  %vm5047_vm9 = vmor %vm5045_vm8, %vm5046_vm7  ;;  %v3454_v59 = vadd.f32 %v9101_v47, %v8703_v57  ;;  %v4215_v21 = vpop.f32.mrf.mxu1 }
 0x383   : > { %v5042_v41 = vsub.f32 1.0, %v5041_v37  ;;  %v9160_v13 = vadd.f32 %v9068_v52, %v4637_v23  ;;  %v5162_v34 = vmul.f32 %v5038_v22, %v9084_v2  ;;  %v3823_v51 = vpop.f32.mrf.mxu0  ;;  %v5371_v22 = vld [vmem:[%s9153_s13 + $0x10] sm:$0xff] }
 0x384   : > { %6203 = vrcp.f32 %v9155_v63  ;;  %v5344_v6 = vmul.f32 %v9145_v7, %v5268_v31  ;;  %v3849_v62 = vadd.f32 %v3820_v42, %v3454_v59  ;;  %v5064_v57 = vand.u32 2147483647, %v9155_v63 }
 0x385   : > { %v5043_v56 = vmul.f32 %v6200_v0, %v5042_v41  ;;  %6205 = vpow2.f32 %v4735_v18  ;;  %v4691_v24 = vmul.f32 -1.702, %v9160_v13  ;;  %v5066_v47 = vand.u32 2147483648, %v9155_v63 }
 0x386   : > { %v5394_v28 = vadd.f32 %v5369_v25, %v5344_v6  ;;  %v4244_v43 = vadd.f32 %v4215_v21, %v3849_v62  ;;  %vm5060_vm12 = vweird.f32 %v9155_v63  ;;  %vm5065_vm14 = vcmp.eq.f32.partialorder %v5064_v57, 8.507059e+37 }
 0x387   : > { %v5044_v2 = vadd.f32 %v6200_v0, %v5043_v56  ;;  %v4737_v15 = vmul.f32 1.442695, %v4691_v24  ;;  %v5067_v46 = vor.u32 1.1754944e-38, %v5066_v47  ;;  %v3455_v18 = vadd.f32 %v9118_v20, %v8724_v35 }
 0x388   : > { %v4607_v3 = vpop.f32.mrf.mxu2  ;;  %5419 = vst.msk [vmem:[%s9172_s26] sm:$0xff] %vm414_vm0, %v5394_v28 }
 0x389   : > { %v5270_v38 = vpop.f32.mrf.mxu3  ;;  %v5048_v54 = vsel %vm5047_vm9, %v6200_v0, %v5044_v2  ;;  %6207 = vpow2.f32 %v4737_v15  ;;  %5995 = vmatmul.msk.f32.gmra.mxu3 %vm1082_vm1, %v5162_v34  ;;  %v4638_v53 = vadd.f32 %v4607_v3, %v4243_v11  ;;  %v3850_v19 = vadd.f32 %v3823_v51, %v3455_v18 }
 0x38a   : > { %v5271_v36 = vadd.f32 %v9138_v29, %v5270_v38  ;;  %v6204_v50 = vpop.eup %6203  ;;  %v5053_v12 = vsel %vm5050_vm10, %v5052_v30, %v5048_v54  ;;  %v4218_v49 = vpop.f32.mrf.mxu1 }
 0x38b   : > { %v6206_v26 = vpop.eup %6205  ;;  %v5056_v58 = vmul.f32 %v6204_v50, %v9155_v63  ;;  %v9183_v33 = vadd.f32 %v9068_v52, %v4638_v53  ;;  %v5163_v14 = vmul.f32 %v5053_v12, %v9095_v27  ;;  %vm5061_vm11 = vweird.f32 %v6204_v50 }
 0x38c   : > { %v9185_v4 = vadd.f32 1.0, %v6206_v26  ;;  %v5345_v48 = vmul.f32 %v9145_v7, %v5271_v36  ;;  %vm5062_vm13 = vmor %vm5060_vm12, %vm5061_vm11  ;;  %v4245_v35 = vadd.f32 %v4218_v49, %v3850_v19  ;;  %v5372_v26 = vld [vmem:[%s9153_s13 + $0x18] sm:$0xff] }
 0x38d   : > { %v5057_v44 = vsub.f32 1.0, %v5056_v58  ;;  %v4692_v17 = vmul.f32 -1.702, %v9183_v33 }
 0x38e   : > { %6209 = vrcp.f32 %v9185_v4  ;;  %v5395_v0 = vadd.f32 %v5370_v10, %v5345_v48  ;;  %v5079_v25 = vand.u32 2147483647, %v9185_v4  ;;  %v5081_v15 = vand.u32 2147483648, %v9185_v4 }
 0x38f   : > { %v6208_v9 = vpop.eup %6207  ;;  %v5058_v61 = vmul.f32 %v6204_v50, %v5057_v44  ;;  %v4739_v8 = vmul.f32 1.442695, %v4692_v17  ;;  %vm5075_vm2 = vweird.f32 %v9185_v4 }
 0x390   : > { %v9195_v16 = vadd.f32 1.0, %v6208_v9  ;;  %v4610_v27 = vpop.f32.mrf.mxu2  ;;  %5420 = vst.msk [vmem:[%s9172_s26 + $0x8] sm:$0xff] %vm414_vm0, %v5395_v0  ;;  %vm9221_vm3 = vcmp.eq.f32.partialorder %v5079_v25, 8.507059e+37 }
 0x391   : > { %v5273_v55 = vpop.f32.mrf.mxu3  ;;  %v5059_v40 = vadd.f32 %v6204_v50, %v5058_v61  ;;  %6211 = vpow2.f32 %v4739_v8  ;;  %5996 = vmatmul.msk.f32.gmra.mxu3 %vm1082_vm1, %v5163_v14  ;;  %v4639_v60 = vadd.f32 %v4610_v27, %v4244_v43 }
 0x392   : > { %v5274_v39 = vadd.f32 %v9138_v29, %v5273_v55  ;;  %6213 = vrcp.f32 %v9195_v16  ;;  %v5094_v59 = vand.u32 2147483647, %v9195_v16  ;;  %v5096_v12 = vand.u32 2147483648, %v9195_v16 }
 0x393   : > { %v5063_v37 = vsel %vm5062_vm13, %v6204_v50, %v5059_v40  ;;  %v9203_v5 = vadd.f32 %v9068_v52, %v4639_v60  ;;  %v5082_v50 = vor.u32 1.1754944e-38, %v5081_v15  ;;  %vm5090_vm6 = vweird.f32 %v9195_v16 }
 0x394   : > { %v5346_v23 = vmul.f32 %v9145_v7, %v5274_v39  ;;  %v6210_v63 = vpop.eup %6209  ;;  %v5068_v31 = vsel %vm5065_vm14, %v5067_v46, %v5063_v37  ;;  %vm5095_vm8 = vcmp.eq.f32.partialorder %v5094_v59, 8.507059e+37  ;;  %v5373_v46 = vld [vmem:[%s9153_s13 + $0x20] sm:$0xff] }
 0x395   : > { %v5164_v1 = vmul.f32 %v5068_v31, %v9111_v45  ;;  %v5071_v41 = vmul.f32 %v6210_v63, %v9185_v4  ;;  %v4693_v34 = vmul.f32 -1.702, %v9203_v5  ;;  %vm5076_vm15 = vweird.f32 %v6210_v63 }
 0x396   : > { %v5396_v56 = vadd.f32 %v5371_v22, %v5346_v23  ;;  %vm5077_vm4 = vmor %vm5075_vm2, %vm5076_vm15 }
 0x397   : > { %v6212_v24 = vpop.eup %6211  ;;  %v5072_v6 = vsub.f32 1.0, %v5071_v41  ;;  %v4741_v11 = vmul.f32 1.442695, %v4693_v34 }
 0x398   : > { %v6214_v2 = vpop.eup %6213  ;;  %v9214_v20 = vadd.f32 1.0, %v6212_v24  ;;  %5421 = vst.msk [vmem:[%s9172_s26 + $0x10] sm:$0xff] %vm414_vm0, %v5396_v56  ;;  %v4613_v45 = vpop.f32.mrf.mxu2 }
 0x399   : > { %v5276_v28 = vpop.f32.mrf.mxu3  ;;  %v5073_v30 = vmul.f32 %v6210_v63, %v5072_v6  ;;  %v5086_v3 = vmul.f32 %v6214_v2, %v9195_v16  ;;  %6215 = vpow2.f32 %v4741_v11  ;;  %5997 = vmatmul.msk.f32.gmra.mxu3 %vm1082_vm1, %v5164_v1  ;;  %v4640_v53 = vadd.f32 %v4613_v45, %v4245_v35  ;;  %v5374_v11 = vld [vmem:[%s9153_s13 + $0x28] sm:$0xff] }
 0x39a   : > { %6217 = vrcp.f32 %v9214_v20  ;;  %v5277_v36 = vadd.f32 %v9138_v29, %v5276_v28  ;;  %vm5091_vm5 = vweird.f32 %v6214_v2  ;;  %v5111_v27 = vand.u32 2147483648, %v9214_v20 }
 0x39b   : > { %v5074_v42 = vadd.f32 %v6210_v63, %v5073_v30  ;;  %v5087_v54 = vsub.f32 1.0, %v5086_v3  ;;  %v9231_v62 = vadd.f32 %v9068_v52, %v4640_v53  ;;  %vm5092_vm7 = vmor %vm5090_vm6, %vm5091_vm5  ;;  %v5097_v52 = vor.u32 1.1754944e-38, %v5096_v12 }
 0x39c   : > { %v5347_v4 = vmul.f32 %v9145_v7, %v5277_v36  ;;  %v5109_v39 = vand.u32 2147483647, %v9214_v20  ;;  %vm5105_vm10 = vweird.f32 %v9214_v20  ;;  %v5112_v22 = vor.u32 1.1754944e-38, %v5111_v27  ;;  %v5375_v36 = vld [vmem:[%s9153_s13 + $0x30] sm:$0xff] }
 0x39d   : > { %v5078_v58 = vsel %vm5077_vm4, %v6210_v63, %v5074_v42  ;;  %v5088_v21 = vmul.f32 %v6214_v2, %v5087_v54  ;;  %v4694_v17 = vmul.f32 -1.702, %v9231_v62 }
 0x39e   : > { %v5083_v48 = vsel %vm9221_vm3, %v5082_v50, %v5078_v58  ;;  %v5397_v57 = vadd.f32 %v5372_v26, %v5347_v4  ;;  %vm5110_vm12 = vcmp.eq.f32.partialorder %v5109_v39, 8.507059e+37 }
 0x39f   : > { %v6216_v10 = vpop.eup %6215  ;;  %v5165_v14 = vmul.f32 %v5083_v48, %v9133_v32  ;;  %v5089_v44 = vadd.f32 %v6214_v2, %v5088_v21  ;;  %v4743_v8 = vmul.f32 1.442695, %v4694_v17 }
 0x3a0   : > { %v6218_v47 = vpop.eup %6217  ;;  %v4768_v43 = vadd.f32 1.0, %v6216_v10  ;;  %5422 = vst.msk [vmem:[%s9172_s26 + $0x18] sm:$0xff] %vm414_vm0, %v5397_v57 }
 0x3a1   : > { %v5093_v9 = vsel %vm5092_vm7, %v6214_v2, %v5089_v44  ;;  %v5101_v61 = vmul.f32 %v6218_v47, %v9214_v20  ;;  %5998 = vmatmul.msk.f32.gmra.mxu3 %vm1082_vm1, %v5165_v14  ;;  %vm5106_vm9 = vweird.f32 %v6218_v47  ;;  %v5376_v44 = vld [vmem:[%s9153_s13 + $0x38] sm:$0xff] }
 0x3a2   : > { %v5098_v32 = vsel %vm5095_vm8, %v5097_v52, %v5093_v9  ;;  %6219 = vrcp.f32 %v4768_v43  ;;  %v5279_v0 = vpop.f32.mrf.mxu3  ;;  %vm5107_vm11 = vmor %vm5105_vm10, %vm5106_vm9  ;;  %v5124_v34 = vand.u32 2147483647, %v4768_v43  ;;  %v5126_v19 = vand.u32 2147483648, %v4768_v43 }
 0x3a3   : > { %v5102_v16 = vsub.f32 1.0, %v5101_v61  ;;  %6221 = vpow2.f32 %v4743_v8  ;;  %v5280_v55 = vadd.f32 %v9138_v29, %v5279_v0  ;;  %v5166_v40 = vmul.f32 %v5098_v32, %v9160_v13  ;;  %v5378_v32 = vld [vmem:[%s9153_s13 + $0x48] sm:$0xff] }
 0x3a4   : > { %vm5120_vm14 = vweird.f32 %v4768_v43  ;;  %v5127_v35 = vor.u32 1.1754944e-38, %v5126_v19  ;;  %vm5125_vm2 = vcmp.eq.f32.partialorder %v5124_v34, 8.507059e+37  ;;  %v5382_v34 = vld [vmem:[%s9153_s13 + $0x68] sm:$0xff] }
 0x3a5   : > { %v5103_v60 = vmul.f32 %v6218_v47, %v5102_v16  ;;  %v5348_v51 = vmul.f32 %v9145_v7, %v5280_v55 }
 0x3a7   : > { %v5104_v37 = vadd.f32 %v6218_v47, %v5103_v60  ;;  %v5398_v63 = vadd.f32 %v5373_v46, %v5348_v51 }
 0x3a8   : > { %v6220_v23 = vpop.eup %6219 }
 0x3a9   : > { %v6222_v18 = vpop.eup %6221  ;;  %v5108_v31 = vsel %vm5107_vm11, %v6218_v47, %v5104_v37  ;;  %v5116_v13 = vmul.f32 %v6220_v23, %v4768_v43  ;;  %5999 = vmatmul.msk.f32.gmra.mxu3 %vm1082_vm1, %v5166_v40  ;;  %5423 = vst.msk [vmem:[%s9172_s26 + $0x20] sm:$0xff] %vm414_vm0, %v5398_v63  ;;  %vm5121_vm13 = vweird.f32 %v6220_v23  ;;  %v5377_v43 = vld [vmem:[%s9153_s13 + $0x40] sm:$0xff]  ;;  %v5379_v40 = vld [vmem:[%s9153_s13 + $0x50] sm:$0xff]  ;;  %v5380_v37 = vld [vmem:[%s9153_s13 + $0x58] sm:$0xff] }
 0x3aa   : > { %v5113_v1 = vsel %vm5110_vm12, %v5112_v22, %v5108_v31  ;;  %v4769_v41 = vadd.f32 1.0, %v6222_v18  ;;  %vm5122_vm15 = vmor %vm5120_vm14, %vm5121_vm13  ;;  %v5381_v31 = vld [vmem:[%s9153_s13 + $0x60] sm:$0xff] }
 0x3ab   : > { %v5117_v49 = vsub.f32 1.0, %v5116_v13  ;;  %v5167_v56 = vmul.f32 %v5113_v1, %v9183_v33 }
 0x3ac   : > { %6223 = vrcp.f32 %v4769_v41  ;;  %v5282_v25 = vpop.f32.mrf.mxu3  ;;  %v5141_v53 = vand.u32 2147483648, %v4769_v41  ;;  %v5139_v59 = vand.u32 2147483647, %v4769_v41  ;;  %vm5135_vm4 = vweird.f32 %v4769_v41 }
 0x3ad   : > { %v5118_v24 = vmul.f32 %v6220_v23, %v5117_v49  ;;  %v5283_v6 = vadd.f32 %v9138_v29, %v5282_v25 }
 0x3ae   : > { %vm5140_vm6 = vcmp.eq.f32.partialorder %v5139_v59, 8.507059e+37 }
 0x3af   : > { %v5119_v2 = vadd.f32 %v6220_v23, %v5118_v24  ;;  %v5349_v15 = vmul.f32 %v9145_v7, %v5283_v6  ;;  %v5383_v6 = vld [vmem:[%s9153_s13 + $0x70] sm:$0xff] }
 0x3b1   : > { %v5123_v20 = vsel %vm5122_vm15, %v6220_v23, %v5119_v2  ;;  %v5399_v45 = vadd.f32 %v5374_v11, %v5349_v15  ;;  %6000 = vmatmul.msk.f32.gmra.mxu3 %vm1082_vm1, %v5167_v56 }
 0x3b2   : > { %v6224_v28 = vpop.eup %6223  ;;  %v5128_v33 = vsel %vm5125_vm2, %v5127_v35, %v5123_v20  ;;  %v5384_v20 = vld [vmem:[%s9153_s13 + $0x78] sm:$0xff] }
 0x3b3   : > { %v5131_v30 = vmul.f32 %v6224_v28, %v4769_v41  ;;  %5424 = vst.msk [vmem:[%s9172_s26 + $0x28] sm:$0xff] %vm414_vm0, %v5399_v45  ;;  %v5168_v38 = vmul.f32 %v5128_v33, %v9203_v5  ;;  %vm5136_vm3 = vweird.f32 %v6224_v28  ;;  %v5142_v5 = vor.u32 1.1754944e-38, %v5141_v53 }
 0x3b4   : > { %v5285_v3 = vpop.f32.mrf.mxu3  ;;  %vm5137_vm5 = vmor %vm5135_vm4, %vm5136_vm3 }
 0x3b5   : > { %v5132_v42 = vsub.f32 1.0, %v5131_v30  ;;  %v5286_v54 = vadd.f32 %v9138_v29, %v5285_v3  ;;  %v5385_v3 = vld [vmem:[%s9153_s13 + $0x80] sm:$0xff] }
 0x3b7   : > { %v5133_v50 = vmul.f32 %v6224_v28, %v5132_v42  ;;  %v5350_v12 = vmul.f32 %v9145_v7, %v5286_v54 }
 0x3b9   : > { %v5134_v26 = vadd.f32 %v6224_v28, %v5133_v50  ;;  %v5400_v58 = vadd.f32 %v5375_v36, %v5350_v12  ;;  %6001 = vmatmul.msk.f32.gmra.mxu3 %vm1082_vm1, %v5168_v38  ;;  %v5386_v36 = vld [vmem:[%s9153_s13 + $0x88] sm:$0xff] }
 0x3bb   : > { %v5138_v21 = vsel %vm5137_vm5, %v6224_v28, %v5134_v26  ;;  %5425 = vst.msk [vmem:[%s9172_s26 + $0x30] sm:$0xff] %vm414_vm0, %v5400_v58  ;;  %v5387_v58 = vld [vmem:[%s9153_s13 + $0x90] sm:$0xff] }
 0x3bc   : > { %v5143_v4 = vsel %vm5140_vm6, %v5142_v5, %v5138_v21  ;;  %v5288_v48 = vpop.f32.mrf.mxu3 }
 0x3bd   : > { %v5169_v10 = vmul.f32 %v5143_v4, %v9231_v62  ;;  %v5289_v14 = vadd.f32 %v9138_v29, %v5288_v48 }
 0x3bf   : > { %v5351_v17 = vmul.f32 %v9145_v7, %v5289_v14 }
 0x3c1   : > { %v5401_v57 = vadd.f32 %v5376_v44, %v5351_v17  ;;  %6002 = vmatmul.msk.f32.gmra.mxu3 %vm1082_vm1, %v5169_v10  ;;  %v5388_v10 = vld [vmem:[%s9153_s13 + $0x98] sm:$0xff]  ;;  %vm5443_vm1 = vcmask 258048  }
 0x3c3   : > { %5426 = vst.msk [vmem:[%s9172_s26 + $0x38] sm:$0xff] %vm414_vm0, %v5401_v57 }
 0x3c4   : > { %v5291_v47 = vpop.f32.mrf.mxu3 }
 0x3c5   : > { %v5292_v52 = vadd.f32 %v9138_v29, %v5291_v47  ;;  %v5389_v47 = vld [vmem:[%s9153_s13 + $0xa0] sm:$0xff] }
 0x3c7   : > { %v5352_v9 = vmul.f32 %v9145_v7, %v5292_v52 }
 0x3c9   : > { %v5402_v62 = vadd.f32 %v5377_v43, %v5352_v9 }
 0x3cb   : > { %5427 = vst.msk [vmem:[%s9172_s26 + $0x40] sm:$0xff] %vm414_vm0, %v5402_v62 }
 0x3cc   : > { %v5294_v61 = vpop.f32.mrf.mxu3 }
 0x3cd   : > { %v5295_v8 = vadd.f32 %v9138_v29, %v5294_v61  ;;  %v5390_v61 = vld [vmem:[%s9153_s13 + $0xa8] sm:$0xff] }
 0x3cf   : > { %v5353_v0 = vmul.f32 %v9145_v7, %v5295_v8 }
 0x3d1   : > { %v5403_v16 = vadd.f32 %v5378_v32, %v5353_v0 }
 0x3d3   : > { %5428 = vst.msk [vmem:[%s9172_s26 + $0x48] sm:$0xff] %vm414_vm0, %v5403_v16 }
 0x3d4   : > { %v5297_v27 = vpop.f32.mrf.mxu3 }
 0x3d5   : > { %v5298_v55 = vadd.f32 %v9138_v29, %v5297_v27  ;;  %v5391_v27 = vld [vmem:[%s9153_s13 + $0xb0] sm:$0xff] }
 0x3d7   : > { %v5354_v60 = vmul.f32 %v9145_v7, %v5298_v55 }
 0x3d9   : > { %v5404_v39 = vadd.f32 %v5379_v40, %v5354_v60 }
 0x3db   : > { %5429 = vst.msk [vmem:[%s9172_s26 + $0x50] sm:$0xff] %vm414_vm0, %v5404_v39 }
 0x3dc   : > { %v5300_v46 = vpop.f32.mrf.mxu3 }
 0x3dd   : > { %v5301_v51 = vadd.f32 %v9138_v29, %v5300_v46  ;;  %v5392_v46 = vld [vmem:[%s9153_s13 + $0xb8] sm:$0xff] }
 0x3df   : > { %v5355_v23 = vmul.f32 %v9145_v7, %v5301_v51 }
 0x3e1   : > { %v5405_v22 = vadd.f32 %v5380_v37, %v5355_v23 }
 0x3e3   : > { %5430 = vst.msk [vmem:[%s9172_s26 + $0x58] sm:$0xff] %vm414_vm0, %v5405_v22 }
 0x3e4   : > { %v5303_v63 = vpop.f32.mrf.mxu3 }
 0x3e5   : > { %v5304_v18 = vadd.f32 %v9138_v29, %v5303_v63  ;;  %v5393_v63 = vld [vmem:[%s9153_s13 + $0xc0] sm:$0x1f] }
 0x3e7   : > { %v5356_v13 = vmul.f32 %v9145_v7, %v5304_v18 }
 0x3e9   : > { %v5406_v1 = vadd.f32 %v5381_v31, %v5356_v13 }
 0x3eb   : > { %5431 = vst.msk [vmem:[%s9172_s26 + $0x60] sm:$0xff] %vm414_vm0, %v5406_v1 }
 0x3ec   : > { %v5306_v41 = vpop.f32.mrf.mxu3 }
 0x3ed   : > { %v5307_v49 = vadd.f32 %v9138_v29, %v5306_v41 }
 0x3ef   : > { %v5357_v19 = vmul.f32 %v9145_v7, %v5307_v49 }
 0x3f1   : > { %v5407_v25 = vadd.f32 %v5382_v34, %v5357_v19 }
 0x3f3   : > { %5432 = vst.msk [vmem:[%s9172_s26 + $0x68] sm:$0xff] %vm414_vm0, %v5407_v25 }
 0x3f4   : > { %v5309_v56 = vpop.f32.mrf.mxu3 }
 0x3f5   : > { %v5310_v24 = vadd.f32 %v9138_v29, %v5309_v56 }
 0x3f7   : > { %v5358_v11 = vmul.f32 %v9145_v7, %v5310_v24 }
 0x3f9   : > { %v5408_v2 = vadd.f32 %v5383_v6, %v5358_v11 }
 0x3fb   : > { %5433 = vst.msk [vmem:[%s9172_s26 + $0x70] sm:$0xff] %vm414_vm0, %v5408_v2 }
 0x3fc   : > { %v5312_v15 = vpop.f32.mrf.mxu3 }
 0x3fd   : > { %v5313_v35 = vadd.f32 %v9138_v29, %v5312_v15 }
 0x3ff   : > { %v5359_v45 = vmul.f32 %v9145_v7, %v5313_v35 }
 0x401   : > { %v5409_v28 = vadd.f32 %v5384_v20, %v5359_v45 }
 0x403   : > { %5434 = vst.msk [vmem:[%s9172_s26 + $0x78] sm:$0xff] %vm414_vm0, %v5409_v28 }
 0x404   : > { %v5315_v33 = vpop.f32.mrf.mxu3 }
 0x405   : > { %v5316_v30 = vadd.f32 %v9138_v29, %v5315_v33 }
 0x407   : > { %v5360_v38 = vmul.f32 %v9145_v7, %v5316_v30 }
 0x409   : > { %v5410_v42 = vadd.f32 %v5385_v3, %v5360_v38 }
 0x40b   : > { %5435 = vst.msk [vmem:[%s9172_s26 + $0x80] sm:$0xff] %vm414_vm0, %v5410_v42 }
 0x40c   : > { %v5318_v54 = vpop.f32.mrf.mxu3 }
 0x40d   : > { %v5319_v53 = vadd.f32 %v9138_v29, %v5318_v54 }
 0x40f   : > { %v5361_v50 = vmul.f32 %v9145_v7, %v5319_v53 }
 0x411   : > { %v5411_v59 = vadd.f32 %v5386_v36, %v5361_v50 }
 0x413   : > { %5436 = vst.msk [vmem:[%s9172_s26 + $0x88] sm:$0xff] %vm414_vm0, %v5411_v59 }
 0x414   : > { %v5321_v12 = vpop.f32.mrf.mxu3 }
 0x415   : > { %v5322_v26 = vadd.f32 %v9138_v29, %v5321_v12 }
 0x417   : > { %v5362_v5 = vmul.f32 %v9145_v7, %v5322_v26 }
 0x419   : > { %v5412_v21 = vadd.f32 %v5387_v58, %v5362_v5 }
 0x41b   : > { %5437 = vst.msk [vmem:[%s9172_s26 + $0x90] sm:$0xff] %vm414_vm0, %v5412_v21 }
 0x41c   : > { %v5324_v4 = vpop.f32.mrf.mxu3 }
 0x41d   : > { %v5325_v48 = vadd.f32 %v9138_v29, %v5324_v4 }
 0x41f   : > { %v5363_v14 = vmul.f32 %v9145_v7, %v5325_v48 }
 0x421   : > { %v5413_v44 = vadd.f32 %v5388_v10, %v5363_v14 }
 0x423   : > { %5438 = vst.msk [vmem:[%s9172_s26 + $0x98] sm:$0xff] %vm414_vm0, %v5413_v44 }
 0x424   : > { %v5327_v17 = vpop.f32.mrf.mxu3 }
 0x425   : > { %v5328_v57 = vadd.f32 %v9138_v29, %v5327_v17 }
 0x427   : > { %v5364_v52 = vmul.f32 %v9145_v7, %v5328_v57 }
 0x429   : > { %v5414_v43 = vadd.f32 %v5389_v47, %v5364_v52 }
 0x42b   : > { %5439 = vst.msk [vmem:[%s9172_s26 + $0xa0] sm:$0xff] %vm414_vm0, %v5414_v43 }
 0x42c   : > { %v5330_v9 = vpop.f32.mrf.mxu3 }
 0x42d   : > { %v5331_v62 = vadd.f32 %v9138_v29, %v5330_v9 }
 0x42f   : > { %v5365_v8 = vmul.f32 %v9145_v7, %v5331_v62 }
 0x431   : > { %v5415_v32 = vadd.f32 %v5390_v61, %v5365_v8 }
 0x433   : > { %5440 = vst.msk [vmem:[%s9172_s26 + $0xa8] sm:$0xff] %vm414_vm0, %v5415_v32 }
 0x434   : > { %v5333_v0 = vpop.f32.mrf.mxu3 }
 0x435   : > { %v5334_v16 = vadd.f32 %v9138_v29, %v5333_v0 }
 0x437   : > { %v5366_v55 = vmul.f32 %v9145_v7, %v5334_v16 }
 0x439   : > { %v5416_v40 = vadd.f32 %v5391_v27, %v5366_v55 }
 0x43b   : > { %5441 = vst.msk [vmem:[%s9172_s26 + $0xb0] sm:$0xff] %vm414_vm0, %v5416_v40 }
 0x43c   : > { %v5336_v60 = vpop.f32.mrf.mxu3 }
 0x43d   : > { %v5337_v39 = vadd.f32 %v9138_v29, %v5336_v60 }
 0x43f   : > { %v5367_v51 = vmul.f32 %v9145_v7, %v5337_v39 }
 0x441   : > { %v5417_v37 = vadd.f32 %v5392_v46, %v5367_v51 }
 0x443   : > { %5442 = vst.msk [vmem:[%s9172_s26 + $0xb8] sm:$0xff] %vm414_vm0, %v5417_v37 }
 0x444   : > { %v5339_v23 = vpop.f32.mrf.mxu3 }
 0x445   : > { %v5340_v22 = vadd.f32 %v9138_v29, %v5339_v23 }
 0x447   : > { %v5368_v18 = vmul.f32 %v9145_v7, %v5340_v22 }
 0x449   : > { %v5418_v31 = vadd.f32 %v5393_v63, %v5368_v18 }
 0x44b   : > { %5444 = vst.msk [vmem:[%s9172_s26 + $0xc0] sm:$0x1f] %vm5443_vm1, %v5418_v31 }
 0x44c PF: > { %s21_s15 = sadd.s32 1, %s6234_s15  }
 0x44d   : > { %p18_p4 = scmp.ge.s32.totalorder %s21_s15, 4  }
 0x44f   :  { %20 = sbr.rel (!%p18_p4) target bundleno = 2 (0x2), region = 109 }

</bundles_post_ra>
